<compile_context>
chip_gen: v5e
topology: v5e:2x2
jax: 0.10.0
libtpu: 0.0.40
codegen_flags: <defaults>
</compile_context>

<pallas_src>
import functools

import jax
import jax.numpy as jnp
from jax.experimental import pallas as pl
from jax.experimental.pallas import tpu as pltpu

NEG_SLOPE = 0.01          # torch.nn.LeakyReLU default
BN_EPS = 1e-5             # torch.nn.BatchNorm2d default
VMEM_LIMIT = 32 * 1024 * 1024   # safe on v5e/v6e (128 MiB) and v7x (64 MiB per TC)

M_TILE_CAP = 512          # rows per matmul tile (feedback: v7x-friendly budget)
K_TILE_CAP = 1024
N_TILE_CAP = 256
ROW_TILE_CAP = 1024       # rows per normalize-kernel tile


# ----------------------------------------------------------------------------- #
# Small helpers
# ----------------------------------------------------------------------------- #
def _choose_tile(dim, cap, align):
    """Largest divisor of `dim` that is <= cap, preferring multiples of `align`
    (keeps block shapes (8,128)-friendly without padding/masking)."""
    if dim <= cap:
        return dim
    best = None
    for t in range(cap, 0, -1):
        if dim % t == 0:
            if t % align == 0:
                return t
            if best is None:
                best = t
    return best


def _apply_act(x, act):
    if act == "leaky_relu":
        return jnp.where(x > 0, x, NEG_SLOPE * x)
    if act == "tanh":
        return jnp.tanh(x)
    return x


# ----------------------------------------------------------------------------- #
# Pallas kernels
# ----------------------------------------------------------------------------- #
def _conv_mm_kernel(a_ref, w_ref, csc_ref, csh_ref,
                    out_ref, sum_ref, sq_ref, acc_ref, *, pre_act):
    """Tiled matmul with fused per-K-column affine+activation on the A tile and
    per-M-tile BatchNorm partial statistics in the epilogue."""
    k = pl.program_id(2)

    @pl.when(k == 0)
    def _():
        acc_ref[...] = jnp.zeros_like(acc_ref)

    a = a_ref[...].astype(jnp.float32) * csc_ref[...] + csh_ref[...]
    a = _apply_act(a, pre_act)
    acc_ref[...] += jnp.dot(a.astype(jnp.bfloat16), w_ref[...],
                            preferred_element_type=jnp.float32)

    @pl.when(k == pl.num_programs(2) - 1)
    def _():
        y = acc_ref[...]
        out_ref[...] = y.astype(out_ref.dtype)
        sum_ref[...] = jnp.sum(y, axis=0, keepdims=True).reshape(1, 1, -1)
        sq_ref[...] = jnp.sum(y * y, axis=0, keepdims=True).reshape(1, 1, -1)


def _conv_mm_res_kernel(a_ref, w_ref, csc_ref, csh_ref, r_ref, rsc_ref, rsh_ref,
                        out_ref, sum_ref, sq_ref, acc_ref, *, pre_act, res_act):
    """Same as _conv_mm_kernel plus a fused residual add (the residual is a raw
    slab that gets its own affine+activation applied in the epilogue), with BN
    stats computed AFTER the residual add (matches ResidualLayer semantics)."""
    k = pl.program_id(2)

    @pl.when(k == 0)
    def _():
        acc_ref[...] = jnp.zeros_like(acc_ref)

    a = a_ref[...].astype(jnp.float32) * csc_ref[...] + csh_ref[...]
    a = _apply_act(a, pre_act)
    acc_ref[...] += jnp.dot(a.astype(jnp.bfloat16), w_ref[...],
                            preferred_element_type=jnp.float32)

    @pl.when(k == pl.num_programs(2) - 1)
    def _():
        res = r_ref[...].astype(jnp.float32) * rsc_ref[...] + rsh_ref[...]
        res = _apply_act(res, res_act)
        y = acc_ref[...] + res
        out_ref[...] = y.astype(out_ref.dtype)
        sum_ref[...] = jnp.sum(y, axis=0, keepdims=True).reshape(1, 1, -1)
        sq_ref[...] = jnp.sum(y * y, axis=0, keepdims=True).reshape(1, 1, -1)


def _norm_act_kernel(x_ref, sc_ref, sh_ref, o_ref, *, act):
    y = x_ref[...].astype(jnp.float32) * sc_ref[...] + sh_ref[...]
    o_ref[...] = _apply_act(y, act).astype(o_ref.dtype)


# ----------------------------------------------------------------------------- #
# Pallas wrappers
# ----------------------------------------------------------------------------- #
def conv_matmul(patches, wmat, col_scale, col_shift, pre_act,
                residual=None, res_scale=None, res_shift=None, res_act="none",
                out_dtype=jnp.bfloat16):
    """(M, K) @ (K, C) tiled MXU matmul.

    Returns (out (M,C) out_dtype, partial sums (nm,1,C) f32, partial sumsq (nm,1,C) f32).
    """
    M, K = patches.shape
    Kw, C = wmat.shape
    assert K == Kw, (K, Kw)

    tm = _choose_tile(M, M_TILE_CAP, 8)
    tk = K if K <= 2 * K_TILE_CAP else _choose_tile(K, K_TILE_CAP, 128)
    tn = C if C <= N_TILE_CAP else _choose_tile(C, N_TILE_CAP, 128)
    nm, nn, nk = M // tm, C // tn, K // tk

    a = patches.astype(jnp.bfloat16)
    w = wmat.astype(jnp.bfloat16)
    csc = col_scale.reshape(1, K).astype(jnp.float32)
    csh = col_shift.reshape(1, K).astype(jnp.float32)

    a_spec = pl.BlockSpec((tm, tk), lambda i, j, k: (i, k))
    w_spec = pl.BlockSpec((tk, tn), lambda i, j, k: (k, j))
    cs_spec = pl.BlockSpec((1, tk), lambda i, j, k: (0, k))
    out_spec = pl.BlockSpec((tm, tn), lambda i, j, k: (i, j))
    st_spec = pl.BlockSpec((1, 1, tn), lambda i, j, k: (i, 0, j))

    out_shape = (jax.ShapeDtypeStruct((M, C), out_dtype),
                 jax.ShapeDtypeStruct((nm, 1, C), jnp.float32),
                 jax.ShapeDtypeStruct((nm, 1, C), jnp.float32))
    out_specs = (out_spec, st_spec, st_spec)
    cparams = pltpu.CompilerParams(
        dimension_semantics=("parallel", "parallel", "arbitrary"),
        vmem_limit_bytes=VMEM_LIMIT)

    if residual is None:
        kernel = functools.partial(_conv_mm_kernel, pre_act=pre_act)
        in_specs = [a_spec, w_spec, cs_spec, cs_spec]
        args = (a, w, csc, csh)
    else:
        r = residual.astype(jnp.bfloat16)
        rsc = res_scale.reshape(1, C).astype(jnp.float32)
        rsh = res_shift.reshape(1, C).astype(jnp.float32)
        r_spec = pl.BlockSpec((tm, tn), lambda i, j, k: (i, j))
        rs_spec = pl.BlockSpec((1, tn), lambda i, j, k: (0, j))
        kernel = functools.partial(_conv_mm_res_kernel, pre_act=pre_act, res_act=res_act)
        in_specs = [a_spec, w_spec, cs_spec, cs_spec, r_spec, rs_spec, rs_spec]
        args = (a, w, csc, csh, r, rsc, rsh)

    return pl.pallas_call(
        kernel,
        out_shape=out_shape,
        grid=(nm, nn, nk),
        in_specs=in_specs,
        out_specs=out_specs,
        scratch_shapes=[pltpu.VMEM((tm, tn), jnp.float32)],
        compiler_params=cparams,
    )(*args)


def pallas_norm_act(x, scale, shift, act, out_dtype):
    """Row-tiled elementwise affine-normalize + activation on a lane-dense
    (rows, W*C) slab (scale/shift already expanded to the column layout)."""
    R, Ccols = x.shape
    tr = _choose_tile(R, ROW_TILE_CAP, 8)
    nr = R // tr
    sc = scale.reshape(1, Ccols).astype(jnp.float32)
    sh = shift.reshape(1, Ccols).astype(jnp.float32)
    return pl.pallas_call(
        functools.partial(_norm_act_kernel, act=act),
        out_shape=jax.ShapeDtypeStruct((R, Ccols), out_dtype),
        grid=(nr,),
        in_specs=[pl.BlockSpec((tr, Ccols), lambda i: (i, 0)),
                  pl.BlockSpec((1, Ccols), lambda i: (0, 0)),
                  pl.BlockSpec((1, Ccols), lambda i: (0, 0))],
        out_specs=pl.BlockSpec((tr, Ccols), lambda i: (i, 0)),
        compiler_params=pltpu.CompilerParams(
            dimension_semantics=("parallel",),
            vmem_limit_bytes=VMEM_LIMIT),
    )(x, sc, sh)


# ----------------------------------------------------------------------------- #
# Plain-JAX glue: patch extraction, weight repacking, BN finalization
# ----------------------------------------------------------------------------- #
def _bn_scale_shift(sums, sqs, count, gamma, beta, phase_groups=1):
    """Finalize training-mode (biased) BatchNorm stats from per-tile partials and
    fold them with the affine params into a single per-channel (scale, shift)."""
    s = jnp.sum(sums, axis=(0, 1))
    q = jnp.sum(sqs, axis=(0, 1))
    if phase_groups > 1:
        s = s.reshape(phase_groups, -1).sum(axis=0)
        q = q.reshape(phase_groups, -1).sum(axis=0)
    mean = s / count
    var = jnp.maximum(q / count - mean * mean, 0.0)
    scale = gamma.astype(jnp.float32) * jax.lax.rsqrt(var + BN_EPS)
    shift = beta.astype(jnp.float32) - mean * scale
    return scale, shift


def _patches_3x3_reflect(x):
    """x: (N,H,W,C) -> (N*H*W, 9*C) patches for Conv2d(k=3,s=1,pad=1,reflect).
    Columns are tap-major / channel-minor."""
    N, H, W, C = x.shape
    xp = jnp.pad(x, ((0, 0), (1, 1), (1, 1), (0, 0)), mode="reflect")
    cols = [xp[:, kh:kh + H, kw:kw + W, :] for kh in range(3) for kw in range(3)]
    return jnp.concatenate(cols, axis=-1).reshape(N * H * W, 9 * C)


def _conv3x3_weight_matrix(w_oihw):
    """Conv2d weight (Cout, Cin, 3, 3) -> (9*Cin, Cout), row order matching
    _patches_3x3_reflect."""
    Cout, Cin = w_oihw.shape[0], w_oihw.shape[1]
    return jnp.transpose(w_oihw, (2, 3, 1, 0)).reshape(9 * Cin, Cout)


def _patches_ct_4tap(x):
    """x: (N,H,W,C) -> (N*H*W, 4*C) patches [p0,p1,p2,p3] for the 4-phase
    ConvTranspose2d(3, s=2, p=1, op=1) decomposition (zero pad bottom/right)."""
    N, H, W, C = x.shape
    xp = jnp.pad(x, ((0, 0), (0, 1), (0, 1), (0, 0)))
    p0 = xp[:, :H, :W, :]
    p1 = xp[:, :H, 1:W + 1, :]
    p2 = xp[:, 1:H + 1, :W, :]
    p3 = xp[:, 1:H + 1, 1:W + 1, :]
    return jnp.concatenate([p0, p1, p2, p3], axis=-1).reshape(N * H * W, 4 * C)


def _convT_phase_weight(w_iohw):
    """ConvTranspose2d weight (Cin, Cout, 3, 3) -> (4*Cin, 4*Cout) phase matrix.
    Output columns are the 4 output-parity phases (0,0),(0,1),(1,0),(1,1)."""
    Cin, Cout = w_iohw.shape[0], w_iohw.shape[1]
    z = jnp.zeros((Cin, Cout), w_iohw.dtype)
    blk = lambda kh, kw: w_iohw[:, :, kh, kw]
    row0 = jnp.concatenate([blk(1, 1), blk(1, 2), blk(2, 1), blk(2, 2)], axis=1)  # p0
    row1 = jnp.concatenate([z,         blk(1, 0), z,         blk(2, 0)], axis=1)  # p1
    row2 = jnp.concatenate([z,         z,         blk(0, 1), blk(0, 2)], axis=1)  # p2
    row3 = jnp.concatenate([z,         z,         z,         blk(0, 0)], axis=1)  # p3
    return jnp.concatenate([row0, row1, row2, row3], axis=0)


def _interleave_phases(y_phase, N, H, W, Cout):
    """(N*H*W, 4*Cout) phase output -> (N, 2H, 2W, Cout) spatial output."""
    y = y_phase.reshape(N, H, W, 2, 2, Cout)          # (..., ry, rx, c)
    y = jnp.transpose(y, (0, 1, 3, 2, 4, 5))          # (N, H, 2, W, 2, C)
    return y.reshape(N, 2 * H, 2 * W, Cout)


# ----------------------------------------------------------------------------- #
# Parameters (deterministic, in-script; same structure as WideResnetDecoder)
# ----------------------------------------------------------------------------- #
def init_params(key, l, widen_k, input_channels, image_size):
    def nrm(kk, shape, scale=0.1):
        return scale * jax.random.normal(kk, shape, dtype=jnp.float32)

    params = {"stages": []}
    in_c = input_channels
    size = image_size
    while size != 2:
        stage = {}
        convs = []
        prev = in_c
        for _ in range(l - 1):
            key, k1, k2, k3 = jax.random.split(key, 4)
            convs.append({
                "w": nrm(k1, (in_c * widen_k, prev, 3, 3)),
                "gamma": 1.0 + nrm(k2, (in_c * widen_k,)),
                "beta": nrm(k3, (in_c * widen_k,)),
            })
            prev = in_c * widen_k
        key, k1 = jax.random.split(key)
        convs.append({"w": nrm(k1, (in_c, prev, 3, 3))})    # projection: no norm / act
        stage["wide_convs"] = convs

        key, k1, k2 = jax.random.split(key, 3)
        stage["res_bn"] = {"gamma": 1.0 + nrm(k1, (in_c,)), "beta": nrm(k2, (in_c,))}

        key, k1, k2, k3 = jax.random.split(key, 4)
        stage["up_w"] = nrm(k1, (in_c, in_c // 2, 3, 3))    # ConvTranspose2d (in, out, kh, kw)
        stage["up_bn"] = {"gamma": 1.0 + nrm(k2, (in_c // 2,)), "beta": nrm(k3, (in_c // 2,))}

        params["stages"].append(stage)
        in_c //= 2
        size //= 2

    key, k1, k2, k3 = jax.random.split(key, 4)
    params["final"] = {"w": nrm(k1, (3, in_c, 1, 1)),
                       "gamma": 1.0 + nrm(k2, (3,)),
                       "beta": nrm(k3, (3,))}
    return params


# ----------------------------------------------------------------------------- #
# Forward pass (matches WideResnetDecoder.forward)
# ----------------------------------------------------------------------------- #
def wide_resnet_decoder_forward(x_nchw, params):
    # x_raw carries the *pre-BN* tensor; (in_scale, in_shift, in_act) describe the
    # deferred per-channel normalize+activation that turns it into the real input.
    x_raw = jnp.transpose(x_nchw, (0, 2, 3, 1)).astype(jnp.bfloat16)   # NCHW -> NHWC
    C0 = x_raw.shape[-1]
    in_scale = jnp.ones((C0,), jnp.float32)
    in_shift = jnp.zeros((C0,), jnp.float32)
    in_act = "none"

    for stage in params["stages"]:
        N, H, W, C = x_raw.shape
        M = N * H * W

        # ---- ResidualLayer.wide_block: (l-1) widening convs (conv->BN->lrelu) ----
        h_raw, h_scale, h_shift, h_act = x_raw, in_scale, in_shift, in_act
        for conv in stage["wide_convs"][:-1]:
            patches = _patches_3x3_reflect(h_raw)
            wmat = _conv3x3_weight_matrix(conv["w"])
            y, s1, s2 = conv_matmul(patches, wmat,
                                    jnp.tile(h_scale, 9), jnp.tile(h_shift, 9), h_act)
            Cw = wmat.shape[1]
            h_raw = y.reshape(N, H, W, Cw)
            h_scale, h_shift = _bn_scale_shift(s1, s2, M, conv["gamma"], conv["beta"])
            h_act = "leaky_relu"

        # ---- projection conv (no own norm/act) + residual add + ResidualLayer BN stats
        patches = _patches_3x3_reflect(h_raw)
        wmat = _conv3x3_weight_matrix(stage["wide_convs"][-1]["w"])    # Cout == C
        y, s1, s2 = conv_matmul(patches, wmat,
                                jnp.tile(h_scale, 9), jnp.tile(h_shift, 9), h_act,
                                residual=x_raw.reshape(M, C),
                                res_scale=in_scale, res_shift=in_shift, res_act=in_act)
        r_scale, r_shift = _bn_scale_shift(s1, s2, M,
                                           stage["res_bn"]["gamma"],
                                           stage["res_bn"]["beta"])

        # ---- materialize h = leaky_relu(BN(wide_block(x) + x)) (lane-dense view) ----
        # (must be materialized: the ConvTranspose taps are zero-padded, which does
        #  not commute with a fused affine+activation)
        h = pallas_norm_act(y.reshape(N * H, W * C),
                            jnp.tile(r_scale, W), jnp.tile(r_shift, W),
                            "leaky_relu", jnp.bfloat16).reshape(N, H, W, C)

        # ---- conv_upsample: ConvTranspose2d(3,s=2,p=1,op=1) via 4-phase matmul ----
        Cup = C // 2
        pt = _patches_ct_4tap(h)                               # (M, 4*C)
        wph = _convT_phase_weight(stage["up_w"])               # (4*C, 4*Cup)
        y, s1, s2 = conv_matmul(pt, wph,
                                jnp.ones((4 * C,), jnp.float32),
                                jnp.zeros((4 * C,), jnp.float32), "none")
        u_scale, u_shift = _bn_scale_shift(s1, s2, 4 * M,
                                           stage["up_bn"]["gamma"],
                                           stage["up_bn"]["beta"],
                                           phase_groups=4)
        x_raw = _interleave_phases(y, N, H, W, Cup)            # raw (pre-BN) output
        in_scale, in_shift, in_act = u_scale, u_shift, "leaky_relu"
        # the up-BN + leaky_relu is fused into the next stage's first conv
        # (or the final 1x1 conv) as its A-tile pre-normalization.

    # ---- final conv_downsample: 1x1 Conv -> BN -> tanh ----
    N, H, W, C = x_raw.shape
    M = N * H * W
    wmat = params["final"]["w"][:, :, 0, 0].T                  # (C, 3)
    y, s1, s2 = conv_matmul(x_raw.reshape(M, C), wmat, in_scale, in_shift, in_act)
    f_scale, f_shift = _bn_scale_shift(s1, s2, M,
                                       params["final"]["gamma"],
                                       params["final"]["beta"])
    out = pallas_norm_act(y.reshape(N * H, W * 3),
                          jnp.tile(f_scale, W), jnp.tile(f_shift, W),
                          "tanh", jnp.float32).reshape(N, H, W, 3)
    return jnp.transpose(out, (0, 3, 1, 2))                    # NHWC -> NCHW


# ----------------------------------------------------------------------------- #
if __name__ == "__main__":
    # Small config: l=2, k=2, input_channels=8, image_size=8
    # -> decoder input is (batch, 8, 2, 2); two (residual + upsample) stages,
    #    then 1x1 conv to 3 channels; output (batch, 3, 8, 8).
    l, widen_k, input_channels, image_size = 2, 2, 8, 8
    key = jax.random.PRNGKey(0)
    pkey, xkey = jax.random.split(key)

    params = init_params(pkey, l, widen_k, input_channels, image_size)
    x = jax.random.normal(xkey, (2, input_channels, 2, 2), dtype=jnp.float32)

    out = jax.jit(wide_resnet_decoder_forward)(x, params)
    out = jax.block_until_ready(out)

    assert out.shape == (2, 3, image_size, image_size), out.shape
    assert bool(jnp.all(jnp.isfinite(out)))
    assert bool(jnp.all(jnp.abs(out) <= 1.0 + 1e-6))   # tanh output range
    print("KERNEL_OK")
</pallas_src>

<mosaic_0001>
module attributes {stable_mosaic.version = 11 : i64} {
  func.func @_conv_mm_kernel(%arg0: i32, %arg1: i32, %arg2: i32, %arg3: memref<8x72xbf16, #tpu.memory_space<vmem>>, %arg4: memref<72x16xbf16, #tpu.memory_space<vmem>>, %arg5: memref<1x72xf32, #tpu.memory_space<vmem>>, %arg6: memref<1x72xf32, #tpu.memory_space<vmem>>, %arg7: memref<8x16xbf16, #tpu.memory_space<vmem>>, %arg8: memref<1x1x16xf32, #tpu.memory_space<vmem>>, %arg9: memref<1x1x16xf32, #tpu.memory_space<vmem>>, %arg10: memref<8x16xf32, #tpu.memory_space<vmem>>) attributes {dimension_semantics = [#tpu.dimension_semantics<parallel>, #tpu.dimension_semantics<parallel>, #tpu.dimension_semantics<arbitrary>], iteration_bounds = array<i64: 1, 1, 1>, scalar_prefetch = 0 : i64, scratch_operands = 1 : i64, tpu.core_type = #tpu.core_type<tc>, window_params = [{transform_indices = @transform_0, window_bounds = array<i64: 8, 72>}, {transform_indices = @transform_1, window_bounds = array<i64: 72, 16>}, {transform_indices = @transform_2, window_bounds = array<i64: 1, 72>}, {transform_indices = @transform_3, window_bounds = array<i64: 1, 72>}, {transform_indices = @transform_4, window_bounds = array<i64: 8, 16>}, {transform_indices = @transform_5, window_bounds = array<i64: 1, 1, 16>}, {transform_indices = @transform_6, window_bounds = array<i64: 1, 1, 16>}]} {
    %c0_i32 = arith.constant 0 : i32
    %0 = arith.cmpi eq, %arg2, %c0_i32 : i32
    %1 = arith.extui %0 : i1 to i32
    %c0_i32_0 = arith.constant 0 : i32
    %2 = arith.cmpi ne, %1, %c0_i32_0 : i32
    scf.if %2 {
      %cst_14 = arith.constant 0.000000e+00 : f32
      %20 = vector.broadcast %cst_14 : f32 to vector<8x16xf32>
      %c0_15 = arith.constant 0 : index
      %c0_16 = arith.constant 0 : index
      %21 = vector.load %arg10[%c0_15, %c0_16] : memref<8x16xf32, #tpu.memory_space<vmem>>, vector<8x16xf32>
      tpu.vector_store %arg10[%c0_15, %c0_16], %20 {strides = array<i32>} : memref<8x16xf32, #tpu.memory_space<vmem>>, vector<8x16xf32>,
    } else {
    }
    %c0 = arith.constant 0 : index
    %c0_1 = arith.constant 0 : index
    %3 = vector.load %arg3[%c0, %c0_1] : memref<8x72xbf16, #tpu.memory_space<vmem>>, vector<8x72xbf16>
    %4 = arith.extf %3 : vector<8x72xbf16> to vector<8x72xf32>
    %c0_2 = arith.constant 0 : index
    %c0_3 = arith.constant 0 : index
    %5 = vector.load %arg5[%c0_2, %c0_3] : memref<1x72xf32, #tpu.memory_space<vmem>>, vector<1x72xf32>
    %6 = vector.broadcast %5 : vector<1x72xf32> to vector<8x72xf32>
    %7 = arith.mulf %4, %6 : vector<8x72xf32>
    %c0_4 = arith.constant 0 : index
    %c0_5 = arith.constant 0 : index
    %8 = vector.load %arg6[%c0_4, %c0_5] : memref<1x72xf32, #tpu.memory_space<vmem>>, vector<1x72xf32>
    %9 = vector.broadcast %8 : vector<1x72xf32> to vector<8x72xf32>
    %10 = arith.addf %7, %9 : vector<8x72xf32>
    %c0_6 = arith.constant 0 : index
    %c0_7 = arith.constant 0 : index
    %11 = vector.load %arg10[%c0_6, %c0_7] : memref<8x16xf32, #tpu.memory_space<vmem>>, vector<8x16xf32>
    %12 = arith.truncf %10 : vector<8x72xf32> to vector<8x72xbf16>
    %c0_8 = arith.constant 0 : index
    %c0_9 = arith.constant 0 : index
    %13 = vector.load %arg4[%c0_8, %c0_9] : memref<72x16xbf16, #tpu.memory_space<vmem>>, vector<72x16xbf16>
    %cst = arith.constant dense<0.000000e+00> : vector<8x16xf32>
    %14 = tpu.matmul %12, %13, %cst {dimension_numbers = #tpu.dot_dimension_numbers<[1], [0], [0], [1], [0, 0, 1, 1], [], []>} : vector<8x72xbf16>, vector<72x16xbf16>, vector<8x16xf32> -> vector<8x16xf32>
    %15 = arith.addf %11, %14 : vector<8x16xf32>
    %c0_10 = arith.constant 0 : index
    %c0_11 = arith.constant 0 : index
    %16 = vector.load %arg10[%c0_10, %c0_11] : memref<8x16xf32, #tpu.memory_space<vmem>>, vector<8x16xf32>
    tpu.vector_store %arg10[%c0_10, %c0_11], %15 {strides = array<i32>} : memref<8x16xf32, #tpu.memory_space<vmem>>, vector<8x16xf32>,
    %c0_i32_12 = arith.constant 0 : i32
    %17 = arith.cmpi eq, %arg2, %c0_i32_12 : i32
    %18 = arith.extui %17 : i1 to i32
    %c0_i32_13 = arith.constant 0 : i32
    %19 = arith.cmpi ne, %18, %c0_i32_13 : i32
    scf.if %19 {
      %c0_14 = arith.constant 0 : index
      %c0_15 = arith.constant 0 : index
      %20 = vector.load %arg10[%c0_14, %c0_15] : memref<8x16xf32, #tpu.memory_space<vmem>>, vector<8x16xf32>
      %21 = arith.truncf %20 : vector<8x16xf32> to vector<8x16xbf16>
      %c0_16 = arith.constant 0 : index
      %c0_17 = arith.constant 0 : index
      %22 = vector.load %arg7[%c0_16, %c0_17] : memref<8x16xbf16, #tpu.memory_space<vmem>>, vector<8x16xbf16>
      tpu.vector_store %arg7[%c0_16, %c0_17], %21 {strides = array<i32>} : memref<8x16xbf16, #tpu.memory_space<vmem>>, vector<8x16xbf16>,
      %cst_18 = arith.constant dense<0.000000e+00> : vector<16xf32>
      %23 = vector.multi_reduction <add>, %20, %cst_18 [0] : vector<8x16xf32> to vector<16xf32>
      %24 = vector.shape_cast %23 : vector<16xf32> to vector<1x16xf32>
      %25 = vector.shape_cast %24 : vector<1x16xf32> to vector<1x1x16xf32>
      %c0_19 = arith.constant 0 : index
      %c0_20 = arith.constant 0 : index
      %c0_21 = arith.constant 0 : index
      %26 = vector.load %arg8[%c0_19, %c0_20, %c0_21] : memref<1x1x16xf32, #tpu.memory_space<vmem>>, vector<1x1x16xf32>
      tpu.vector_store %arg8[%c0_19, %c0_20, %c0_21], %25 {strides = array<i32>} : memref<1x1x16xf32, #tpu.memory_space<vmem>>, vector<1x1x16xf32>,
      %27 = arith.mulf %20, %20 : vector<8x16xf32>
      %cst_22 = arith.constant dense<0.000000e+00> : vector<16xf32>
      %28 = vector.multi_reduction <add>, %27, %cst_22 [0] : vector<8x16xf32> to vector<16xf32>
      %29 = vector.shape_cast %28 : vector<16xf32> to vector<1x16xf32>
      %30 = vector.shape_cast %29 : vector<1x16xf32> to vector<1x1x16xf32>
      %c0_23 = arith.constant 0 : index
      %c0_24 = arith.constant 0 : index
      %c0_25 = arith.constant 0 : index
      %31 = vector.load %arg9[%c0_23, %c0_24, %c0_25] : memref<1x1x16xf32, #tpu.memory_space<vmem>>, vector<1x1x16xf32>
      tpu.vector_store %arg9[%c0_23, %c0_24, %c0_25], %30 {strides = array<i32>} : memref<1x1x16xf32, #tpu.memory_space<vmem>>, vector<1x1x16xf32>,
    } else {
    }
    return
  }
  func.func @transform_0(%arg0: i32, %arg1: i32, %arg2: i32) -> (i32, i32) {
    %c0_i32 = arith.constant 0 : i32
    return %arg0, %arg2 : i32, i32
  }
  func.func @transform_1(%arg0: i32, %arg1: i32, %arg2: i32) -> (i32, i32) {
    %c0_i32 = arith.constant 0 : i32
    return %arg2, %arg1 : i32, i32
  }
  func.func @transform_2(%arg0: i32, %arg1: i32, %arg2: i32) -> (i32, i32) {
    %c0_i32 = arith.constant 0 : i32
    %c0_i32_0 = arith.constant 0 : i32
    return %c0_i32, %arg2 : i32, i32
  }
  func.func @transform_3(%arg0: i32, %arg1: i32, %arg2: i32) -> (i32, i32) {
    %c0_i32 = arith.constant 0 : i32
    %c0_i32_0 = arith.constant 0 : i32
    return %c0_i32, %arg2 : i32, i32
  }
  func.func @transform_4(%arg0: i32, %arg1: i32, %arg2: i32) -> (i32, i32) {
    %c0_i32 = arith.constant 0 : i32
    return %arg0, %arg1 : i32, i32
  }
  func.func @transform_5(%arg0: i32, %arg1: i32, %arg2: i32) -> (i32, i32, i32) {
    %c0_i32 = arith.constant 0 : i32
    %c0_i32_0 = arith.constant 0 : i32
    return %arg0, %c0_i32, %arg1 : i32, i32, i32
  }
  func.func @transform_6(%arg0: i32, %arg1: i32, %arg2: i32) -> (i32, i32, i32) {
    %c0_i32 = arith.constant 0 : i32
    %c0_i32_0 = arith.constant 0 : i32
    return %arg0, %c0_i32, %arg1 : i32, i32, i32
  }
}

module attributes {stable_mosaic.version = 11 : i64} {
  func.func @_conv_mm_res_kernel(%arg0: i32, %arg1: i32, %arg2: i32, %arg3: memref<8x144xbf16, #tpu.memory_space<vmem>>, %arg4: memref<144x8xbf16, #tpu.memory_space<vmem>>, %arg5: memref<1x144xf32, #tpu.memory_space<vmem>>, %arg6: memref<1x144xf32, #tpu.memory_space<vmem>>, %arg7: memref<8x8xbf16, #tpu.memory_space<vmem>>, %arg8: memref<1x8xf32, #tpu.memory_space<vmem>>, %arg9: memref<1x8xf32, #tpu.memory_space<vmem>>, %arg10: memref<8x8xbf16, #tpu.memory_space<vmem>>, %arg11: memref<1x1x8xf32, #tpu.memory_space<vmem>>, %arg12: memref<1x1x8xf32, #tpu.memory_space<vmem>>, %arg13: memref<8x8xf32, #tpu.memory_space<vmem>>) attributes {dimension_semantics = [#tpu.dimension_semantics<parallel>, #tpu.dimension_semantics<parallel>, #tpu.dimension_semantics<arbitrary>], iteration_bounds = array<i64: 1, 1, 1>, scalar_prefetch = 0 : i64, scratch_operands = 1 : i64, tpu.core_type = #tpu.core_type<tc>, window_params = [{transform_indices = @transform_0, window_bounds = array<i64: 8, 144>}, {transform_indices = @transform_1, window_bounds = array<i64: 144, 8>}, {transform_indices = @transform_2, window_bounds = array<i64: 1, 144>}, {transform_indices = @transform_3, window_bounds = array<i64: 1, 144>}, {transform_indices = @transform_4, window_bounds = array<i64: 8, 8>}, {transform_indices = @transform_5, window_bounds = array<i64: 1, 8>}, {transform_indices = @transform_6, window_bounds = array<i64: 1, 8>}, {transform_indices = @transform_7, window_bounds = array<i64: 8, 8>}, {transform_indices = @transform_8, window_bounds = array<i64: 1, 1, 8>}, {transform_indices = @transform_9, window_bounds = array<i64: 1, 1, 8>}]} {
    %c0_i32 = arith.constant 0 : i32
    %0 = arith.cmpi eq, %arg2, %c0_i32 : i32
    %1 = arith.extui %0 : i1 to i32
    %c0_i32_0 = arith.constant 0 : i32
    %2 = arith.cmpi ne, %1, %c0_i32_0 : i32
    scf.if %2 {
      %cst_16 = arith.constant 0.000000e+00 : f32
      %25 = vector.broadcast %cst_16 : f32 to vector<8x8xf32>
      %c0_17 = arith.constant 0 : index
      %c0_18 = arith.constant 0 : index
      %26 = vector.load %arg13[%c0_17, %c0_18] : memref<8x8xf32, #tpu.memory_space<vmem>>, vector<8x8xf32>
      tpu.vector_store %arg13[%c0_17, %c0_18], %25 {strides = array<i32>} : memref<8x8xf32, #tpu.memory_space<vmem>>, vector<8x8xf32>,
    } else {
    }
    %c0 = arith.constant 0 : index
    %c0_1 = arith.constant 0 : index
    %3 = vector.load %arg3[%c0, %c0_1] : memref<8x144xbf16, #tpu.memory_space<vmem>>, vector<8x144xbf16>
    %4 = arith.extf %3 : vector<8x144xbf16> to vector<8x144xf32>
    %c0_2 = arith.constant 0 : index
    %c0_3 = arith.constant 0 : index
    %5 = vector.load %arg5[%c0_2, %c0_3] : memref<1x144xf32, #tpu.memory_space<vmem>>, vector<1x144xf32>
    %6 = vector.broadcast %5 : vector<1x144xf32> to vector<8x144xf32>
    %7 = arith.mulf %4, %6 : vector<8x144xf32>
    %c0_4 = arith.constant 0 : index
    %c0_5 = arith.constant 0 : index
    %8 = vector.load %arg6[%c0_4, %c0_5] : memref<1x144xf32, #tpu.memory_space<vmem>>, vector<1x144xf32>
    %9 = vector.broadcast %8 : vector<1x144xf32> to vector<8x144xf32>
    %10 = arith.addf %7, %9 : vector<8x144xf32>
    %cst = arith.constant 0.000000e+00 : f32
    %11 = vector.broadcast %cst : f32 to vector<8x144xf32>
    %12 = arith.cmpf ogt, %10, %11 : vector<8x144xf32>
    %cst_6 = arith.constant 0.00999999977 : f32
    %13 = vector.broadcast %cst_6 : f32 to vector<8x144xf32>
    %14 = arith.mulf %13, %10 : vector<8x144xf32>
    %15 = arith.select %12, %10, %14 : vector<8x144xi1>, vector<8x144xf32>
    %c0_7 = arith.constant 0 : index
    %c0_8 = arith.constant 0 : index
    %16 = vector.load %arg13[%c0_7, %c0_8] : memref<8x8xf32, #tpu.memory_space<vmem>>, vector<8x8xf32>
    %17 = arith.truncf %15 : vector<8x144xf32> to vector<8x144xbf16>
    %c0_9 = arith.constant 0 : index
    %c0_10 = arith.constant 0 : index
    %18 = vector.load %arg4[%c0_9, %c0_10] : memref<144x8xbf16, #tpu.memory_space<vmem>>, vector<144x8xbf16>
    %cst_11 = arith.constant dense<0.000000e+00> : vector<8x8xf32>
    %19 = tpu.matmul %17, %18, %cst_11 {dimension_numbers = #tpu.dot_dimension_numbers<[1], [0], [0], [1], [0, 0, 1, 1], [], []>} : vector<8x144xbf16>, vector<144x8xbf16>, vector<8x8xf32> -> vector<8x8xf32>
    %20 = arith.addf %16, %19 : vector<8x8xf32>
    %c0_12 = arith.constant 0 : index
    %c0_13 = arith.constant 0 : index
    %21 = vector.load %arg13[%c0_12, %c0_13] : memref<8x8xf32, #tpu.memory_space<vmem>>, vector<8x8xf32>
    tpu.vector_store %arg13[%c0_12, %c0_13], %20 {strides = array<i32>} : memref<8x8xf32, #tpu.memory_space<vmem>>, vector<8x8xf32>,
    %c0_i32_14 = arith.constant 0 : i32
    %22 = arith.cmpi eq, %arg2, %c0_i32_14 : i32
    %23 = arith.extui %22 : i1 to i32
    %c0_i32_15 = arith.constant 0 : i32
    %24 = arith.cmpi ne, %23, %c0_i32_15 : i32
    scf.if %24 {
      %c0_16 = arith.constant 0 : index
      %c0_17 = arith.constant 0 : index
      %25 = vector.load %arg7[%c0_16, %c0_17] : memref<8x8xbf16, #tpu.memory_space<vmem>>, vector<8x8xbf16>
      %26 = arith.extf %25 : vector<8x8xbf16> to vector<8x8xf32>
      %c0_18 = arith.constant 0 : index
      %c0_19 = arith.constant 0 : index
      %27 = vector.load %arg8[%c0_18, %c0_19] : memref<1x8xf32, #tpu.memory_space<vmem>>, vector<1x8xf32>
      %28 = vector.broadcast %27 : vector<1x8xf32> to vector<8x8xf32>
      %29 = arith.mulf %26, %28 : vector<8x8xf32>
      %c0_20 = arith.constant 0 : index
      %c0_21 = arith.constant 0 : index
      %30 = vector.load %arg9[%c0_20, %c0_21] : memref<1x8xf32, #tpu.memory_space<vmem>>, vector<1x8xf32>
      %31 = vector.broadcast %30 : vector<1x8xf32> to vector<8x8xf32>
      %32 = arith.addf %29, %31 : vector<8x8xf32>
      %c0_22 = arith.constant 0 : index
      %c0_23 = arith.constant 0 : index
      %33 = vector.load %arg13[%c0_22, %c0_23] : memref<8x8xf32, #tpu.memory_space<vmem>>, vector<8x8xf32>
      %34 = arith.addf %33, %32 : vector<8x8xf32>
      %35 = arith.truncf %34 : vector<8x8xf32> to vector<8x8xbf16>
      %c0_24 = arith.constant 0 : index
      %c0_25 = arith.constant 0 : index
      %36 = vector.load %arg10[%c0_24, %c0_25] : memref<8x8xbf16, #tpu.memory_space<vmem>>, vector<8x8xbf16>
      tpu.vector_store %arg10[%c0_24, %c0_25], %35 {strides = array<i32>} : memref<8x8xbf16, #tpu.memory_space<vmem>>, vector<8x8xbf16>,
      %cst_26 = arith.constant dense<0.000000e+00> : vector<8xf32>
      %37 = vector.multi_reduction <add>, %34, %cst_26 [0] : vector<8x8xf32> to vector<8xf32>
      %38 = vector.shape_cast %37 : vector<8xf32> to vector<1x8xf32>
      %39 = vector.shape_cast %38 : vector<1x8xf32> to vector<1x1x8xf32>
      %c0_27 = arith.constant 0 : index
      %c0_28 = arith.constant 0 : index
      %c0_29 = arith.constant 0 : index
      %40 = vector.load %arg11[%c0_27, %c0_28, %c0_29] : memref<1x1x8xf32, #tpu.memory_space<vmem>>, vector<1x1x8xf32>
      tpu.vector_store %arg11[%c0_27, %c0_28, %c0_29], %39 {strides = array<i32>} : memref<1x1x8xf32, #tpu.memory_space<vmem>>, vector<1x1x8xf32>,
      %41 = arith.mulf %34, %34 : vector<8x8xf32>
      %cst_30 = arith.constant dense<0.000000e+00> : vector<8xf32>
      %42 = vector.multi_reduction <add>, %41, %cst_30 [0] : vector<8x8xf32> to vector<8xf32>
      %43 = vector.shape_cast %42 : vector<8xf32> to vector<1x8xf32>
      %44 = vector.shape_cast %43 : vector<1x8xf32> to vector<1x1x8xf32>
      %c0_31 = arith.constant 0 : index
      %c0_32 = arith.constant 0 : index
      %c0_33 = arith.constant 0 : index
      %45 = vector.load %arg12[%c0_31, %c0_32, %c0_33] : memref<1x1x8xf32, #tpu.memory_space<vmem>>, vector<1x1x8xf32>
      tpu.vector_store %arg12[%c0_31, %c0_32, %c0_33], %44 {strides = array<i32>} : memref<1x1x8xf32, #tpu.memory_space<vmem>>, vector<1x1x8xf32>,
    } else {
    }
    return
  }
  func.func @transform_0(%arg0: i32, %arg1: i32, %arg2: i32) -> (i32, i32) {
    %c0_i32 = arith.constant 0 : i32
    return %arg0, %arg2 : i32, i32
  }
  func.func @transform_1(%arg0: i32, %arg1: i32, %arg2: i32) -> (i32, i32) {
    %c0_i32 = arith.constant 0 : i32
    return %arg2, %arg1 : i32, i32
  }
  func.func @transform_2(%arg0: i32, %arg1: i32, %arg2: i32) -> (i32, i32) {
    %c0_i32 = arith.constant 0 : i32
    %c0_i32_0 = arith.constant 0 : i32
    return %c0_i32, %arg2 : i32, i32
  }
  func.func @transform_3(%arg0: i32, %arg1: i32, %arg2: i32) -> (i32, i32) {
    %c0_i32 = arith.constant 0 : i32
    %c0_i32_0 = arith.constant 0 : i32
    return %c0_i32, %arg2 : i32, i32
  }
  func.func @transform_4(%arg0: i32, %arg1: i32, %arg2: i32) -> (i32, i32) {
    %c0_i32 = arith.constant 0 : i32
    return %arg0, %arg1 : i32, i32
  }
  func.func @transform_5(%arg0: i32, %arg1: i32, %arg2: i32) -> (i32, i32) {
    %c0_i32 = arith.constant 0 : i32
    %c0_i32_0 = arith.constant 0 : i32
    return %c0_i32, %arg1 : i32, i32
  }
  func.func @transform_6(%arg0: i32, %arg1: i32, %arg2: i32) -> (i32, i32) {
    %c0_i32 = arith.constant 0 : i32
    %c0_i32_0 = arith.constant 0 : i32
    return %c0_i32, %arg1 : i32, i32
  }
  func.func @transform_7(%arg0: i32, %arg1: i32, %arg2: i32) -> (i32, i32) {
    %c0_i32 = arith.constant 0 : i32
    return %arg0, %arg1 : i32, i32
  }
  func.func @transform_8(%arg0: i32, %arg1: i32, %arg2: i32) -> (i32, i32, i32) {
    %c0_i32 = arith.constant 0 : i32
    %c0_i32_0 = arith.constant 0 : i32
    return %arg0, %c0_i32, %arg1 : i32, i32, i32
  }
  func.func @transform_9(%arg0: i32, %arg1: i32, %arg2: i32) -> (i32, i32, i32) {
    %c0_i32 = arith.constant 0 : i32
    %c0_i32_0 = arith.constant 0 : i32
    return %arg0, %c0_i32, %arg1 : i32, i32, i32
  }
}

module attributes {stable_mosaic.version = 11 : i64} {
  func.func @_norm_act_kernel(%arg0: i32, %arg1: memref<4x16xbf16, #tpu.memory_space<vmem>>, %arg2: memref<1x16xf32, #tpu.memory_space<vmem>>, %arg3: memref<1x16xf32, #tpu.memory_space<vmem>>, %arg4: memref<4x16xbf16, #tpu.memory_space<vmem>>) attributes {dimension_semantics = [#tpu.dimension_semantics<parallel>], iteration_bounds = array<i64: 1>, scalar_prefetch = 0 : i64, scratch_operands = 0 : i64, tpu.core_type = #tpu.core_type<tc>, window_params = [{transform_indices = @transform_0, window_bounds = array<i64: 4, 16>}, {pipeline_mode = #tpu.pipeline_mode<synchronous>, transform_indices = @transform_1, window_bounds = array<i64: 1, 16>}, {pipeline_mode = #tpu.pipeline_mode<synchronous>, transform_indices = @transform_2, window_bounds = array<i64: 1, 16>}, {transform_indices = @transform_3, window_bounds = array<i64: 4, 16>}]} {
    %c0 = arith.constant 0 : index
    %c0_0 = arith.constant 0 : index
    %0 = vector.load %arg1[%c0, %c0_0] : memref<4x16xbf16, #tpu.memory_space<vmem>>, vector<4x16xbf16>
    %1 = arith.extf %0 : vector<4x16xbf16> to vector<4x16xf32>
    %c0_1 = arith.constant 0 : index
    %c0_2 = arith.constant 0 : index
    %2 = vector.load %arg2[%c0_1, %c0_2] : memref<1x16xf32, #tpu.memory_space<vmem>>, vector<1x16xf32>
    %3 = vector.broadcast %2 : vector<1x16xf32> to vector<4x16xf32>
    %4 = arith.mulf %1, %3 : vector<4x16xf32>
    %c0_3 = arith.constant 0 : index
    %c0_4 = arith.constant 0 : index
    %5 = vector.load %arg3[%c0_3, %c0_4] : memref<1x16xf32, #tpu.memory_space<vmem>>, vector<1x16xf32>
    %6 = vector.broadcast %5 : vector<1x16xf32> to vector<4x16xf32>
    %7 = arith.addf %4, %6 : vector<4x16xf32>
    %cst = arith.constant 0.000000e+00 : f32
    %8 = vector.broadcast %cst : f32 to vector<4x16xf32>
    %9 = arith.cmpf ogt, %7, %8 : vector<4x16xf32>
    %cst_5 = arith.constant 0.00999999977 : f32
    %10 = vector.broadcast %cst_5 : f32 to vector<4x16xf32>
    %11 = arith.mulf %10, %7 : vector<4x16xf32>
    %12 = arith.select %9, %7, %11 : vector<4x16xi1>, vector<4x16xf32>
    %13 = arith.truncf %12 : vector<4x16xf32> to vector<4x16xbf16>
    %c0_6 = arith.constant 0 : index
    %c0_7 = arith.constant 0 : index
    %14 = vector.load %arg4[%c0_6, %c0_7] : memref<4x16xbf16, #tpu.memory_space<vmem>>, vector<4x16xbf16>
    tpu.vector_store %arg4[%c0_6, %c0_7], %13 {strides = array<i32>} : memref<4x16xbf16, #tpu.memory_space<vmem>>, vector<4x16xbf16>,
    return
  }
  func.func @transform_0(%arg0: i32) -> (i32, i32) {
    %c0_i32 = arith.constant 0 : i32
    %c0_i32_0 = arith.constant 0 : i32
    return %arg0, %c0_i32 : i32, i32
  }
  func.func @transform_1(%arg0: i32) -> (i32, i32) {
    %c0_i32 = arith.constant 0 : i32
    %c0_i32_0 = arith.constant 0 : i32
    %c0_i32_1 = arith.constant 0 : i32
    return %c0_i32, %c0_i32_0 : i32, i32
  }
  func.func @transform_2(%arg0: i32) -> (i32, i32) {
    %c0_i32 = arith.constant 0 : i32
    %c0_i32_0 = arith.constant 0 : i32
    %c0_i32_1 = arith.constant 0 : i32
    return %c0_i32, %c0_i32_0 : i32, i32
  }
  func.func @transform_3(%arg0: i32) -> (i32, i32) {
    %c0_i32 = arith.constant 0 : i32
    %c0_i32_0 = arith.constant 0 : i32
    return %arg0, %c0_i32 : i32, i32
  }
}

module attributes {stable_mosaic.version = 11 : i64} {
  func.func @_conv_mm_kernel(%arg0: i32, %arg1: i32, %arg2: i32, %arg3: memref<8x32xbf16, #tpu.memory_space<vmem>>, %arg4: memref<32x16xbf16, #tpu.memory_space<vmem>>, %arg5: memref<1x32xf32, #tpu.memory_space<vmem>>, %arg6: memref<1x32xf32, #tpu.memory_space<vmem>>, %arg7: memref<8x16xbf16, #tpu.memory_space<vmem>>, %arg8: memref<1x1x16xf32, #tpu.memory_space<vmem>>, %arg9: memref<1x1x16xf32, #tpu.memory_space<vmem>>, %arg10: memref<8x16xf32, #tpu.memory_space<vmem>>) attributes {dimension_semantics = [#tpu.dimension_semantics<parallel>, #tpu.dimension_semantics<parallel>, #tpu.dimension_semantics<arbitrary>], iteration_bounds = array<i64: 1, 1, 1>, scalar_prefetch = 0 : i64, scratch_operands = 1 : i64, tpu.core_type = #tpu.core_type<tc>, window_params = [{transform_indices = @transform_0, window_bounds = array<i64: 8, 32>}, {transform_indices = @transform_1, window_bounds = array<i64: 32, 16>}, {transform_indices = @transform_2, window_bounds = array<i64: 1, 32>}, {transform_indices = @transform_3, window_bounds = array<i64: 1, 32>}, {transform_indices = @transform_4, window_bounds = array<i64: 8, 16>}, {transform_indices = @transform_5, window_bounds = array<i64: 1, 1, 16>}, {transform_indices = @transform_6, window_bounds = array<i64: 1, 1, 16>}]} {
    %c0_i32 = arith.constant 0 : i32
    %0 = arith.cmpi eq, %arg2, %c0_i32 : i32
    %1 = arith.extui %0 : i1 to i32
    %c0_i32_0 = arith.constant 0 : i32
    %2 = arith.cmpi ne, %1, %c0_i32_0 : i32
    scf.if %2 {
      %cst_14 = arith.constant 0.000000e+00 : f32
      %20 = vector.broadcast %cst_14 : f32 to vector<8x16xf32>
      %c0_15 = arith.constant 0 : index
      %c0_16 = arith.constant 0 : index
      %21 = vector.load %arg10[%c0_15, %c0_16] : memref<8x16xf32, #tpu.memory_space<vmem>>, vector<8x16xf32>
      tpu.vector_store %arg10[%c0_15, %c0_16], %20 {strides = array<i32>} : memref<8x16xf32, #tpu.memory_space<vmem>>, vector<8x16xf32>,
    } else {
    }
    %c0 = arith.constant 0 : index
    %c0_1 = arith.constant 0 : index
    %3 = vector.load %arg3[%c0, %c0_1] : memref<8x32xbf16, #tpu.memory_space<vmem>>, vector<8x32xbf16>
    %4 = arith.extf %3 : vector<8x32xbf16> to vector<8x32xf32>
    %c0_2 = arith.constant 0 : index
    %c0_3 = arith.constant 0 : index
    %5 = vector.load %arg5[%c0_2, %c0_3] : memref<1x32xf32, #tpu.memory_space<vmem>>, vector<1x32xf32>
    %6 = vector.broadcast %5 : vector<1x32xf32> to vector<8x32xf32>
    %7 = arith.mulf %4, %6 : vector<8x32xf32>
    %c0_4 = arith.constant 0 : index
    %c0_5 = arith.constant 0 : index
    %8 = vector.load %arg6[%c0_4, %c0_5] : memref<1x32xf32, #tpu.memory_space<vmem>>, vector<1x32xf32>
    %9 = vector.broadcast %8 : vector<1x32xf32> to vector<8x32xf32>
    %10 = arith.addf %7, %9 : vector<8x32xf32>
    %c0_6 = arith.constant 0 : index
    %c0_7 = arith.constant 0 : index
    %11 = vector.load %arg10[%c0_6, %c0_7] : memref<8x16xf32, #tpu.memory_space<vmem>>, vector<8x16xf32>
    %12 = arith.truncf %10 : vector<8x32xf32> to vector<8x32xbf16>
    %c0_8 = arith.constant 0 : index
    %c0_9 = arith.constant 0 : index
    %13 = vector.load %arg4[%c0_8, %c0_9] : memref<32x16xbf16, #tpu.memory_space<vmem>>, vector<32x16xbf16>
    %cst = arith.constant dense<0.000000e+00> : vector<8x16xf32>
    %14 = tpu.matmul %12, %13, %cst {dimension_numbers = #tpu.dot_dimension_numbers<[1], [0], [0], [1], [0, 0, 1, 1], [], []>} : vector<8x32xbf16>, vector<32x16xbf16>, vector<8x16xf32> -> vector<8x16xf32>
    %15 = arith.addf %11, %14 : vector<8x16xf32>
    %c0_10 = arith.constant 0 : index
    %c0_11 = arith.constant 0 : index
    %16 = vector.load %arg10[%c0_10, %c0_11] : memref<8x16xf32, #tpu.memory_space<vmem>>, vector<8x16xf32>
    tpu.vector_store %arg10[%c0_10, %c0_11], %15 {strides = array<i32>} : memref<8x16xf32, #tpu.memory_space<vmem>>, vector<8x16xf32>,
    %c0_i32_12 = arith.constant 0 : i32
    %17 = arith.cmpi eq, %arg2, %c0_i32_12 : i32
    %18 = arith.extui %17 : i1 to i32
    %c0_i32_13 = arith.constant 0 : i32
    %19 = arith.cmpi ne, %18, %c0_i32_13 : i32
    scf.if %19 {
      %c0_14 = arith.constant 0 : index
      %c0_15 = arith.constant 0 : index
      %20 = vector.load %arg10[%c0_14, %c0_15] : memref<8x16xf32, #tpu.memory_space<vmem>>, vector<8x16xf32>
      %21 = arith.truncf %20 : vector<8x16xf32> to vector<8x16xbf16>
      %c0_16 = arith.constant 0 : index
      %c0_17 = arith.constant 0 : index
      %22 = vector.load %arg7[%c0_16, %c0_17] : memref<8x16xbf16, #tpu.memory_space<vmem>>, vector<8x16xbf16>
      tpu.vector_store %arg7[%c0_16, %c0_17], %21 {strides = array<i32>} : memref<8x16xbf16, #tpu.memory_space<vmem>>, vector<8x16xbf16>,
      %cst_18 = arith.constant dense<0.000000e+00> : vector<16xf32>
      %23 = vector.multi_reduction <add>, %20, %cst_18 [0] : vector<8x16xf32> to vector<16xf32>
      %24 = vector.shape_cast %23 : vector<16xf32> to vector<1x16xf32>
      %25 = vector.shape_cast %24 : vector<1x16xf32> to vector<1x1x16xf32>
      %c0_19 = arith.constant 0 : index
      %c0_20 = arith.constant 0 : index
      %c0_21 = arith.constant 0 : index
      %26 = vector.load %arg8[%c0_19, %c0_20, %c0_21] : memref<1x1x16xf32, #tpu.memory_space<vmem>>, vector<1x1x16xf32>
      tpu.vector_store %arg8[%c0_19, %c0_20, %c0_21], %25 {strides = array<i32>} : memref<1x1x16xf32, #tpu.memory_space<vmem>>, vector<1x1x16xf32>,
      %27 = arith.mulf %20, %20 : vector<8x16xf32>
      %cst_22 = arith.constant dense<0.000000e+00> : vector<16xf32>
      %28 = vector.multi_reduction <add>, %27, %cst_22 [0] : vector<8x16xf32> to vector<16xf32>
      %29 = vector.shape_cast %28 : vector<16xf32> to vector<1x16xf32>
      %30 = vector.shape_cast %29 : vector<1x16xf32> to vector<1x1x16xf32>
      %c0_23 = arith.constant 0 : index
      %c0_24 = arith.constant 0 : index
      %c0_25 = arith.constant 0 : index
      %31 = vector.load %arg9[%c0_23, %c0_24, %c0_25] : memref<1x1x16xf32, #tpu.memory_space<vmem>>, vector<1x1x16xf32>
      tpu.vector_store %arg9[%c0_23, %c0_24, %c0_25], %30 {strides = array<i32>} : memref<1x1x16xf32, #tpu.memory_space<vmem>>, vector<1x1x16xf32>,
    } else {
    }
    return
  }
  func.func @transform_0(%arg0: i32, %arg1: i32, %arg2: i32) -> (i32, i32) {
    %c0_i32 = arith.constant 0 : i32
    return %arg0, %arg2 : i32, i32
  }
  func.func @transform_1(%arg0: i32, %arg1: i32, %arg2: i32) -> (i32, i32) {
    %c0_i32 = arith.constant 0 : i32
    return %arg2, %arg1 : i32, i32
  }
  func.func @transform_2(%arg0: i32, %arg1: i32, %arg2: i32) -> (i32, i32) {
    %c0_i32 = arith.constant 0 : i32
    %c0_i32_0 = arith.constant 0 : i32
    return %c0_i32, %arg2 : i32, i32
  }
  func.func @transform_3(%arg0: i32, %arg1: i32, %arg2: i32) -> (i32, i32) {
    %c0_i32 = arith.constant 0 : i32
    %c0_i32_0 = arith.constant 0 : i32
    return %c0_i32, %arg2 : i32, i32
  }
  func.func @transform_4(%arg0: i32, %arg1: i32, %arg2: i32) -> (i32, i32) {
    %c0_i32 = arith.constant 0 : i32
    return %arg0, %arg1 : i32, i32
  }
  func.func @transform_5(%arg0: i32, %arg1: i32, %arg2: i32) -> (i32, i32, i32) {
    %c0_i32 = arith.constant 0 : i32
    %c0_i32_0 = arith.constant 0 : i32
    return %arg0, %c0_i32, %arg1 : i32, i32, i32
  }
  func.func @transform_6(%arg0: i32, %arg1: i32, %arg2: i32) -> (i32, i32, i32) {
    %c0_i32 = arith.constant 0 : i32
    %c0_i32_0 = arith.constant 0 : i32
    return %arg0, %c0_i32, %arg1 : i32, i32, i32
  }
}

module attributes {stable_mosaic.version = 11 : i64} {
  func.func @_conv_mm_kernel(%arg0: i32, %arg1: i32, %arg2: i32, %arg3: memref<32x36xbf16, #tpu.memory_space<vmem>>, %arg4: memref<36x8xbf16, #tpu.memory_space<vmem>>, %arg5: memref<1x36xf32, #tpu.memory_space<vmem>>, %arg6: memref<1x36xf32, #tpu.memory_space<vmem>>, %arg7: memref<32x8xbf16, #tpu.memory_space<vmem>>, %arg8: memref<1x1x8xf32, #tpu.memory_space<vmem>>, %arg9: memref<1x1x8xf32, #tpu.memory_space<vmem>>, %arg10: memref<32x8xf32, #tpu.memory_space<vmem>>) attributes {dimension_semantics = [#tpu.dimension_semantics<parallel>, #tpu.dimension_semantics<parallel>, #tpu.dimension_semantics<arbitrary>], iteration_bounds = array<i64: 1, 1, 1>, scalar_prefetch = 0 : i64, scratch_operands = 1 : i64, tpu.core_type = #tpu.core_type<tc>, window_params = [{transform_indices = @transform_0, window_bounds = array<i64: 32, 36>}, {transform_indices = @transform_1, window_bounds = array<i64: 36, 8>}, {transform_indices = @transform_2, window_bounds = array<i64: 1, 36>}, {transform_indices = @transform_3, window_bounds = array<i64: 1, 36>}, {transform_indices = @transform_4, window_bounds = array<i64: 32, 8>}, {transform_indices = @transform_5, window_bounds = array<i64: 1, 1, 8>}, {transform_indices = @transform_6, window_bounds = array<i64: 1, 1, 8>}]} {
    %c0_i32 = arith.constant 0 : i32
    %0 = arith.cmpi eq, %arg2, %c0_i32 : i32
    %1 = arith.extui %0 : i1 to i32
    %c0_i32_0 = arith.constant 0 : i32
    %2 = arith.cmpi ne, %1, %c0_i32_0 : i32
    scf.if %2 {
      %cst_16 = arith.constant 0.000000e+00 : f32
      %25 = vector.broadcast %cst_16 : f32 to vector<32x8xf32>
      %c0_17 = arith.constant 0 : index
      %c0_18 = arith.constant 0 : index
      %26 = vector.load %arg10[%c0_17, %c0_18] : memref<32x8xf32, #tpu.memory_space<vmem>>, vector<32x8xf32>
      tpu.vector_store %arg10[%c0_17, %c0_18], %25 {strides = array<i32>} : memref<32x8xf32, #tpu.memory_space<vmem>>, vector<32x8xf32>,
    } else {
    }
    %c0 = arith.constant 0 : index
    %c0_1 = arith.constant 0 : index
    %3 = vector.load %arg3[%c0, %c0_1] : memref<32x36xbf16, #tpu.memory_space<vmem>>, vector<32x36xbf16>
    %4 = arith.extf %3 : vector<32x36xbf16> to vector<32x36xf32>
    %c0_2 = arith.constant 0 : index
    %c0_3 = arith.constant 0 : index
    %5 = vector.load %arg5[%c0_2, %c0_3] : memref<1x36xf32, #tpu.memory_space<vmem>>, vector<1x36xf32>
    %6 = vector.broadcast %5 : vector<1x36xf32> to vector<32x36xf32>
    %7 = arith.mulf %4, %6 : vector<32x36xf32>
    %c0_4 = arith.constant 0 : index
    %c0_5 = arith.constant 0 : index
    %8 = vector.load %arg6[%c0_4, %c0_5] : memref<1x36xf32, #tpu.memory_space<vmem>>, vector<1x36xf32>
    %9 = vector.broadcast %8 : vector<1x36xf32> to vector<32x36xf32>
    %10 = arith.addf %7, %9 : vector<32x36xf32>
    %cst = arith.constant 0.000000e+00 : f32
    %11 = vector.broadcast %cst : f32 to vector<32x36xf32>
    %12 = arith.cmpf ogt, %10, %11 : vector<32x36xf32>
    %cst_6 = arith.constant 0.00999999977 : f32
    %13 = vector.broadcast %cst_6 : f32 to vector<32x36xf32>
    %14 = arith.mulf %13, %10 : vector<32x36xf32>
    %15 = arith.select %12, %10, %14 : vector<32x36xi1>, vector<32x36xf32>
    %c0_7 = arith.constant 0 : index
    %c0_8 = arith.constant 0 : index
    %16 = vector.load %arg10[%c0_7, %c0_8] : memref<32x8xf32, #tpu.memory_space<vmem>>, vector<32x8xf32>
    %17 = arith.truncf %15 : vector<32x36xf32> to vector<32x36xbf16>
    %c0_9 = arith.constant 0 : index
    %c0_10 = arith.constant 0 : index
    %18 = vector.load %arg4[%c0_9, %c0_10] : memref<36x8xbf16, #tpu.memory_space<vmem>>, vector<36x8xbf16>
    %cst_11 = arith.constant dense<0.000000e+00> : vector<32x8xf32>
    %19 = tpu.matmul %17, %18, %cst_11 {dimension_numbers = #tpu.dot_dimension_numbers<[1], [0], [0], [1], [0, 0, 1, 1], [], []>} : vector<32x36xbf16>, vector<36x8xbf16>, vector<32x8xf32> -> vector<32x8xf32>
    %20 = arith.addf %16, %19 : vector<32x8xf32>
    %c0_12 = arith.constant 0 : index
    %c0_13 = arith.constant 0 : index
    %21 = vector.load %arg10[%c0_12, %c0_13] : memref<32x8xf32, #tpu.memory_space<vmem>>, vector<32x8xf32>
    tpu.vector_store %arg10[%c0_12, %c0_13], %20 {strides = array<i32>} : memref<32x8xf32, #tpu.memory_space<vmem>>, vector<32x8xf32>,
    %c0_i32_14 = arith.constant 0 : i32
    %22 = arith.cmpi eq, %arg2, %c0_i32_14 : i32
    %23 = arith.extui %22 : i1 to i32
    %c0_i32_15 = arith.constant 0 : i32
    %24 = arith.cmpi ne, %23, %c0_i32_15 : i32
    scf.if %24 {
      %c0_16 = arith.constant 0 : index
      %c0_17 = arith.constant 0 : index
      %25 = vector.load %arg10[%c0_16, %c0_17] : memref<32x8xf32, #tpu.memory_space<vmem>>, vector<32x8xf32>
      %26 = arith.truncf %25 : vector<32x8xf32> to vector<32x8xbf16>
      %c0_18 = arith.constant 0 : index
      %c0_19 = arith.constant 0 : index
      %27 = vector.load %arg7[%c0_18, %c0_19] : memref<32x8xbf16, #tpu.memory_space<vmem>>, vector<32x8xbf16>
      tpu.vector_store %arg7[%c0_18, %c0_19], %26 {strides = array<i32>} : memref<32x8xbf16, #tpu.memory_space<vmem>>, vector<32x8xbf16>,
      %cst_20 = arith.constant dense<0.000000e+00> : vector<8xf32>
      %28 = vector.multi_reduction <add>, %25, %cst_20 [0] : vector<32x8xf32> to vector<8xf32>
      %29 = vector.shape_cast %28 : vector<8xf32> to vector<1x8xf32>
      %30 = vector.shape_cast %29 : vector<1x8xf32> to vector<1x1x8xf32>
      %c0_21 = arith.constant 0 : index
      %c0_22 = arith.constant 0 : index
      %c0_23 = arith.constant 0 : index
      %31 = vector.load %arg8[%c0_21, %c0_22, %c0_23] : memref<1x1x8xf32, #tpu.memory_space<vmem>>, vector<1x1x8xf32>
      tpu.vector_store %arg8[%c0_21, %c0_22, %c0_23], %30 {strides = array<i32>} : memref<1x1x8xf32, #tpu.memory_space<vmem>>, vector<1x1x8xf32>,
      %32 = arith.mulf %25, %25 : vector<32x8xf32>
      %cst_24 = arith.constant dense<0.000000e+00> : vector<8xf32>
      %33 = vector.multi_reduction <add>, %32, %cst_24 [0] : vector<32x8xf32> to vector<8xf32>
      %34 = vector.shape_cast %33 : vector<8xf32> to vector<1x8xf32>
      %35 = vector.shape_cast %34 : vector<1x8xf32> to vector<1x1x8xf32>
      %c0_25 = arith.constant 0 : index
      %c0_26 = arith.constant 0 : index
      %c0_27 = arith.constant 0 : index
      %36 = vector.load %arg9[%c0_25, %c0_26, %c0_27] : memref<1x1x8xf32, #tpu.memory_space<vmem>>, vector<1x1x8xf32>
      tpu.vector_store %arg9[%c0_25, %c0_26, %c0_27], %35 {strides = array<i32>} : memref<1x1x8xf32, #tpu.memory_space<vmem>>, vector<1x1x8xf32>,
    } else {
    }
    return
  }
  func.func @transform_0(%arg0: i32, %arg1: i32, %arg2: i32) -> (i32, i32) {
    %c0_i32 = arith.constant 0 : i32
    return %arg0, %arg2 : i32, i32
  }
  func.func @transform_1(%arg0: i32, %arg1: i32, %arg2: i32) -> (i32, i32) {
    %c0_i32 = arith.constant 0 : i32
    return %arg2, %arg1 : i32, i32
  }
  func.func @transform_2(%arg0: i32, %arg1: i32, %arg2: i32) -> (i32, i32) {
    %c0_i32 = arith.constant 0 : i32
    %c0_i32_0 = arith.constant 0 : i32
    return %c0_i32, %arg2 : i32, i32
  }
  func.func @transform_3(%arg0: i32, %arg1: i32, %arg2: i32) -> (i32, i32) {
    %c0_i32 = arith.constant 0 : i32
    %c0_i32_0 = arith.constant 0 : i32
    return %c0_i32, %arg2 : i32, i32
  }
  func.func @transform_4(%arg0: i32, %arg1: i32, %arg2: i32) -> (i32, i32) {
    %c0_i32 = arith.constant 0 : i32
    return %arg0, %arg1 : i32, i32
  }
  func.func @transform_5(%arg0: i32, %arg1: i32, %arg2: i32) -> (i32, i32, i32) {
    %c0_i32 = arith.constant 0 : i32
    %c0_i32_0 = arith.constant 0 : i32
    return %arg0, %c0_i32, %arg1 : i32, i32, i32
  }
  func.func @transform_6(%arg0: i32, %arg1: i32, %arg2: i32) -> (i32, i32, i32) {
    %c0_i32 = arith.constant 0 : i32
    %c0_i32_0 = arith.constant 0 : i32
    return %arg0, %c0_i32, %arg1 : i32, i32, i32
  }
}

module attributes {stable_mosaic.version = 11 : i64} {
  func.func @_norm_act_kernel(%arg0: i32, %arg1: memref<8x16xbf16, #tpu.memory_space<vmem>>, %arg2: memref<1x16xf32, #tpu.memory_space<vmem>>, %arg3: memref<1x16xf32, #tpu.memory_space<vmem>>, %arg4: memref<8x16xbf16, #tpu.memory_space<vmem>>) attributes {dimension_semantics = [#tpu.dimension_semantics<parallel>], iteration_bounds = array<i64: 1>, scalar_prefetch = 0 : i64, scratch_operands = 0 : i64, tpu.core_type = #tpu.core_type<tc>, window_params = [{transform_indices = @transform_0, window_bounds = array<i64: 8, 16>}, {pipeline_mode = #tpu.pipeline_mode<synchronous>, transform_indices = @transform_1, window_bounds = array<i64: 1, 16>}, {pipeline_mode = #tpu.pipeline_mode<synchronous>, transform_indices = @transform_2, window_bounds = array<i64: 1, 16>}, {transform_indices = @transform_3, window_bounds = array<i64: 8, 16>}]} {
    %c0 = arith.constant 0 : index
    %c0_0 = arith.constant 0 : index
    %0 = vector.load %arg1[%c0, %c0_0] : memref<8x16xbf16, #tpu.memory_space<vmem>>, vector<8x16xbf16>
    %1 = arith.extf %0 : vector<8x16xbf16> to vector<8x16xf32>
    %c0_1 = arith.constant 0 : index
    %c0_2 = arith.constant 0 : index
    %2 = vector.load %arg2[%c0_1, %c0_2] : memref<1x16xf32, #tpu.memory_space<vmem>>, vector<1x16xf32>
    %3 = vector.broadcast %2 : vector<1x16xf32> to vector<8x16xf32>
    %4 = arith.mulf %1, %3 : vector<8x16xf32>
    %c0_3 = arith.constant 0 : index
    %c0_4 = arith.constant 0 : index
    %5 = vector.load %arg3[%c0_3, %c0_4] : memref<1x16xf32, #tpu.memory_space<vmem>>, vector<1x16xf32>
    %6 = vector.broadcast %5 : vector<1x16xf32> to vector<8x16xf32>
    %7 = arith.addf %4, %6 : vector<8x16xf32>
    %cst = arith.constant 0.000000e+00 : f32
    %8 = vector.broadcast %cst : f32 to vector<8x16xf32>
    %9 = arith.cmpf ogt, %7, %8 : vector<8x16xf32>
    %cst_5 = arith.constant 0.00999999977 : f32
    %10 = vector.broadcast %cst_5 : f32 to vector<8x16xf32>
    %11 = arith.mulf %10, %7 : vector<8x16xf32>
    %12 = arith.select %9, %7, %11 : vector<8x16xi1>, vector<8x16xf32>
    %13 = arith.truncf %12 : vector<8x16xf32> to vector<8x16xbf16>
    %c0_6 = arith.constant 0 : index
    %c0_7 = arith.constant 0 : index
    %14 = vector.load %arg4[%c0_6, %c0_7] : memref<8x16xbf16, #tpu.memory_space<vmem>>, vector<8x16xbf16>
    tpu.vector_store %arg4[%c0_6, %c0_7], %13 {strides = array<i32>} : memref<8x16xbf16, #tpu.memory_space<vmem>>, vector<8x16xbf16>,
    return
  }
  func.func @transform_0(%arg0: i32) -> (i32, i32) {
    %c0_i32 = arith.constant 0 : i32
    %c0_i32_0 = arith.constant 0 : i32
    return %arg0, %c0_i32 : i32, i32
  }
  func.func @transform_1(%arg0: i32) -> (i32, i32) {
    %c0_i32 = arith.constant 0 : i32
    %c0_i32_0 = arith.constant 0 : i32
    %c0_i32_1 = arith.constant 0 : i32
    return %c0_i32, %c0_i32_0 : i32, i32
  }
  func.func @transform_2(%arg0: i32) -> (i32, i32) {
    %c0_i32 = arith.constant 0 : i32
    %c0_i32_0 = arith.constant 0 : i32
    %c0_i32_1 = arith.constant 0 : i32
    return %c0_i32, %c0_i32_0 : i32, i32
  }
  func.func @transform_3(%arg0: i32) -> (i32, i32) {
    %c0_i32 = arith.constant 0 : i32
    %c0_i32_0 = arith.constant 0 : i32
    return %arg0, %c0_i32 : i32, i32
  }
}

module attributes {stable_mosaic.version = 11 : i64} {
  func.func @_conv_mm_res_kernel(%arg0: i32, %arg1: i32, %arg2: i32, %arg3: memref<32x72xbf16, #tpu.memory_space<vmem>>, %arg4: memref<72x4xbf16, #tpu.memory_space<vmem>>, %arg5: memref<1x72xf32, #tpu.memory_space<vmem>>, %arg6: memref<1x72xf32, #tpu.memory_space<vmem>>, %arg7: memref<32x4xbf16, #tpu.memory_space<vmem>>, %arg8: memref<1x4xf32, #tpu.memory_space<vmem>>, %arg9: memref<1x4xf32, #tpu.memory_space<vmem>>, %arg10: memref<32x4xbf16, #tpu.memory_space<vmem>>, %arg11: memref<1x1x4xf32, #tpu.memory_space<vmem>>, %arg12: memref<1x1x4xf32, #tpu.memory_space<vmem>>, %arg13: memref<32x4xf32, #tpu.memory_space<vmem>>) attributes {dimension_semantics = [#tpu.dimension_semantics<parallel>, #tpu.dimension_semantics<parallel>, #tpu.dimension_semantics<arbitrary>], iteration_bounds = array<i64: 1, 1, 1>, scalar_prefetch = 0 : i64, scratch_operands = 1 : i64, tpu.core_type = #tpu.core_type<tc>, window_params = [{transform_indices = @transform_0, window_bounds = array<i64: 32, 72>}, {transform_indices = @transform_1, window_bounds = array<i64: 72, 4>}, {transform_indices = @transform_2, window_bounds = array<i64: 1, 72>}, {transform_indices = @transform_3, window_bounds = array<i64: 1, 72>}, {transform_indices = @transform_4, window_bounds = array<i64: 32, 4>}, {transform_indices = @transform_5, window_bounds = array<i64: 1, 4>}, {transform_indices = @transform_6, window_bounds = array<i64: 1, 4>}, {transform_indices = @transform_7, window_bounds = array<i64: 32, 4>}, {transform_indices = @transform_8, window_bounds = array<i64: 1, 1, 4>}, {transform_indices = @transform_9, window_bounds = array<i64: 1, 1, 4>}]} {
    %c0_i32 = arith.constant 0 : i32
    %0 = arith.cmpi eq, %arg2, %c0_i32 : i32
    %1 = arith.extui %0 : i1 to i32
    %c0_i32_0 = arith.constant 0 : i32
    %2 = arith.cmpi ne, %1, %c0_i32_0 : i32
    scf.if %2 {
      %cst_16 = arith.constant 0.000000e+00 : f32
      %25 = vector.broadcast %cst_16 : f32 to vector<32x4xf32>
      %c0_17 = arith.constant 0 : index
      %c0_18 = arith.constant 0 : index
      %26 = vector.load %arg13[%c0_17, %c0_18] : memref<32x4xf32, #tpu.memory_space<vmem>>, vector<32x4xf32>
      tpu.vector_store %arg13[%c0_17, %c0_18], %25 {strides = array<i32>} : memref<32x4xf32, #tpu.memory_space<vmem>>, vector<32x4xf32>,
    } else {
    }
    %c0 = arith.constant 0 : index
    %c0_1 = arith.constant 0 : index
    %3 = vector.load %arg3[%c0, %c0_1] : memref<32x72xbf16, #tpu.memory_space<vmem>>, vector<32x72xbf16>
    %4 = arith.extf %3 : vector<32x72xbf16> to vector<32x72xf32>
    %c0_2 = arith.constant 0 : index
    %c0_3 = arith.constant 0 : index
    %5 = vector.load %arg5[%c0_2, %c0_3] : memref<1x72xf32, #tpu.memory_space<vmem>>, vector<1x72xf32>
    %6 = vector.broadcast %5 : vector<1x72xf32> to vector<32x72xf32>
    %7 = arith.mulf %4, %6 : vector<32x72xf32>
    %c0_4 = arith.constant 0 : index
    %c0_5 = arith.constant 0 : index
    %8 = vector.load %arg6[%c0_4, %c0_5] : memref<1x72xf32, #tpu.memory_space<vmem>>, vector<1x72xf32>
    %9 = vector.broadcast %8 : vector<1x72xf32> to vector<32x72xf32>
    %10 = arith.addf %7, %9 : vector<32x72xf32>
    %cst = arith.constant 0.000000e+00 : f32
    %11 = vector.broadcast %cst : f32 to vector<32x72xf32>
    %12 = arith.cmpf ogt, %10, %11 : vector<32x72xf32>
    %cst_6 = arith.constant 0.00999999977 : f32
    %13 = vector.broadcast %cst_6 : f32 to vector<32x72xf32>
    %14 = arith.mulf %13, %10 : vector<32x72xf32>
    %15 = arith.select %12, %10, %14 : vector<32x72xi1>, vector<32x72xf32>
    %c0_7 = arith.constant 0 : index
    %c0_8 = arith.constant 0 : index
    %16 = vector.load %arg13[%c0_7, %c0_8] : memref<32x4xf32, #tpu.memory_space<vmem>>, vector<32x4xf32>
    %17 = arith.truncf %15 : vector<32x72xf32> to vector<32x72xbf16>
    %c0_9 = arith.constant 0 : index
    %c0_10 = arith.constant 0 : index
    %18 = vector.load %arg4[%c0_9, %c0_10] : memref<72x4xbf16, #tpu.memory_space<vmem>>, vector<72x4xbf16>
    %cst_11 = arith.constant dense<0.000000e+00> : vector<32x4xf32>
    %19 = tpu.matmul %17, %18, %cst_11 {dimension_numbers = #tpu.dot_dimension_numbers<[1], [0], [0], [1], [0, 0, 1, 1], [], []>} : vector<32x72xbf16>, vector<72x4xbf16>, vector<32x4xf32> -> vector<32x4xf32>
    %20 = arith.addf %16, %19 : vector<32x4xf32>
    %c0_12 = arith.constant 0 : index
    %c0_13 = arith.constant 0 : index
    %21 = vector.load %arg13[%c0_12, %c0_13] : memref<32x4xf32, #tpu.memory_space<vmem>>, vector<32x4xf32>
    tpu.vector_store %arg13[%c0_12, %c0_13], %20 {strides = array<i32>} : memref<32x4xf32, #tpu.memory_space<vmem>>, vector<32x4xf32>,
    %c0_i32_14 = arith.constant 0 : i32
    %22 = arith.cmpi eq, %arg2, %c0_i32_14 : i32
    %23 = arith.extui %22 : i1 to i32
    %c0_i32_15 = arith.constant 0 : i32
    %24 = arith.cmpi ne, %23, %c0_i32_15 : i32
    scf.if %24 {
      %c0_16 = arith.constant 0 : index
      %c0_17 = arith.constant 0 : index
      %25 = vector.load %arg7[%c0_16, %c0_17] : memref<32x4xbf16, #tpu.memory_space<vmem>>, vector<32x4xbf16>
      %26 = arith.extf %25 : vector<32x4xbf16> to vector<32x4xf32>
      %c0_18 = arith.constant 0 : index
      %c0_19 = arith.constant 0 : index
      %27 = vector.load %arg8[%c0_18, %c0_19] : memref<1x4xf32, #tpu.memory_space<vmem>>, vector<1x4xf32>
      %28 = vector.broadcast %27 : vector<1x4xf32> to vector<32x4xf32>
      %29 = arith.mulf %26, %28 : vector<32x4xf32>
      %c0_20 = arith.constant 0 : index
      %c0_21 = arith.constant 0 : index
      %30 = vector.load %arg9[%c0_20, %c0_21] : memref<1x4xf32, #tpu.memory_space<vmem>>, vector<1x4xf32>
      %31 = vector.broadcast %30 : vector<1x4xf32> to vector<32x4xf32>
      %32 = arith.addf %29, %31 : vector<32x4xf32>
      %cst_22 = arith.constant 0.000000e+00 : f32
      %33 = vector.broadcast %cst_22 : f32 to vector<32x4xf32>
      %34 = arith.cmpf ogt, %32, %33 : vector<32x4xf32>
      %cst_23 = arith.constant 0.00999999977 : f32
      %35 = vector.broadcast %cst_23 : f32 to vector<32x4xf32>
      %36 = arith.mulf %35, %32 : vector<32x4xf32>
      %37 = arith.select %34, %32, %36 : vector<32x4xi1>, vector<32x4xf32>
      %c0_24 = arith.constant 0 : index
      %c0_25 = arith.constant 0 : index
      %38 = vector.load %arg13[%c0_24, %c0_25] : memref<32x4xf32, #tpu.memory_space<vmem>>, vector<32x4xf32>
      %39 = arith.addf %38, %37 : vector<32x4xf32>
      %40 = arith.truncf %39 : vector<32x4xf32> to vector<32x4xbf16>
      %c0_26 = arith.constant 0 : index
      %c0_27 = arith.constant 0 : index
      %41 = vector.load %arg10[%c0_26, %c0_27] : memref<32x4xbf16, #tpu.memory_space<vmem>>, vector<32x4xbf16>
      tpu.vector_store %arg10[%c0_26, %c0_27], %40 {strides = array<i32>} : memref<32x4xbf16, #tpu.memory_space<vmem>>, vector<32x4xbf16>,
      %cst_28 = arith.constant dense<0.000000e+00> : vector<4xf32>
      %42 = vector.multi_reduction <add>, %39, %cst_28 [0] : vector<32x4xf32> to vector<4xf32>
      %43 = vector.shape_cast %42 : vector<4xf32> to vector<1x4xf32>
      %44 = vector.shape_cast %43 : vector<1x4xf32> to vector<1x1x4xf32>
      %c0_29 = arith.constant 0 : index
      %c0_30 = arith.constant 0 : index
      %c0_31 = arith.constant 0 : index
      %45 = vector.load %arg11[%c0_29, %c0_30, %c0_31] : memref<1x1x4xf32, #tpu.memory_space<vmem>>, vector<1x1x4xf32>
      tpu.vector_store %arg11[%c0_29, %c0_30, %c0_31], %44 {strides = array<i32>} : memref<1x1x4xf32, #tpu.memory_space<vmem>>, vector<1x1x4xf32>,
      %46 = arith.mulf %39, %39 : vector<32x4xf32>
      %cst_32 = arith.constant dense<0.000000e+00> : vector<4xf32>
      %47 = vector.multi_reduction <add>, %46, %cst_32 [0] : vector<32x4xf32> to vector<4xf32>
      %48 = vector.shape_cast %47 : vector<4xf32> to vector<1x4xf32>
      %49 = vector.shape_cast %48 : vector<1x4xf32> to vector<1x1x4xf32>
      %c0_33 = arith.constant 0 : index
      %c0_34 = arith.constant 0 : index
      %c0_35 = arith.constant 0 : index
      %50 = vector.load %arg12[%c0_33, %c0_34, %c0_35] : memref<1x1x4xf32, #tpu.memory_space<vmem>>, vector<1x1x4xf32>
      tpu.vector_store %arg12[%c0_33, %c0_34, %c0_35], %49 {strides = array<i32>} : memref<1x1x4xf32, #tpu.memory_space<vmem>>, vector<1x1x4xf32>,
    } else {
    }
    return
  }
  func.func @transform_0(%arg0: i32, %arg1: i32, %arg2: i32) -> (i32, i32) {
    %c0_i32 = arith.constant 0 : i32
    return %arg0, %arg2 : i32, i32
  }
  func.func @transform_1(%arg0: i32, %arg1: i32, %arg2: i32) -> (i32, i32) {
    %c0_i32 = arith.constant 0 : i32
    return %arg2, %arg1 : i32, i32
  }
  func.func @transform_2(%arg0: i32, %arg1: i32, %arg2: i32) -> (i32, i32) {
    %c0_i32 = arith.constant 0 : i32
    %c0_i32_0 = arith.constant 0 : i32
    return %c0_i32, %arg2 : i32, i32
  }
  func.func @transform_3(%arg0: i32, %arg1: i32, %arg2: i32) -> (i32, i32) {
    %c0_i32 = arith.constant 0 : i32
    %c0_i32_0 = arith.constant 0 : i32
    return %c0_i32, %arg2 : i32, i32
  }
  func.func @transform_4(%arg0: i32, %arg1: i32, %arg2: i32) -> (i32, i32) {
    %c0_i32 = arith.constant 0 : i32
    return %arg0, %arg1 : i32, i32
  }
  func.func @transform_5(%arg0: i32, %arg1: i32, %arg2: i32) -> (i32, i32) {
    %c0_i32 = arith.constant 0 : i32
    %c0_i32_0 = arith.constant 0 : i32
    return %c0_i32, %arg1 : i32, i32
  }
  func.func @transform_6(%arg0: i32, %arg1: i32, %arg2: i32) -> (i32, i32) {
    %c0_i32 = arith.constant 0 : i32
    %c0_i32_0 = arith.constant 0 : i32
    return %c0_i32, %arg1 : i32, i32
  }
  func.func @transform_7(%arg0: i32, %arg1: i32, %arg2: i32) -> (i32, i32) {
    %c0_i32 = arith.constant 0 : i32
    return %arg0, %arg1 : i32, i32
  }
  func.func @transform_8(%arg0: i32, %arg1: i32, %arg2: i32) -> (i32, i32, i32) {
    %c0_i32 = arith.constant 0 : i32
    %c0_i32_0 = arith.constant 0 : i32
    return %arg0, %c0_i32, %arg1 : i32, i32, i32
  }
  func.func @transform_9(%arg0: i32, %arg1: i32, %arg2: i32) -> (i32, i32, i32) {
    %c0_i32 = arith.constant 0 : i32
    %c0_i32_0 = arith.constant 0 : i32
    return %arg0, %c0_i32, %arg1 : i32, i32, i32
  }
}

module attributes {stable_mosaic.version = 11 : i64} {
  func.func @_conv_mm_kernel(%arg0: i32, %arg1: i32, %arg2: i32, %arg3: memref<32x16xbf16, #tpu.memory_space<vmem>>, %arg4: memref<16x8xbf16, #tpu.memory_space<vmem>>, %arg5: memref<1x16xf32, #tpu.memory_space<vmem>>, %arg6: memref<1x16xf32, #tpu.memory_space<vmem>>, %arg7: memref<32x8xbf16, #tpu.memory_space<vmem>>, %arg8: memref<1x1x8xf32, #tpu.memory_space<vmem>>, %arg9: memref<1x1x8xf32, #tpu.memory_space<vmem>>, %arg10: memref<32x8xf32, #tpu.memory_space<vmem>>) attributes {dimension_semantics = [#tpu.dimension_semantics<parallel>, #tpu.dimension_semantics<parallel>, #tpu.dimension_semantics<arbitrary>], iteration_bounds = array<i64: 1, 1, 1>, scalar_prefetch = 0 : i64, scratch_operands = 1 : i64, tpu.core_type = #tpu.core_type<tc>, window_params = [{transform_indices = @transform_0, window_bounds = array<i64: 32, 16>}, {transform_indices = @transform_1, window_bounds = array<i64: 16, 8>}, {transform_indices = @transform_2, window_bounds = array<i64: 1, 16>}, {transform_indices = @transform_3, window_bounds = array<i64: 1, 16>}, {transform_indices = @transform_4, window_bounds = array<i64: 32, 8>}, {transform_indices = @transform_5, window_bounds = array<i64: 1, 1, 8>}, {transform_indices = @transform_6, window_bounds = array<i64: 1, 1, 8>}]} {
    %c0_i32 = arith.constant 0 : i32
    %0 = arith.cmpi eq, %arg2, %c0_i32 : i32
    %1 = arith.extui %0 : i1 to i32
    %c0_i32_0 = arith.constant 0 : i32
    %2 = arith.cmpi ne, %1, %c0_i32_0 : i32
    scf.if %2 {
      %cst_14 = arith.constant 0.000000e+00 : f32
      %20 = vector.broadcast %cst_14 : f32 to vector<32x8xf32>
      %c0_15 = arith.constant 0 : index
      %c0_16 = arith.constant 0 : index
      %21 = vector.load %arg10[%c0_15, %c0_16] : memref<32x8xf32, #tpu.memory_space<vmem>>, vector<32x8xf32>
      tpu.vector_store %arg10[%c0_15, %c0_16], %20 {strides = array<i32>} : memref<32x8xf32, #tpu.memory_space<vmem>>, vector<32x8xf32>,
    } else {
    }
    %c0 = arith.constant 0 : index
    %c0_1 = arith.constant 0 : index
    %3 = vector.load %arg3[%c0, %c0_1] : memref<32x16xbf16, #tpu.memory_space<vmem>>, vector<32x16xbf16>
    %4 = arith.extf %3 : vector<32x16xbf16> to vector<32x16xf32>
    %c0_2 = arith.constant 0 : index
    %c0_3 = arith.constant 0 : index
    %5 = vector.load %arg5[%c0_2, %c0_3] : memref<1x16xf32, #tpu.memory_space<vmem>>, vector<1x16xf32>
    %6 = vector.broadcast %5 : vector<1x16xf32> to vector<32x16xf32>
    %7 = arith.mulf %4, %6 : vector<32x16xf32>
    %c0_4 = arith.constant 0 : index
    %c0_5 = arith.constant 0 : index
    %8 = vector.load %arg6[%c0_4, %c0_5] : memref<1x16xf32, #tpu.memory_space<vmem>>, vector<1x16xf32>
    %9 = vector.broadcast %8 : vector<1x16xf32> to vector<32x16xf32>
    %10 = arith.addf %7, %9 : vector<32x16xf32>
    %c0_6 = arith.constant 0 : index
    %c0_7 = arith.constant 0 : index
    %11 = vector.load %arg10[%c0_6, %c0_7] : memref<32x8xf32, #tpu.memory_space<vmem>>, vector<32x8xf32>
    %12 = arith.truncf %10 : vector<32x16xf32> to vector<32x16xbf16>
    %c0_8 = arith.constant 0 : index
    %c0_9 = arith.constant 0 : index
    %13 = vector.load %arg4[%c0_8, %c0_9] : memref<16x8xbf16, #tpu.memory_space<vmem>>, vector<16x8xbf16>
    %cst = arith.constant dense<0.000000e+00> : vector<32x8xf32>
    %14 = tpu.matmul %12, %13, %cst {dimension_numbers = #tpu.dot_dimension_numbers<[1], [0], [0], [1], [0, 0, 1, 1], [], []>} : vector<32x16xbf16>, vector<16x8xbf16>, vector<32x8xf32> -> vector<32x8xf32>
    %15 = arith.addf %11, %14 : vector<32x8xf32>
    %c0_10 = arith.constant 0 : index
    %c0_11 = arith.constant 0 : index
    %16 = vector.load %arg10[%c0_10, %c0_11] : memref<32x8xf32, #tpu.memory_space<vmem>>, vector<32x8xf32>
    tpu.vector_store %arg10[%c0_10, %c0_11], %15 {strides = array<i32>} : memref<32x8xf32, #tpu.memory_space<vmem>>, vector<32x8xf32>,
    %c0_i32_12 = arith.constant 0 : i32
    %17 = arith.cmpi eq, %arg2, %c0_i32_12 : i32
    %18 = arith.extui %17 : i1 to i32
    %c0_i32_13 = arith.constant 0 : i32
    %19 = arith.cmpi ne, %18, %c0_i32_13 : i32
    scf.if %19 {
      %c0_14 = arith.constant 0 : index
      %c0_15 = arith.constant 0 : index
      %20 = vector.load %arg10[%c0_14, %c0_15] : memref<32x8xf32, #tpu.memory_space<vmem>>, vector<32x8xf32>
      %21 = arith.truncf %20 : vector<32x8xf32> to vector<32x8xbf16>
      %c0_16 = arith.constant 0 : index
      %c0_17 = arith.constant 0 : index
      %22 = vector.load %arg7[%c0_16, %c0_17] : memref<32x8xbf16, #tpu.memory_space<vmem>>, vector<32x8xbf16>
      tpu.vector_store %arg7[%c0_16, %c0_17], %21 {strides = array<i32>} : memref<32x8xbf16, #tpu.memory_space<vmem>>, vector<32x8xbf16>,
      %cst_18 = arith.constant dense<0.000000e+00> : vector<8xf32>
      %23 = vector.multi_reduction <add>, %20, %cst_18 [0] : vector<32x8xf32> to vector<8xf32>
      %24 = vector.shape_cast %23 : vector<8xf32> to vector<1x8xf32>
      %25 = vector.shape_cast %24 : vector<1x8xf32> to vector<1x1x8xf32>
      %c0_19 = arith.constant 0 : index
      %c0_20 = arith.constant 0 : index
      %c0_21 = arith.constant 0 : index
      %26 = vector.load %arg8[%c0_19, %c0_20, %c0_21] : memref<1x1x8xf32, #tpu.memory_space<vmem>>, vector<1x1x8xf32>
      tpu.vector_store %arg8[%c0_19, %c0_20, %c0_21], %25 {strides = array<i32>} : memref<1x1x8xf32, #tpu.memory_space<vmem>>, vector<1x1x8xf32>,
      %27 = arith.mulf %20, %20 : vector<32x8xf32>
      %cst_22 = arith.constant dense<0.000000e+00> : vector<8xf32>
      %28 = vector.multi_reduction <add>, %27, %cst_22 [0] : vector<32x8xf32> to vector<8xf32>
      %29 = vector.shape_cast %28 : vector<8xf32> to vector<1x8xf32>
      %30 = vector.shape_cast %29 : vector<1x8xf32> to vector<1x1x8xf32>
      %c0_23 = arith.constant 0 : index
      %c0_24 = arith.constant 0 : index
      %c0_25 = arith.constant 0 : index
      %31 = vector.load %arg9[%c0_23, %c0_24, %c0_25] : memref<1x1x8xf32, #tpu.memory_space<vmem>>, vector<1x1x8xf32>
      tpu.vector_store %arg9[%c0_23, %c0_24, %c0_25], %30 {strides = array<i32>} : memref<1x1x8xf32, #tpu.memory_space<vmem>>, vector<1x1x8xf32>,
    } else {
    }
    return
  }
  func.func @transform_0(%arg0: i32, %arg1: i32, %arg2: i32) -> (i32, i32) {
    %c0_i32 = arith.constant 0 : i32
    return %arg0, %arg2 : i32, i32
  }
  func.func @transform_1(%arg0: i32, %arg1: i32, %arg2: i32) -> (i32, i32) {
    %c0_i32 = arith.constant 0 : i32
    return %arg2, %arg1 : i32, i32
  }
  func.func @transform_2(%arg0: i32, %arg1: i32, %arg2: i32) -> (i32, i32) {
    %c0_i32 = arith.constant 0 : i32
    %c0_i32_0 = arith.constant 0 : i32
    return %c0_i32, %arg2 : i32, i32
  }
  func.func @transform_3(%arg0: i32, %arg1: i32, %arg2: i32) -> (i32, i32) {
    %c0_i32 = arith.constant 0 : i32
    %c0_i32_0 = arith.constant 0 : i32
    return %c0_i32, %arg2 : i32, i32
  }
  func.func @transform_4(%arg0: i32, %arg1: i32, %arg2: i32) -> (i32, i32) {
    %c0_i32 = arith.constant 0 : i32
    return %arg0, %arg1 : i32, i32
  }
  func.func @transform_5(%arg0: i32, %arg1: i32, %arg2: i32) -> (i32, i32, i32) {
    %c0_i32 = arith.constant 0 : i32
    %c0_i32_0 = arith.constant 0 : i32
    return %arg0, %c0_i32, %arg1 : i32, i32, i32
  }
  func.func @transform_6(%arg0: i32, %arg1: i32, %arg2: i32) -> (i32, i32, i32) {
    %c0_i32 = arith.constant 0 : i32
    %c0_i32_0 = arith.constant 0 : i32
    return %arg0, %c0_i32, %arg1 : i32, i32, i32
  }
}

module attributes {stable_mosaic.version = 11 : i64} {
  func.func @_conv_mm_kernel(%arg0: i32, %arg1: i32, %arg2: i32, %arg3: memref<128x2xbf16, #tpu.memory_space<vmem>>, %arg4: memref<2x3xbf16, #tpu.memory_space<vmem>>, %arg5: memref<1x2xf32, #tpu.memory_space<vmem>>, %arg6: memref<1x2xf32, #tpu.memory_space<vmem>>, %arg7: memref<128x3xbf16, #tpu.memory_space<vmem>>, %arg8: memref<1x1x3xf32, #tpu.memory_space<vmem>>, %arg9: memref<1x1x3xf32, #tpu.memory_space<vmem>>, %arg10: memref<128x3xf32, #tpu.memory_space<vmem>>) attributes {dimension_semantics = [#tpu.dimension_semantics<parallel>, #tpu.dimension_semantics<parallel>, #tpu.dimension_semantics<arbitrary>], iteration_bounds = array<i64: 1, 1, 1>, scalar_prefetch = 0 : i64, scratch_operands = 1 : i64, tpu.core_type = #tpu.core_type<tc>, window_params = [{transform_indices = @transform_0, window_bounds = array<i64: 128, 2>}, {transform_indices = @transform_1, window_bounds = array<i64: 2, 3>}, {transform_indices = @transform_2, window_bounds = array<i64: 1, 2>}, {transform_indices = @transform_3, window_bounds = array<i64: 1, 2>}, {transform_indices = @transform_4, window_bounds = array<i64: 128, 3>}, {transform_indices = @transform_5, window_bounds = array<i64: 1, 1, 3>}, {transform_indices = @transform_6, window_bounds = array<i64: 1, 1, 3>}]} {
    %c0_i32 = arith.constant 0 : i32
    %0 = arith.cmpi eq, %arg2, %c0_i32 : i32
    %1 = arith.extui %0 : i1 to i32
    %c0_i32_0 = arith.constant 0 : i32
    %2 = arith.cmpi ne, %1, %c0_i32_0 : i32
    scf.if %2 {
      %cst_16 = arith.constant 0.000000e+00 : f32
      %25 = vector.broadcast %cst_16 : f32 to vector<128x3xf32>
      %c0_17 = arith.constant 0 : index
      %c0_18 = arith.constant 0 : index
      %26 = vector.load %arg10[%c0_17, %c0_18] : memref<128x3xf32, #tpu.memory_space<vmem>>, vector<128x3xf32>
      tpu.vector_store %arg10[%c0_17, %c0_18], %25 {strides = array<i32>} : memref<128x3xf32, #tpu.memory_space<vmem>>, vector<128x3xf32>,
    } else {
    }
    %c0 = arith.constant 0 : index
    %c0_1 = arith.constant 0 : index
    %3 = vector.load %arg3[%c0, %c0_1] : memref<128x2xbf16, #tpu.memory_space<vmem>>, vector<128x2xbf16>
    %4 = arith.extf %3 : vector<128x2xbf16> to vector<128x2xf32>
    %c0_2 = arith.constant 0 : index
    %c0_3 = arith.constant 0 : index
    %5 = vector.load %arg5[%c0_2, %c0_3] : memref<1x2xf32, #tpu.memory_space<vmem>>, vector<1x2xf32>
    %6 = vector.broadcast %5 : vector<1x2xf32> to vector<128x2xf32>
    %7 = arith.mulf %4, %6 : vector<128x2xf32>
    %c0_4 = arith.constant 0 : index
    %c0_5 = arith.constant 0 : index
    %8 = vector.load %arg6[%c0_4, %c0_5] : memref<1x2xf32, #tpu.memory_space<vmem>>, vector<1x2xf32>
    %9 = vector.broadcast %8 : vector<1x2xf32> to vector<128x2xf32>
    %10 = arith.addf %7, %9 : vector<128x2xf32>
    %cst = arith.constant 0.000000e+00 : f32
    %11 = vector.broadcast %cst : f32 to vector<128x2xf32>
    %12 = arith.cmpf ogt, %10, %11 : vector<128x2xf32>
    %cst_6 = arith.constant 0.00999999977 : f32
    %13 = vector.broadcast %cst_6 : f32 to vector<128x2xf32>
    %14 = arith.mulf %13, %10 : vector<128x2xf32>
    %15 = arith.select %12, %10, %14 : vector<128x2xi1>, vector<128x2xf32>
    %c0_7 = arith.constant 0 : index
    %c0_8 = arith.constant 0 : index
    %16 = vector.load %arg10[%c0_7, %c0_8] : memref<128x3xf32, #tpu.memory_space<vmem>>, vector<128x3xf32>
    %17 = arith.truncf %15 : vector<128x2xf32> to vector<128x2xbf16>
    %c0_9 = arith.constant 0 : index
    %c0_10 = arith.constant 0 : index
    %18 = vector.load %arg4[%c0_9, %c0_10] : memref<2x3xbf16, #tpu.memory_space<vmem>>, vector<2x3xbf16>
    %cst_11 = arith.constant dense<0.000000e+00> : vector<128x3xf32>
    %19 = tpu.matmul %17, %18, %cst_11 {dimension_numbers = #tpu.dot_dimension_numbers<[1], [0], [0], [1], [0, 0, 1, 1], [], []>} : vector<128x2xbf16>, vector<2x3xbf16>, vector<128x3xf32> -> vector<128x3xf32>
    %20 = arith.addf %16, %19 : vector<128x3xf32>
    %c0_12 = arith.constant 0 : index
    %c0_13 = arith.constant 0 : index
    %21 = vector.load %arg10[%c0_12, %c0_13] : memref<128x3xf32, #tpu.memory_space<vmem>>, vector<128x3xf32>
    tpu.vector_store %arg10[%c0_12, %c0_13], %20 {strides = array<i32>} : memref<128x3xf32, #tpu.memory_space<vmem>>, vector<128x3xf32>,
    %c0_i32_14 = arith.constant 0 : i32
    %22 = arith.cmpi eq, %arg2, %c0_i32_14 : i32
    %23 = arith.extui %22 : i1 to i32
    %c0_i32_15 = arith.constant 0 : i32
    %24 = arith.cmpi ne, %23, %c0_i32_15 : i32
    scf.if %24 {
      %c0_16 = arith.constant 0 : index
      %c0_17 = arith.constant 0 : index
      %25 = vector.load %arg10[%c0_16, %c0_17] : memref<128x3xf32, #tpu.memory_space<vmem>>, vector<128x3xf32>
      %26 = arith.truncf %25 : vector<128x3xf32> to vector<128x3xbf16>
      %c0_18 = arith.constant 0 : index
      %c0_19 = arith.constant 0 : index
      %27 = vector.load %arg7[%c0_18, %c0_19] : memref<128x3xbf16, #tpu.memory_space<vmem>>, vector<128x3xbf16>
      tpu.vector_store %arg7[%c0_18, %c0_19], %26 {strides = array<i32>} : memref<128x3xbf16, #tpu.memory_space<vmem>>, vector<128x3xbf16>,
      %cst_20 = arith.constant dense<0.000000e+00> : vector<3xf32>
      %28 = vector.multi_reduction <add>, %25, %cst_20 [0] : vector<128x3xf32> to vector<3xf32>
      %29 = vector.shape_cast %28 : vector<3xf32> to vector<1x3xf32>
      %30 = vector.shape_cast %29 : vector<1x3xf32> to vector<1x1x3xf32>
      %c0_21 = arith.constant 0 : index
      %c0_22 = arith.constant 0 : index
      %c0_23 = arith.constant 0 : index
      %31 = vector.load %arg8[%c0_21, %c0_22, %c0_23] : memref<1x1x3xf32, #tpu.memory_space<vmem>>, vector<1x1x3xf32>
      tpu.vector_store %arg8[%c0_21, %c0_22, %c0_23], %30 {strides = array<i32>} : memref<1x1x3xf32, #tpu.memory_space<vmem>>, vector<1x1x3xf32>,
      %32 = arith.mulf %25, %25 : vector<128x3xf32>
      %cst_24 = arith.constant dense<0.000000e+00> : vector<3xf32>
      %33 = vector.multi_reduction <add>, %32, %cst_24 [0] : vector<128x3xf32> to vector<3xf32>
      %34 = vector.shape_cast %33 : vector<3xf32> to vector<1x3xf32>
      %35 = vector.shape_cast %34 : vector<1x3xf32> to vector<1x1x3xf32>
      %c0_25 = arith.constant 0 : index
      %c0_26 = arith.constant 0 : index
      %c0_27 = arith.constant 0 : index
      %36 = vector.load %arg9[%c0_25, %c0_26, %c0_27] : memref<1x1x3xf32, #tpu.memory_space<vmem>>, vector<1x1x3xf32>
      tpu.vector_store %arg9[%c0_25, %c0_26, %c0_27], %35 {strides = array<i32>} : memref<1x1x3xf32, #tpu.memory_space<vmem>>, vector<1x1x3xf32>,
    } else {
    }
    return
  }
  func.func @transform_0(%arg0: i32, %arg1: i32, %arg2: i32) -> (i32, i32) {
    %c0_i32 = arith.constant 0 : i32
    return %arg0, %arg2 : i32, i32
  }
  func.func @transform_1(%arg0: i32, %arg1: i32, %arg2: i32) -> (i32, i32) {
    %c0_i32 = arith.constant 0 : i32
    return %arg2, %arg1 : i32, i32
  }
  func.func @transform_2(%arg0: i32, %arg1: i32, %arg2: i32) -> (i32, i32) {
    %c0_i32 = arith.constant 0 : i32
    %c0_i32_0 = arith.constant 0 : i32
    return %c0_i32, %arg2 : i32, i32
  }
  func.func @transform_3(%arg0: i32, %arg1: i32, %arg2: i32) -> (i32, i32) {
    %c0_i32 = arith.constant 0 : i32
    %c0_i32_0 = arith.constant 0 : i32
    return %c0_i32, %arg2 : i32, i32
  }
  func.func @transform_4(%arg0: i32, %arg1: i32, %arg2: i32) -> (i32, i32) {
    %c0_i32 = arith.constant 0 : i32
    return %arg0, %arg1 : i32, i32
  }
  func.func @transform_5(%arg0: i32, %arg1: i32, %arg2: i32) -> (i32, i32, i32) {
    %c0_i32 = arith.constant 0 : i32
    %c0_i32_0 = arith.constant 0 : i32
    return %arg0, %c0_i32, %arg1 : i32, i32, i32
  }
  func.func @transform_6(%arg0: i32, %arg1: i32, %arg2: i32) -> (i32, i32, i32) {
    %c0_i32 = arith.constant 0 : i32
    %c0_i32_0 = arith.constant 0 : i32
    return %arg0, %c0_i32, %arg1 : i32, i32, i32
  }
}

module attributes {stable_mosaic.version = 11 : i64} {
  func.func @_norm_act_kernel(%arg0: i32, %arg1: memref<16x24xbf16, #tpu.memory_space<vmem>>, %arg2: memref<1x24xf32, #tpu.memory_space<vmem>>, %arg3: memref<1x24xf32, #tpu.memory_space<vmem>>, %arg4: memref<16x24xf32, #tpu.memory_space<vmem>>) attributes {dimension_semantics = [#tpu.dimension_semantics<parallel>], iteration_bounds = array<i64: 1>, scalar_prefetch = 0 : i64, scratch_operands = 0 : i64, tpu.core_type = #tpu.core_type<tc>, window_params = [{transform_indices = @transform_0, window_bounds = array<i64: 16, 24>}, {pipeline_mode = #tpu.pipeline_mode<synchronous>, transform_indices = @transform_1, window_bounds = array<i64: 1, 24>}, {pipeline_mode = #tpu.pipeline_mode<synchronous>, transform_indices = @transform_2, window_bounds = array<i64: 1, 24>}, {transform_indices = @transform_3, window_bounds = array<i64: 16, 24>}]} {
    %c0 = arith.constant 0 : index
    %c0_0 = arith.constant 0 : index
    %0 = vector.load %arg1[%c0, %c0_0] : memref<16x24xbf16, #tpu.memory_space<vmem>>, vector<16x24xbf16>
    %1 = arith.extf %0 : vector<16x24xbf16> to vector<16x24xf32>
    %c0_1 = arith.constant 0 : index
    %c0_2 = arith.constant 0 : index
    %2 = vector.load %arg2[%c0_1, %c0_2] : memref<1x24xf32, #tpu.memory_space<vmem>>, vector<1x24xf32>
    %3 = vector.broadcast %2 : vector<1x24xf32> to vector<16x24xf32>
    %4 = arith.mulf %1, %3 : vector<16x24xf32>
    %c0_3 = arith.constant 0 : index
    %c0_4 = arith.constant 0 : index
    %5 = vector.load %arg3[%c0_3, %c0_4] : memref<1x24xf32, #tpu.memory_space<vmem>>, vector<1x24xf32>
    %6 = vector.broadcast %5 : vector<1x24xf32> to vector<16x24xf32>
    %7 = arith.addf %4, %6 : vector<16x24xf32>
    %8 = math.tanh %7 : vector<16x24xf32>
    %c0_5 = arith.constant 0 : index
    %c0_6 = arith.constant 0 : index
    %9 = vector.load %arg4[%c0_5, %c0_6] : memref<16x24xf32, #tpu.memory_space<vmem>>, vector<16x24xf32>
    tpu.vector_store %arg4[%c0_5, %c0_6], %8 {strides = array<i32>} : memref<16x24xf32, #tpu.memory_space<vmem>>, vector<16x24xf32>,
    return
  }
  func.func @transform_0(%arg0: i32) -> (i32, i32) {
    %c0_i32 = arith.constant 0 : i32
    %c0_i32_0 = arith.constant 0 : i32
    return %arg0, %c0_i32 : i32, i32
  }
  func.func @transform_1(%arg0: i32) -> (i32, i32) {
    %c0_i32 = arith.constant 0 : i32
    %c0_i32_0 = arith.constant 0 : i32
    %c0_i32_1 = arith.constant 0 : i32
    return %c0_i32, %c0_i32_0 : i32, i32
  }
  func.func @transform_2(%arg0: i32) -> (i32, i32) {
    %c0_i32 = arith.constant 0 : i32
    %c0_i32_0 = arith.constant 0 : i32
    %c0_i32_1 = arith.constant 0 : i32
    return %c0_i32, %c0_i32_0 : i32, i32
  }
  func.func @transform_3(%arg0: i32) -> (i32, i32) {
    %c0_i32 = arith.constant 0 : i32
    %c0_i32_0 = arith.constant 0 : i32
    return %arg0, %c0_i32 : i32, i32
  }
}

</mosaic_0001>

<bundles_post_ra>
// kernel: tile.62
= control target key start
LH: loop header
LB: loop body
LE: loop exit
PB: predicated region body
PF: predicated region fallthrough
CT: control target
= control target key end

     0   :  { %s20_s0 = inlined_call_operand.<no memory space> [shape: f32[], index: 0, kind: input, shape index: {}]   ;;  %s21_s1 = inlined_call_operand.vmem [shape: f32[1,72], index: 1, kind: output, shape index: {}]  }
   0x1   :  { %v2_v0 = vstv %s20_s0 }
   0x2   :  { %3 = vst [vmem:[%s21_s1] sm:$0x1] %v2_v0 }

// kernel: tile.67
= control target key start
LH: loop header
LB: loop body
LE: loop exit
PB: predicated region body
PF: predicated region fallthrough
CT: control target
= control target key end

     0   :  { %s28_s0 = inlined_call_operand.vmem [shape: f32[16], index: 0, kind: input, shape index: {}]   ;;  %s29_s1 = inlined_call_operand.vmem [shape: f32[9,16], index: 1, kind: output, shape index: {}]  }
   0x1   :  { %v4_v0 = vld [vmem:[%s28_s0] ss:$0 sm:$0xff] }
   0x2   :  { %5 = vst [vmem:[%s29_s1] sm:$0xff] %v4_v0 }
   0x3   :  { %8 = vst [vmem:[%s29_s1 + $0x8] sm:$0xff] %v4_v0 }

// kernel: tile.72
= control target key start
LH: loop header
LB: loop body
LE: loop exit
PB: predicated region body
PF: predicated region fallthrough
CT: control target
= control target key end

     0   :  { %s75_s10 = smov 112   ;;  %s76_s11 = smov 80   ;;  %vm4_vm0 = vcmask 130048   ;;  %vm10_vm1 = vcmask 1048448   ;;  %vm16_vm2 = vcmask 917248   ;;  %vm22_vm3 = vcmask 786048   ;;  %s122_s0 = inlined_call_operand.vmem [shape: f32[9,16], index: 0, kind: input, shape index: {}]   ;;  %s123_s1 = inlined_call_operand.vmem [shape: f32[1,144], index: 1, kind: output, shape index: {}]  }
   0x1   :  { %v60_v0 = vld [vmem:[%s122_s0 + $0x7] sm:$0x1]   ;;  %v62_v1 = vld [vmem:[%s122_s0 + $0x5] sm:$0x1]   ;;  %v64_v2 = vld [vmem:[%s122_s0 + $0x3] sm:$0x1]  }
   0x2   :  { %8 = vrot.lane.b32.xlu0 %v60_v0, %s75_s10  ;;  %20 = vrot.lane.b32.xlu1 %v62_v1, %s76_s11  ;;  %s77_s14 = smov 48   ;;  %v61_v3 = vld [vmem:[%s122_s0 + $0x6] sm:$0x1]   ;;  %v63_v4 = vld [vmem:[%s122_s0 + $0x4] sm:$0x1]   ;;  %s78_s21 = smov 96  }
   0x3   :  { %32 = vrot.lane.b32.xlu2 %v64_v2, %s77_s14  ;;  %v65_v5 = vld [vmem:[%s122_s0 + $0x2] sm:$0x1]   ;;  %s79_s22 = smov 64   ;;  %s80_s23 = smov 32   ;;  %v66_v6 = vld [vmem:[%s122_s0 + $0x1] sm:$0x1]  }
   0x4   :  { %s81_s26 = smov 16   ;;  %s2_s27 = smov 3  ;;  %vm28_vm4 = vcmask 654848   ;;  %vm34_vm5 = vcmask 523648   ;;  %vm40_vm6 = vcmask 392448   ;;  %vm46_vm7 = vcmask 261248  }
   0x5   :  { %v3_v7 = vld [vmem:[%s122_s0] ss:$8 sm:%s2_s27]  }
   0x6   :  { %5 = vst.msk [vmem:[#allocation0] ss:$8 sm:$0x3] %vm4_vm0, %v3_v7  }
   0xa   :  { %14 = vrot.lane.b32.xlu0 %v61_v3, %s78_s21  ;;  %26 = vrot.lane.b32.xlu1 %v63_v4, %s79_s22 }
   0xb   :  { %38 = vrot.lane.b32.xlu2 %v65_v5, %s80_s23 }
   0xd   :  { %v55_v8 = vld [vmem:[#allocation0 + $0x8] sm:$0x1] }
   0xe   :  { %67 = vst [vmem:[%s123_s1 + $0x1] sm:$0x1] %v55_v8 }
  0x12   :  { %44 = vrot.lane.b32.xlu0 %v66_v6, %s81_s26 }
  0x5d   :  { %v33_v9 = vpop.permute.xlu2 %32  }
  0x65   :  { %v39_v10 = vpop.permute.xlu2 %38  }
  0x74   :  { %v9_v11 = vpop.permute.xlu0 %8   ;;  %v21_v12 = vpop.permute.xlu1 %20  }
  0x75   :  { %11 = vst.msk [vmem:[#allocation0] sm:$0x1] %vm10_vm1, %v9_v11  }
  0x7c   :  { %v15_v13 = vpop.permute.xlu0 %14   ;;  %v27_v14 = vpop.permute.xlu1 %26  }
  0x7d   :  { %17 = vst.msk [vmem:[#allocation0] sm:$0x1] %vm16_vm2, %v15_v13  }
  0x7e   :  { %23 = vst.msk [vmem:[#allocation0] sm:$0x1] %vm22_vm3, %v21_v12  }
  0x7f   :  { %29 = vst.msk [vmem:[#allocation0] sm:$0x1] %vm28_vm4, %v27_v14  }
  0x80   :  { %35 = vst.msk [vmem:[#allocation0] sm:$0x1] %vm34_vm5, %v33_v9  }
  0x81   :  { %41 = vst.msk [vmem:[#allocation0] sm:$0x1] %vm40_vm6, %v39_v10  }
  0x84   :  { %v45_v15 = vpop.permute.xlu0 %44  }
  0x85   :  { %47 = vst.msk [vmem:[#allocation0] sm:$0x1] %vm46_vm7, %v45_v15  }
  0x8c   :  { %v50_v16 = vld [vmem:[#allocation0] sm:$0x1] }
  0x8d   :  { %53 = vst [vmem:[%s123_s1] sm:$0x1] %v50_v16 }

// kernel: tile.77
= control target key start
LH: loop header
LB: loop body
LE: loop exit
PB: predicated region body
PF: predicated region fallthrough
CT: control target
= control target key end

     0   :  { %s22_s0 = inlined_call_operand.vmem [shape: f32[8], index: 0, kind: input, shape index: {}]   ;;  %s23_s1 = inlined_call_operand.vmem [shape: f32[2,8], index: 1, kind: output, shape index: {}]  }
   0x1   :  { %v4_v0 = vld [vmem:[%s22_s0] ss:$0 sm:$0xff] }
   0x2   :  { %5 = vst [vmem:[%s23_s1] sm:$0x3] %v4_v0 }

// kernel: tile.82
= control target key start
LH: loop header
LB: loop body
LE: loop exit
PB: predicated region body
PF: predicated region fallthrough
CT: control target
= control target key end

     0   :  { %vm7_vm0 = vcmask 64512   ;;  %vm13_vm1 = vcmask 130112   ;;  %s39_s0 = inlined_call_operand.vmem [shape: f32[2,8], index: 0, kind: input, shape index: {}]   ;;  %s40_s1 = inlined_call_operand.vmem [shape: f32[1,16], index: 1, kind: output, shape index: {}]  }
   0x1   :  { %v4_v0 = vld [vmem:[%s39_s0] sm:$0x3]  ;;  %s22_s0 = smov 8  }
   0x2   :  { %5 = vst [vmem:[#allocation1] sm:$0x3] %v4_v0 }
   0x9   :  { %v10_v1 = vld [vmem:[#allocation1 + $0x1] sm:$0x1]   ;;  %v6_v2 = vld [vmem:[#allocation1] sm:$0x1]  }
   0xa   :  { %11 = vrot.lane.b32.xlu0 %v10_v1, %s22_s0  ;;  %8 = vst.msk [vmem:[#allocation0] sm:$0x1] %vm7_vm0, %v6_v2  }
  0x7c   :  { %v12_v3 = vpop.permute.xlu0 %11  }
  0x7d   :  { %14 = vst.msk [vmem:[#allocation0] sm:$0x1] %vm13_vm1, %v12_v3  }
  0x84   :  { %v17_v4 = vld [vmem:[#allocation0] sm:$0x1] }
  0x85   :  { %20 = vst [vmem:[%s40_s1] sm:$0x1] %v17_v4 }

// kernel: wide_resnet_decoder_forward.12
= control target key start
LH: loop header
LB: loop body
LE: loop exit
PB: predicated region body
PF: predicated region fallthrough
CT: control target
= control target key end

     0   :  { %vm30_vm1 = vcmask 123904   ;;  %s70_s0 = inlined_call_operand.vmem [shape: bf16[4,16], index: 0, kind: input, shape index: {}]   ;;  %s71_s1 = inlined_call_operand.vmem [shape: f32[1,16], index: 1, kind: input, shape index: {}]   ;;  %s72_s2 = inlined_call_operand.vmem [shape: f32[1,16], index: 2, kind: input, shape index: {}]   ;;  %s73_s3 = inlined_call_operand.vmem [shape: bf16[4,16], index: 3, kind: output, shape index: {}]  }
   0x1   :  { %v14_v0 = vld [vmem:[%s70_s0] sm:$0x3] }
   0x2   :  { %v36_v1 = vld [vmem:[%s71_s1] ss:$0 sm:$0xff]  ;;  %v15_v2 = vunpack.c.l.bf16 %v14_v0 }
   0x3   :  { %v37_v3 = vld [vmem:[%s72_s2] ss:$0 sm:$0xff] }
   0x4   :  { %v20_v4 = vmul.f32 %v36_v1, %v15_v2 }
   0x6   :  { %v25_v5 = vadd.f32 %v37_v3, %v20_v4 }
   0x8   :  { %vm26_vm0 = vcmp.gt.f32.partialorder %v25_v5, 0.0  ;;  %v27_v6 = vmul.f32 0.01, %v25_v5 }
   0xa   :  { %v28_v7 = vsel %vm26_vm0, %v25_v5, %v27_v6 }
   0xb   :  { %v29_v8 = vpack.c.bf16 %v28_v7, %v28_v7 }
   0xd   :  { %31 = vst.msk [vmem:[%s73_s3] sm:$0x3] %vm30_vm1, %v29_v8 }

// kernel: wide_resnet_decoder_forward.10
= control target key start
LH: loop header
LB: loop body
LE: loop exit
PB: predicated region body
PF: predicated region fallthrough
CT: control target
= control target key end

     0   :  { %vm25_vm0 = vcmask 130048   ;;  %v162_v1 = vmov 0.0   ;;  %vm81_vm1 = vcmask 1043456   ;;  %vm77_vm2 = vcmask 588800   ;;  %s235_s1 = inlined_call_operand.vmem [shape: bf16[72,16], index: 1, kind: input, shape index: {}]   ;;  %s236_s2 = inlined_call_operand.vmem [shape: f32[1,72], index: 2, kind: input, shape index: {}]   ;;  %s237_s3 = inlined_call_operand.vmem [shape: f32[1,72], index: 3, kind: input, shape index: {}]   ;;  %s238_s0 = inlined_call_operand.vmem [shape: bf16[8,72], index: 0, kind: input, shape index: {}]   ;;  %s239_s4 = inlined_call_operand.vmem [shape: bf16[8,16], index: 4, kind: output, shape index: {0}]   ;;  %s240_s5 = inlined_call_operand.vmem [shape: f32[1,1,16], index: 5, kind: output, shape index: {1}]   ;;  %s241_s6 = inlined_call_operand.vmem [shape: f32[1,1,16], index: 6, kind: output, shape index: {2}]  }
   0x1   :  { %v49_v0 = vld [vmem:[%s235_s1 + $0x20] sm:$0xf]  ;;  %26 = vst.msk [vmem:[#allocation2] sm:$0xff] %vm25_vm0, %v162_v1  ;;  %v158_v5 = vld [vmem:[%s235_s1 + $0x18] sm:$0xff]  ;;  %v157_v9 = vld [vmem:[%s235_s1 + $0x10] sm:$0xff]  ;;  %vm106_vm3 = vcmask 125952  }
   0x2   :  { %v67_v2 = vunpack.c.l.b16 %v49_v0  ;;  %v27_v6 = vld [vmem:[%s238_s0] sm:$0xf]  ;;  %v156_v12 = vld [vmem:[%s235_s1 + $0x8] sm:$0xff]  ;;  %vm115_vm4 = vcmask 122880  }
   0x3   :  { %v28_v7 = vunpack.c.l.bf16 %v27_v6  ;;  %v160_v8 = vld [vmem:[%s236_s2] ss:$0 sm:$0xff] }
   0x4   :  { %v72_v3 = vpack.c.b16 %v67_v2, %v67_v2  ;;  %v161_v11 = vld [vmem:[%s237_s3] ss:$0 sm:$0xff] }
   0x5   :  { %v33_v10 = vmul.f32 %v160_v8, %v28_v7  ;;  %v155_v14 = vld [vmem:[%s235_s1] sm:$0xff] }
   0x6   :  { %v83_v4 = vsel %vm81_vm1, %v72_v3, 0 }
   0x7   :  { %88 = vmatpush.bf16.msra.mxu0 %v83_v4  ;;  %v38_v13 = vadd.f32 %v161_v11, %v33_v10 }
   0x8   :  { %v39_v16 = vld [vmem:[#allocation2] sm:$0xff] }
   0x9   :  { %v40_v15 = vpack.c.bf16 %v38_v13, %v38_v13 }
   0xb   :  { %89 = vmatpush.bf16.msra.mxu0 %v158_v5 }
   0xf   :  { %90 = vmatpush.bf16.msra.mxu0 %v157_v9 }
  0x13   :  { %91 = vmatpush.bf16.msra.mxu0 %v156_v12 }
  0x17   :  { %92 = vmatpush.bf16.msra.mxu0 %v155_v14 }
  0x1a   :  { %154 = vmatmul.msk.bf16.vlgmr.msra.gmra.mxu0 %vm77_vm2, %v40_v15 }
  0x97   :  { %v94_v17 = vpop.f32.mrf.mxu0 }
  0x98   :  { %v98_v18 = vadd.f32 %v94_v17, %v39_v16 }
  0x9a   :  { %100 = vst.msk [vmem:[#allocation2] sm:$0xff] %vm25_vm0, %v98_v18 }
  0x9f   :  { %v96_v19 = vpop.f32.mrf.mxu0 }
  0xa1   :  { %v104_v20 = vld [vmem:[#allocation2] sm:$0xff] }
  0xa2   :  { %v105_v21 = vpack.c.bf16 %v104_v20, %v104_v20  ;;  %v108_v22 = vsel %vm25_vm0, %v104_v20, 0.0  ;;  %v117_v23 = vmul.f32 %v104_v20, %v104_v20 }
  0xa3   :  { %v109_v24 = vrot.slane %v108_v22, 4 }
  0xa4   :  { %107 = vst.msk [vmem:[%s239_s4] sm:$0xf] %vm106_vm3, %v105_v21  ;;  %v118_v25 = vsel %vm25_vm0, %v117_v23, 0.0 }
  0xa5   :  { %v110_v26 = vadd.f32 %v109_v24, %v108_v22  ;;  %v119_v27 = vrot.slane %v118_v25, 4 }
  0xa7   :  { %v111_v28 = vrot.slane %v110_v26, 2  ;;  %v120_v29 = vadd.f32 %v119_v27, %v118_v25 }
  0xa9   :  { %v112_v30 = vadd.f32 %v111_v28, %v110_v26  ;;  %v121_v31 = vrot.slane %v120_v29, 2 }
  0xab   :  { %v113_v32 = vrot.slane %v112_v30, 1  ;;  %v122_v33 = vadd.f32 %v121_v31, %v120_v29 }
  0xad   :  { %v114_v34 = vadd.f32 %v113_v32, %v112_v30  ;;  %v123_v35 = vrot.slane %v122_v33, 1 }
  0xaf   :  { %116 = vst.msk [vmem:[%s240_s5] sm:$0x1] %vm115_vm4, %v114_v34  ;;  %v124_v36 = vadd.f32 %v123_v35, %v122_v33 }
  0xb1   :  { %125 = vst.msk [vmem:[%s241_s6] sm:$0x1] %vm115_vm4, %v124_v36 }

// kernel: wide_resnet_decoder_forward.11
= control target key start
LH: loop header
LB: loop body
LE: loop exit
PB: predicated region body
PF: predicated region fallthrough
CT: control target
= control target key end

     0   :  { %vm136_vm1 = vcmask 130048   ;;  %vm34_vm3 = vcmask 64512   ;;  %v268_v28 = vmov 0.0   ;;  %vm187_vm4 = vcmask 60416   ;;  %s377_s1 = inlined_call_operand.vmem [shape: bf16[144,8], index: 1, kind: input, shape index: {}]   ;;  %s378_s0 = inlined_call_operand.vmem [shape: bf16[8,144], index: 0, kind: input, shape index: {}]   ;;  %s379_s2 = inlined_call_operand.vmem [shape: f32[1,144], index: 2, kind: input, shape index: {}]   ;;  %s380_s3 = inlined_call_operand.vmem [shape: f32[1,144], index: 3, kind: input, shape index: {}]   ;;  %s381_s5 = inlined_call_operand.vmem [shape: f32[1,8], index: 5, kind: input, shape index: {}]   ;;  %s382_s6 = inlined_call_operand.vmem [shape: f32[1,8], index: 6, kind: input, shape index: {}]   ;;  %s383_s4 = inlined_call_operand.vmem [shape: bf16[8,8], index: 4, kind: input, shape index: {}]   ;;  %s384_s7 = inlined_call_operand.vmem [shape: bf16[8,8], index: 7, kind: output, shape index: {0}]   ;;  %s385_s8 = inlined_call_operand.vmem [shape: f32[1,1,8], index: 8, kind: output, shape index: {1}]   ;;  %s386_s9 = inlined_call_operand.vmem [shape: f32[1,1,8], index: 9, kind: output, shape index: {2}]  }
   0x1   :  { %v263_v0 = vld [vmem:[%s377_s1 + $0x38] sm:$0xff]  ;;  %v262_v1 = vld [vmem:[%s377_s1 + $0x30] sm:$0xff]  ;;  %v264_v2 = vld [vmem:[%s377_s1 + $0x40] sm:$0xff]  ;;  %35 = vst.msk [vmem:[#allocation2] sm:$0xff] %vm34_vm3, %v268_v28  ;;  %vm196_vm5 = vcmask 57344  }
   0x2   :  { %140 = vmatpush.bf16.msra.mxu0 %v263_v0  ;;  %v36_v3 = vld [vmem:[%s378_s0] sm:$0xff]  ;;  %160 = vmatpush.bf16.msra.mxu1 %v264_v2  ;;  %v261_v10 = vld [vmem:[%s377_s1 + $0x28] sm:$0xff]  ;;  %v259_v18 = vld [vmem:[%s377_s1 + $0x18] sm:$0xff] }
   0x3   :  { %v39_v4 = vld [vmem:[%s379_s2] sm:$0x3]  ;;  %v38_v5 = vunpack.c.h.bf16 %v36_v3  ;;  %v37_v14 = vunpack.c.l.bf16 %v36_v3  ;;  %v258_v21 = vld [vmem:[%s377_s1 + $0x10] sm:$0xff]  ;;  %v257_v23 = vld [vmem:[%s377_s1 + $0x8] sm:$0xff] }
   0x4   :  { %v42_v6 = vperm.slane %v39_v4, 1  ;;  %v47_v7 = vld [vmem:[%s380_s3] sm:$0x3]  ;;  %v41_v15 = vperm.slane %v39_v4, 0 }
   0x5   :  { %v50_v8 = vperm.slane %v47_v7, 1  ;;  %v260_v13 = vld [vmem:[%s377_s1 + $0x20] sm:$0xff]  ;;  %v49_v20 = vperm.slane %v47_v7, 0 }
   0x6   :  { %v46_v9 = vmul.f32 %v42_v6, %v38_v5  ;;  %141 = vmatpush.bf16.msra.mxu0 %v262_v1  ;;  %v45_v19 = vmul.f32 %v41_v15, %v37_v14  ;;  %v256_v25 = vld [vmem:[%s377_s1] sm:$0xff] }
   0x7   :  { %v172_v31 = vld [vmem:[%s383_s4] sm:$0xf] }
   0x8   :  { %v54_v11 = vadd.f32 %v50_v8, %v46_v9  ;;  %v53_v22 = vadd.f32 %v49_v20, %v45_v19  ;;  %v61_v32 = vld [vmem:[#allocation2] sm:$0xff]  ;;  %v173_v35 = vunpack.c.l.bf16 %v172_v31 }
   0x9   :  { %v266_v36 = vld [vmem:[%s381_s5] ss:$0 sm:$0xff] }
   0xa   :  { %vm56_vm0 = vcmp.gt.f32.partialorder %v54_v11, 0.0  ;;  %v58_v12 = vmul.f32 0.01, %v54_v11  ;;  %142 = vmatpush.bf16.msra.mxu0 %v261_v10  ;;  %v57_v24 = vmul.f32 0.01, %v53_v22  ;;  %vm55_vm2 = vcmp.gt.f32.partialorder %v53_v22, 0.0 }
   0xb   :  { %v178_v38 = vmul.f32 %v266_v36, %v173_v35  ;;  %v267_v39 = vld [vmem:[%s382_s6] ss:$0 sm:$0xff] }
   0xc   :  { %v60_v16 = vsel %vm56_vm0, %v54_v11, %v58_v12  ;;  %v59_v26 = vsel %vm55_vm2, %v53_v22, %v57_v24 }
   0xd   :  { %v63_v17 = vpack.c.bf16 %v60_v16, %v60_v16  ;;  %v62_v27 = vpack.c.bf16 %v59_v26, %v59_v26  ;;  %v183_v41 = vadd.f32 %v267_v39, %v178_v38 }
   0xe   :  { %143 = vmatpush.bf16.msra.mxu0 %v260_v13 }
   0xf   :  { %255 = vmatmul.msk.bf16.vlgmr.msra.gmra.mxu1 %vm136_vm1, %v63_v17 }
  0x12   :  { %144 = vmatpush.bf16.msra.mxu0 %v259_v18 }
  0x16   :  { %145 = vmatpush.bf16.msra.mxu0 %v258_v21 }
  0x1a   :  { %146 = vmatpush.bf16.msra.mxu0 %v257_v23 }
  0x1e   :  { %147 = vmatpush.bf16.msra.mxu0 %v256_v25 }
  0x21   :  { %148 = vmatmul.bf16.vlgmr.msra.gmra.mxu0 %v62_v27 }
  0x8c   :  { %v162_v29 = vpop.f32.mrf.mxu1 }
  0x94   :  { %v164_v30 = vpop.f32.mrf.mxu1 }
  0x9e   :  { %v149_v33 = vpop.f32.mrf.mxu0 }
  0x9f   :  { %v163_v34 = vadd.f32 %v162_v29, %v149_v33 }
  0xa1   :  { %v166_v37 = vadd.f32 %v163_v34, %v61_v32 }
  0xa3   :  { %168 = vst.msk [vmem:[#allocation2] sm:$0xff] %vm34_vm3, %v166_v37 }
  0xa6   :  { %v151_v40 = vpop.f32.mrf.mxu0 }
  0xaa   :  { %v184_v42 = vld [vmem:[#allocation2] sm:$0xff] }
  0xab   :  { %v185_v43 = vadd.f32 %v184_v42, %v183_v41 }
  0xad   :  { %v186_v44 = vpack.c.bf16 %v185_v43, %v185_v43  ;;  %v189_v45 = vsel %vm34_vm3, %v185_v43, 0.0  ;;  %v198_v46 = vmul.f32 %v185_v43, %v185_v43 }
  0xae   :  { %v190_v47 = vrot.slane %v189_v45, 4 }
  0xaf   :  { %188 = vst.msk [vmem:[%s384_s7] sm:$0xf] %vm187_vm4, %v186_v44  ;;  %v199_v48 = vsel %vm34_vm3, %v198_v46, 0.0 }
  0xb0   :  { %v191_v49 = vadd.f32 %v190_v47, %v189_v45  ;;  %v200_v50 = vrot.slane %v199_v48, 4 }
  0xb2   :  { %v192_v51 = vrot.slane %v191_v49, 2  ;;  %v201_v52 = vadd.f32 %v200_v50, %v199_v48 }
  0xb4   :  { %v193_v53 = vadd.f32 %v192_v51, %v191_v49  ;;  %v202_v54 = vrot.slane %v201_v52, 2 }
  0xb6   :  { %v194_v55 = vrot.slane %v193_v53, 1  ;;  %v203_v56 = vadd.f32 %v202_v54, %v201_v52 }
  0xb8   :  { %v195_v57 = vadd.f32 %v194_v55, %v193_v53  ;;  %v204_v58 = vrot.slane %v203_v56, 1 }
  0xba   :  { %197 = vst.msk [vmem:[%s385_s8] sm:$0x1] %vm196_vm5, %v195_v57  ;;  %v205_v59 = vadd.f32 %v204_v58, %v203_v56 }
  0xbc   :  { %206 = vst.msk [vmem:[%s386_s9] sm:$0x1] %vm196_vm5, %v205_v59 }

// kernel: tile.87
= control target key start
LH: loop header
LB: loop body
LE: loop exit
PB: predicated region body
PF: predicated region fallthrough
CT: control target
= control target key end

     0   :  { %s28_s0 = inlined_call_operand.vmem [shape: f32[4], index: 0, kind: input, shape index: {}]   ;;  %s29_s1 = inlined_call_operand.vmem [shape: f32[9,4], index: 1, kind: output, shape index: {}]  }
   0x1   :  { %v4_v0 = vld [vmem:[%s28_s0] ss:$0 sm:$0xff] }
   0x2   :  { %5 = vst [vmem:[%s29_s1] sm:$0xff] %v4_v0 }
   0x3   :  { %8 = vst [vmem:[%s29_s1 + $0x8] sm:$0xff] %v4_v0 }

// kernel: tile.92
= control target key start
LH: loop header
LB: loop body
LE: loop exit
PB: predicated region body
PF: predicated region fallthrough
CT: control target
= control target key end

     0   :  { %s75_s10 = smov 32   ;;  %s76_s11 = smov 24   ;;  %vm3_vm0 = vcmask 31744   ;;  %vm9_vm1 = vcmask 294144   ;;  %vm15_vm2 = vcmask 261344   ;;  %vm21_vm3 = vcmask 228544   ;;  %s123_s0 = inlined_call_operand.vmem [shape: f32[9,4], index: 0, kind: input, shape index: {}]   ;;  %s124_s1 = inlined_call_operand.vmem [shape: f32[1,36], index: 1, kind: output, shape index: {}]  }
   0x1   :  { %v59_v0 = vld [vmem:[%s123_s0 + $0x8] sm:$0x1]   ;;  %v61_v1 = vld [vmem:[%s123_s0 + $0x6] sm:$0x1]   ;;  %v63_v2 = vld [vmem:[%s123_s0 + $0x4] sm:$0x1]  }
   0x2   :  { %7 = vrot.lane.b32.xlu0 %v59_v0, %s75_s10  ;;  %19 = vrot.lane.b32.xlu1 %v61_v1, %s76_s11  ;;  %s77_s14 = smov 16   ;;  %v60_v3 = vld [vmem:[%s123_s0 + $0x7] sm:$0x1]   ;;  %v62_v4 = vld [vmem:[%s123_s0 + $0x5] sm:$0x1]   ;;  %s78_s19 = smov 28  }
   0x3   :  { %31 = vrot.lane.b32.xlu2 %v63_v2, %s77_s14  ;;  %s79_s20 = smov 20   ;;  %v64_v5 = vld [vmem:[%s123_s0 + $0x3] sm:$0x1]   ;;  %s80_s23 = smov 12   ;;  %v65_v6 = vld [vmem:[%s123_s0 + $0x2] sm:$0x1]  }
   0x4   :  { %v66_v7 = vld [vmem:[%s123_s0 + $0x1] sm:$0x1]   ;;  %s81_s28 = smov 8   ;;  %s82_s29 = smov 4   ;;  %v2_v8 = vld [vmem:[%s123_s0] sm:$0x1]  }
   0x5   :  { %4 = vst.msk [vmem:[#allocation0] sm:$0x1] %vm3_vm0, %v2_v8   ;;  %vm27_vm4 = vcmask 195744   ;;  %vm33_vm5 = vcmask 162944   ;;  %vm39_vm6 = vcmask 130144   ;;  %vm45_vm7 = vcmask 97344  }
   0x6   :  { %vm51_vm8 = vcmask 64544  }
   0xa   :  { %13 = vrot.lane.b32.xlu0 %v60_v3, %s78_s19  ;;  %25 = vrot.lane.b32.xlu1 %v62_v4, %s79_s20 }
   0xb   :  { %37 = vrot.lane.b32.xlu2 %v64_v5, %s80_s23 }
  0x12   :  { %43 = vrot.lane.b32.xlu0 %v65_v6, %s81_s28  ;;  %49 = vrot.lane.b32.xlu1 %v66_v7, %s82_s29 }
  0x5d   :  { %v32_v9 = vpop.permute.xlu2 %31  }
  0x65   :  { %v38_v10 = vpop.permute.xlu2 %37  }
  0x74   :  { %v8_v11 = vpop.permute.xlu0 %7   ;;  %v20_v12 = vpop.permute.xlu1 %19  }
  0x75   :  { %10 = vst.msk [vmem:[#allocation0] sm:$0x1] %vm9_vm1, %v8_v11  }
  0x7c   :  { %v14_v13 = vpop.permute.xlu0 %13   ;;  %v26_v14 = vpop.permute.xlu1 %25  }
  0x7d   :  { %16 = vst.msk [vmem:[#allocation0] sm:$0x1] %vm15_vm2, %v14_v13  }
  0x7e   :  { %22 = vst.msk [vmem:[#allocation0] sm:$0x1] %vm21_vm3, %v20_v12  }
  0x7f   :  { %28 = vst.msk [vmem:[#allocation0] sm:$0x1] %vm27_vm4, %v26_v14  }
  0x80   :  { %34 = vst.msk [vmem:[#allocation0] sm:$0x1] %vm33_vm5, %v32_v9  }
  0x81   :  { %40 = vst.msk [vmem:[#allocation0] sm:$0x1] %vm39_vm6, %v38_v10  }
  0x84   :  { %v44_v15 = vpop.permute.xlu0 %43   ;;  %v50_v16 = vpop.permute.xlu1 %49  }
  0x85   :  { %46 = vst.msk [vmem:[#allocation0] sm:$0x1] %vm45_vm7, %v44_v15  }
  0x86   :  { %52 = vst.msk [vmem:[#allocation0] sm:$0x1] %vm51_vm8, %v50_v16  }
  0x8d   :  { %v55_v17 = vld [vmem:[#allocation0] sm:$0x1] }
  0x8e   :  { %58 = vst [vmem:[%s124_s1] sm:$0x1] %v55_v17 }

// kernel: tile.97
= control target key start
LH: loop header
LB: loop body
LE: loop exit
PB: predicated region body
PF: predicated region fallthrough
CT: control target
= control target key end

     0   :  { %s28_s0 = inlined_call_operand.vmem [shape: f32[8], index: 0, kind: input, shape index: {}]   ;;  %s29_s1 = inlined_call_operand.vmem [shape: f32[9,8], index: 1, kind: output, shape index: {}]  }
   0x1   :  { %v4_v0 = vld [vmem:[%s28_s0] ss:$0 sm:$0xff] }
   0x2   :  { %5 = vst [vmem:[%s29_s1] sm:$0xff] %v4_v0 }
   0x3   :  { %8 = vst [vmem:[%s29_s1 + $0x8] sm:$0xff] %v4_v0 }

// kernel: tile.102
= control target key start
LH: loop header
LB: loop body
LE: loop exit
PB: predicated region body
PF: predicated region fallthrough
CT: control target
= control target key end

     0   :  { %s75_s10 = smov 64   ;;  %s76_s11 = smov 48   ;;  %vm3_vm0 = vcmask 64512   ;;  %vm9_vm1 = vcmask 589312   ;;  %vm15_vm2 = vcmask 523712   ;;  %vm21_vm3 = vcmask 458112   ;;  %s123_s0 = inlined_call_operand.vmem [shape: f32[9,8], index: 0, kind: input, shape index: {}]   ;;  %s124_s1 = inlined_call_operand.vmem [shape: f32[1,72], index: 1, kind: output, shape index: {}]  }
   0x1   :  { %v59_v0 = vld [vmem:[%s123_s0 + $0x8] sm:$0x1]   ;;  %v61_v1 = vld [vmem:[%s123_s0 + $0x6] sm:$0x1]   ;;  %v63_v2 = vld [vmem:[%s123_s0 + $0x4] sm:$0x1]  }
   0x2   :  { %7 = vrot.lane.b32.xlu0 %v59_v0, %s75_s10  ;;  %19 = vrot.lane.b32.xlu1 %v61_v1, %s76_s11  ;;  %s77_s14 = smov 32   ;;  %v60_v3 = vld [vmem:[%s123_s0 + $0x7] sm:$0x1]   ;;  %v62_v4 = vld [vmem:[%s123_s0 + $0x5] sm:$0x1]   ;;  %s78_s19 = smov 56  }
   0x3   :  { %31 = vrot.lane.b32.xlu2 %v63_v2, %s77_s14  ;;  %s79_s20 = smov 40   ;;  %v64_v5 = vld [vmem:[%s123_s0 + $0x3] sm:$0x1]   ;;  %s80_s23 = smov 24   ;;  %v65_v6 = vld [vmem:[%s123_s0 + $0x2] sm:$0x1]  }
   0x4   :  { %v66_v7 = vld [vmem:[%s123_s0 + $0x1] sm:$0x1]   ;;  %s81_s28 = smov 16   ;;  %s82_s29 = smov 8   ;;  %v2_v8 = vld [vmem:[%s123_s0] sm:$0x1]  }
   0x5   :  { %4 = vst.msk [vmem:[#allocation0] sm:$0x1] %vm3_vm0, %v2_v8   ;;  %vm27_vm4 = vcmask 392512   ;;  %vm33_vm5 = vcmask 326912   ;;  %vm39_vm6 = vcmask 261312   ;;  %vm45_vm7 = vcmask 195712  }
   0x6   :  { %vm51_vm8 = vcmask 130112  }
   0xa   :  { %13 = vrot.lane.b32.xlu0 %v60_v3, %s78_s19  ;;  %25 = vrot.lane.b32.xlu1 %v62_v4, %s79_s20 }
   0xb   :  { %37 = vrot.lane.b32.xlu2 %v64_v5, %s80_s23 }
  0x12   :  { %43 = vrot.lane.b32.xlu0 %v65_v6, %s81_s28  ;;  %49 = vrot.lane.b32.xlu1 %v66_v7, %s82_s29 }
  0x5d   :  { %v32_v9 = vpop.permute.xlu2 %31  }
  0x65   :  { %v38_v10 = vpop.permute.xlu2 %37  }
  0x74   :  { %v8_v11 = vpop.permute.xlu0 %7   ;;  %v20_v12 = vpop.permute.xlu1 %19  }
  0x75   :  { %10 = vst.msk [vmem:[#allocation0] sm:$0x1] %vm9_vm1, %v8_v11  }
  0x7c   :  { %v14_v13 = vpop.permute.xlu0 %13   ;;  %v26_v14 = vpop.permute.xlu1 %25  }
  0x7d   :  { %16 = vst.msk [vmem:[#allocation0] sm:$0x1] %vm15_vm2, %v14_v13  }
  0x7e   :  { %22 = vst.msk [vmem:[#allocation0] sm:$0x1] %vm21_vm3, %v20_v12  }
  0x7f   :  { %28 = vst.msk [vmem:[#allocation0] sm:$0x1] %vm27_vm4, %v26_v14  }
  0x80   :  { %34 = vst.msk [vmem:[#allocation0] sm:$0x1] %vm33_vm5, %v32_v9  }
  0x81   :  { %40 = vst.msk [vmem:[#allocation0] sm:$0x1] %vm39_vm6, %v38_v10  }
  0x84   :  { %v44_v15 = vpop.permute.xlu0 %43   ;;  %v50_v16 = vpop.permute.xlu1 %49  }
  0x85   :  { %46 = vst.msk [vmem:[#allocation0] sm:$0x1] %vm45_vm7, %v44_v15  }
  0x86   :  { %52 = vst.msk [vmem:[#allocation0] sm:$0x1] %vm51_vm8, %v50_v16  }
  0x8d   :  { %v55_v17 = vld [vmem:[#allocation0] sm:$0x1] }
  0x8e   :  { %58 = vst [vmem:[%s124_s1] sm:$0x1] %v55_v17 }

// kernel: wide_resnet_decoder_forward.13
= control target key start
LH: loop header
LB: loop body
LE: loop exit
PB: predicated region body
PF: predicated region fallthrough
CT: control target
= control target key end

     0   :  { %vm25_vm0 = vcmask 130048   ;;  %v128_v2 = vmov 0.0   ;;  %vm57_vm1 = vcmask 261120   ;;  %vm82_vm2 = vcmask 125952   ;;  %s192_s1 = inlined_call_operand.vmem [shape: bf16[32,16], index: 1, kind: input, shape index: {}]   ;;  %s193_s0 = inlined_call_operand.vmem [shape: bf16[8,32], index: 0, kind: input, shape index: {}]   ;;  %s194_s2 = inlined_call_operand.vmem [shape: f32[1,32], index: 2, kind: input, shape index: {}]   ;;  %s195_s3 = inlined_call_operand.vmem [shape: f32[1,32], index: 3, kind: input, shape index: {}]   ;;  %s196_s4 = inlined_call_operand.vmem [shape: bf16[8,16], index: 4, kind: output, shape index: {0}]   ;;  %s197_s5 = inlined_call_operand.vmem [shape: f32[1,1,16], index: 5, kind: output, shape index: {1}]   ;;  %s198_s6 = inlined_call_operand.vmem [shape: f32[1,1,16], index: 6, kind: output, shape index: {2}]  }
   0x1   :  { %v124_v0 = vld [vmem:[%s192_s1 + $0x8] sm:$0xff]  ;;  %v27_v1 = vld [vmem:[%s193_s0] sm:$0xf]  ;;  %26 = vst.msk [vmem:[#allocation2] sm:$0xff] %vm25_vm0, %v128_v2  ;;  %vm91_vm3 = vcmask 122880  }
   0x2   :  { %v28_v3 = vunpack.c.l.bf16 %v27_v1  ;;  %v126_v4 = vld [vmem:[%s194_s2] ss:$0 sm:$0xff]  ;;  %67 = vmatpush.bf16.msra.mxu0 %v124_v0 }
   0x3   :  { %v123_v5 = vld [vmem:[%s192_s1] sm:$0xff] }
   0x4   :  { %v127_v6 = vld [vmem:[%s195_s3] ss:$0 sm:$0xff]  ;;  %v33_v7 = vmul.f32 %v126_v4, %v28_v3 }
   0x6   :  { %v38_v8 = vadd.f32 %v127_v6, %v33_v7  ;;  %68 = vmatpush.bf16.msra.mxu0 %v123_v5 }
   0x8   :  { %v40_v9 = vpack.c.bf16 %v38_v8, %v38_v8  ;;  %v39_v10 = vld [vmem:[#allocation2] sm:$0xff] }
   0xa   :  { %122 = vmatmul.msk.bf16.vlgmr.msra.gmra.mxu0 %vm57_vm1, %v40_v9 }
  0x87   :  { %v70_v11 = vpop.f32.mrf.mxu0 }
  0x88   :  { %v74_v12 = vadd.f32 %v70_v11, %v39_v10 }
  0x8a   :  { %76 = vst.msk [vmem:[#allocation2] sm:$0xff] %vm25_vm0, %v74_v12 }
  0x8f   :  { %v72_v13 = vpop.f32.mrf.mxu0 }
  0x91   :  { %v80_v14 = vld [vmem:[#allocation2] sm:$0xff] }
  0x92   :  { %v81_v15 = vpack.c.bf16 %v80_v14, %v80_v14  ;;  %v84_v16 = vsel %vm25_vm0, %v80_v14, 0.0  ;;  %v93_v17 = vmul.f32 %v80_v14, %v80_v14 }
  0x93   :  { %v85_v18 = vrot.slane %v84_v16, 4 }
  0x94   :  { %83 = vst.msk [vmem:[%s196_s4] sm:$0xf] %vm82_vm2, %v81_v15  ;;  %v94_v19 = vsel %vm25_vm0, %v93_v17, 0.0 }
  0x95   :  { %v86_v20 = vadd.f32 %v85_v18, %v84_v16  ;;  %v95_v21 = vrot.slane %v94_v19, 4 }
  0x97   :  { %v87_v22 = vrot.slane %v86_v20, 2  ;;  %v96_v23 = vadd.f32 %v95_v21, %v94_v19 }
  0x99   :  { %v88_v24 = vadd.f32 %v87_v22, %v86_v20  ;;  %v97_v25 = vrot.slane %v96_v23, 2 }
  0x9b   :  { %v89_v26 = vrot.slane %v88_v24, 1  ;;  %v98_v27 = vadd.f32 %v97_v25, %v96_v23 }
  0x9d   :  { %v90_v28 = vadd.f32 %v89_v26, %v88_v24  ;;  %v99_v29 = vrot.slane %v98_v27, 1 }
  0x9f   :  { %92 = vst.msk [vmem:[%s197_s5] sm:$0x1] %vm91_vm3, %v90_v28  ;;  %v100_v30 = vadd.f32 %v99_v29, %v98_v27 }
  0xa1   :  { %101 = vst.msk [vmem:[%s198_s6] sm:$0x1] %vm91_vm3, %v100_v30 }

// kernel: tile.107
= control target key start
LH: loop header
LB: loop body
LE: loop exit
PB: predicated region body
PF: predicated region fallthrough
CT: control target
= control target key end

     0   :  { %s22_s0 = inlined_call_operand.vmem [shape: f32[4], index: 0, kind: input, shape index: {}]   ;;  %s23_s1 = inlined_call_operand.vmem [shape: f32[4,4], index: 1, kind: output, shape index: {}]  }
   0x1   :  { %v4_v0 = vld [vmem:[%s22_s0] ss:$0 sm:$0xff] }
   0x2   :  { %5 = vst [vmem:[%s23_s1] sm:$0xf] %v4_v0 }

// kernel: tile.112
= control target key start
LH: loop header
LB: loop body
LE: loop exit
PB: predicated region body
PF: predicated region fallthrough
CT: control target
= control target key end

     0   :  { %s37_s8 = smov 4   ;;  %s38_s9 = smov 8   ;;  %vm7_vm0 = vcmask 31744   ;;  %vm13_vm1 = vcmask 130144   ;;  %vm19_vm2 = vcmask 97344   ;;  %vm25_vm3 = vcmask 64544   ;;  %s55_s0 = inlined_call_operand.vmem [shape: f32[4,4], index: 0, kind: input, shape index: {}]   ;;  %s56_s1 = inlined_call_operand.vmem [shape: f32[1,16], index: 1, kind: output, shape index: {}]  }
   0x1   :  { %v4_v0 = vld [vmem:[%s55_s0] sm:$0xf]  ;;  %s36_s0 = smov 12  }
   0x2   :  { %5 = vst [vmem:[#allocation1] sm:$0xf] %v4_v0 }
   0x9   :  { %v10_v1 = vld [vmem:[#allocation1 + $0x3] sm:$0x1]   ;;  %v22_v2 = vld [vmem:[#allocation1 + $0x1] sm:$0x1]   ;;  %v16_v3 = vld [vmem:[#allocation1 + $0x2] sm:$0x1]  }
   0xa   :  { %11 = vrot.lane.b32.xlu0 %v10_v1, %s36_s0  ;;  %23 = vrot.lane.b32.xlu1 %v22_v2, %s37_s8  ;;  %v6_v4 = vld [vmem:[#allocation1] sm:$0x1]  }
   0xb   :  { %8 = vst.msk [vmem:[#allocation0] sm:$0x1] %vm7_vm0, %v6_v4  }
  0x12   :  { %17 = vrot.lane.b32.xlu0 %v16_v3, %s38_s9 }
  0x7c   :  { %v12_v5 = vpop.permute.xlu0 %11   ;;  %v24_v6 = vpop.permute.xlu1 %23  }
  0x7d   :  { %14 = vst.msk [vmem:[#allocation0] sm:$0x1] %vm13_vm1, %v12_v5  }
  0x84   :  { %v18_v7 = vpop.permute.xlu0 %17  }
  0x85   :  { %20 = vst.msk [vmem:[#allocation0] sm:$0x1] %vm19_vm2, %v18_v7  }
  0x86   :  { %26 = vst.msk [vmem:[#allocation0] sm:$0x1] %vm25_vm3, %v24_v6  }
  0x8d   :  { %v29_v8 = vld [vmem:[#allocation0] sm:$0x1] }
  0x8e   :  { %32 = vst [vmem:[%s56_s1] sm:$0x1] %v29_v8 }

// kernel: wide_resnet_decoder_forward.14
= control target key start
LH: loop header
LB: loop body
LE: loop exit
PB: predicated region body
PF: predicated region fallthrough
CT: control target
= control target key end

     0   :  { %vm25_vm0 = vcmask 64512   ;;  %vm99_vm1 = vcmask 1041408   ;;  %v219_v1 = vmov 0.0   ;;  %vm92_vm6 = vcmask 293888   ;;  %s315_s1 = inlined_call_operand.vmem [shape: bf16[36,8], index: 1, kind: input, shape index: {}]   ;;  %s316_s0 = inlined_call_operand.vmem [shape: bf16[32,36], index: 0, kind: input, shape index: {}]   ;;  %s317_s2 = inlined_call_operand.vmem [shape: f32[1,36], index: 2, kind: input, shape index: {}]   ;;  %s318_s3 = inlined_call_operand.vmem [shape: f32[1,36], index: 3, kind: input, shape index: {}]   ;;  %s319_s4 = inlined_call_operand.vmem [shape: bf16[32,8], index: 4, kind: output, shape index: {0}]   ;;  %s320_s5 = inlined_call_operand.vmem [shape: f32[1,1,8], index: 5, kind: output, shape index: {1}]   ;;  %s321_s6 = inlined_call_operand.vmem [shape: f32[1,1,8], index: 6, kind: output, shape index: {2}]  }
   0x1   :  { %v76_v0 = vld [vmem:[%s315_s1 + $0x10] sm:$0x3]  ;;  %26 = vst.msk [vmem:[#allocation2] sm:$0xff] %vm25_vm0, %v219_v1  ;;  %v205_v3 = vld [vmem:[%s316_s0] sm:$0xff]   ;;  %v212_v8 = vld [vmem:[%s316_s0 + $0x8] sm:$0xff]   ;;  %vm142_vm7 = vcmask 60416  }
   0x2   :  { %v86_v2 = vunpack.c.l.b16 %v76_v0  ;;  %v217_v4 = vld [vmem:[%s317_s2] ss:$0 sm:$0xff]  ;;  %27 = vst.msk [vmem:[#allocation2 + $0x8] sm:$0xff] %vm25_vm0, %v219_v1  ;;  %v206_v5 = vunpack.c.l.bf16 %v205_v3  ;;  %v207_v6 = vunpack.c.h.bf16 %v205_v3  ;;  %v210_v10 = vunpack.c.l.bf16 %v212_v8  ;;  %v203_v17 = vld [vmem:[%s315_s1 + $0x8] sm:$0xff] }
   0x3   :  { %v218_v7 = vld [vmem:[%s318_s3] ss:$0 sm:$0xff]  ;;  %28 = vst.msk [vmem:[#allocation2 + $0x10] sm:$0xff] %vm25_vm0, %v219_v1  ;;  %v211_v11 = vunpack.c.h.bf16 %v212_v8  ;;  %vm160_vm8 = vcmask 57344  }
   0x4   :  { %v89_v9 = vpack.c.b16 %v86_v2, %v86_v2  ;;  %29 = vst.msk [vmem:[#allocation2 + $0x18] sm:$0xff] %vm25_vm0, %v219_v1  ;;  %v42_v12 = vmul.f32 %v217_v4, %v206_v5  ;;  %v43_v13 = vmul.f32 %v217_v4, %v207_v6  ;;  %v44_v15 = vmul.f32 %v217_v4, %v210_v10  ;;  %v202_v26 = vld [vmem:[%s315_s1] sm:$0xff] }
   0x5   :  { %v45_v16 = vmul.f32 %v217_v4, %v211_v11 }
   0x6   :  { %v101_v14 = vsel %vm99_vm1, %v89_v9, 0  ;;  %v50_v18 = vadd.f32 %v218_v7, %v42_v12  ;;  %v51_v19 = vadd.f32 %v218_v7, %v43_v13  ;;  %v52_v20 = vadd.f32 %v218_v7, %v44_v15 }
   0x7   :  { %108 = vmatpush.bf16.msra.mxu0 %v101_v14  ;;  %213 = vmatpush.bf16.msra.mxu1 %v101_v14  ;;  %v53_v21 = vadd.f32 %v218_v7, %v45_v16 }
   0x8   :  { %vm54_vm2 = vcmp.gt.f32.partialorder %v50_v18, 0.0  ;;  %vm55_vm3 = vcmp.gt.f32.partialorder %v51_v19, 0.0  ;;  %v58_v22 = vmul.f32 0.01, %v50_v18  ;;  %v59_v23 = vmul.f32 0.01, %v51_v19 }
   0x9   :  { %vm56_vm4 = vcmp.gt.f32.partialorder %v52_v20, 0.0  ;;  %vm57_vm5 = vcmp.gt.f32.partialorder %v53_v21, 0.0  ;;  %v60_v24 = vmul.f32 0.01, %v52_v20  ;;  %v61_v25 = vmul.f32 0.01, %v53_v21 }
   0xa   :  { %v62_v27 = vsel %vm54_vm2, %v50_v18, %v58_v22  ;;  %v63_v28 = vsel %vm55_vm3, %v51_v19, %v59_v23  ;;  %v66_v33 = vld [vmem:[#allocation2] sm:$0xff]  ;;  %v68_v34 = vld [vmem:[#allocation2 + $0x10] sm:$0xff]  ;;  %v67_v39 = vld [vmem:[#allocation2 + $0x8] sm:$0xff] }
   0xb   :  { %109 = vmatpush.bf16.msra.mxu0 %v203_v17  ;;  %214 = vmatpush.bf16.msra.mxu1 %v203_v17  ;;  %v64_v29 = vsel %vm56_vm4, %v52_v20, %v60_v24  ;;  %v65_v30 = vsel %vm57_vm5, %v53_v21, %v61_v25  ;;  %v70_v31 = vpack.c.bf16 %v63_v28, %v62_v27  ;;  %v69_v40 = vld [vmem:[#allocation2 + $0x18] sm:$0xff] }
   0xc   :  { %v71_v32 = vpack.c.bf16 %v65_v30, %v64_v29 }
   0xf   :  { %110 = vmatpush.bf16.msra.mxu0 %v202_v26  ;;  %215 = vmatpush.bf16.msra.mxu1 %v202_v26 }
  0x12   :  { %200 = vmatmul.msk.bf16.vlgmr.msra.gmra.mxu0 %vm92_vm6, %v70_v31  ;;  %201 = vmatmul.msk.bf16.vlgmr.msra.gmra.mxu1 %vm92_vm6, %v71_v32 }
  0x8f   :  { %v112_v35 = vpop.f32.mrf.mxu0  ;;  %v117_v36 = vpop.f32.mrf.mxu1 }
  0x90   :  { %v122_v37 = vadd.f32 %v112_v35, %v66_v33  ;;  %v124_v38 = vadd.f32 %v117_v36, %v68_v34 }
  0x92   :  { %127 = vst.msk [vmem:[#allocation2] sm:$0xff] %vm25_vm0, %v122_v37 }
  0x93   :  { %129 = vst.msk [vmem:[#allocation2 + $0x10] sm:$0xff] %vm25_vm0, %v124_v38 }
  0x97   :  { %v114_v41 = vpop.f32.mrf.mxu0  ;;  %v119_v42 = vpop.f32.mrf.mxu1 }
  0x98   :  { %v123_v43 = vadd.f32 %v114_v41, %v67_v39  ;;  %v125_v44 = vadd.f32 %v119_v42, %v69_v40 }
  0x99   :  { %v134_v45 = vld [vmem:[#allocation2] sm:$0xff] }
  0x9a   :  { %v138_v46 = vpack.c.bf16 %v134_v45, %v134_v45  ;;  %v136_v47 = vld [vmem:[#allocation2 + $0x10] sm:$0xff]  ;;  %128 = vst.msk [vmem:[#allocation2 + $0x8] sm:$0xff] %vm25_vm0, %v123_v43  ;;  %v162_v49 = vmul.f32 %v134_v45, %v134_v45  ;;  %v147_v50 = vsel %vm25_vm0, %v134_v45, 0.0 }
  0x9b   :  { %v140_v48 = vpack.c.bf16 %v136_v47, %v136_v47  ;;  %130 = vst.msk [vmem:[#allocation2 + $0x18] sm:$0xff] %vm25_vm0, %v125_v44  ;;  %v164_v52 = vmul.f32 %v136_v47, %v136_v47  ;;  %v150_v60 = vsel %vm25_vm0, %v136_v47, 0.0 }
  0x9c   :  { %143 = vst.msk [vmem:[%s319_s4] sm:$0xf] %vm142_vm7, %v138_v46  ;;  %v166_v59 = vsel %vm25_vm0, %v162_v49, 0.0 }
  0x9d   :  { %145 = vst.msk [vmem:[%s319_s4 + $0x8] sm:$0xf] %vm142_vm7, %v140_v48  ;;  %v169_v1 = vsel %vm25_vm0, %v164_v52, 0.0 }
  0xa1   :  { %v135_v51 = vld [vmem:[#allocation2 + $0x8] sm:$0xff] }
  0xa2   :  { %v139_v53 = vpack.c.bf16 %v135_v51, %v135_v51  ;;  %v148_v54 = vsel %vm25_vm0, %v135_v51, 0.0  ;;  %v163_v55 = vmul.f32 %v135_v51, %v135_v51  ;;  %v137_v56 = vld [vmem:[#allocation2 + $0x18] sm:$0xff] }
  0xa3   :  { %v149_v57 = vadd.f32 %v148_v54, %v147_v50  ;;  %v141_v58 = vpack.c.bf16 %v137_v56, %v137_v56  ;;  %v165_v62 = vmul.f32 %v137_v56, %v137_v56  ;;  %v152_v2 = vsel %vm25_vm0, %v137_v56, 0.0 }
  0xa4   :  { %144 = vst.msk [vmem:[%s319_s4 + $0x4] sm:$0xf] %vm142_vm7, %v139_v53  ;;  %v167_v61 = vsel %vm25_vm0, %v163_v55, 0.0 }
  0xa5   :  { %v168_v63 = vadd.f32 %v167_v61, %v166_v59  ;;  %146 = vst.msk [vmem:[%s319_s4 + $0xc] sm:$0xf] %vm142_vm7, %v141_v58  ;;  %v151_v0 = vadd.f32 %v150_v60, %v149_v57  ;;  %v171_v5 = vsel %vm25_vm0, %v165_v62, 0.0 }
  0xa7   :  { %v153_v3 = vadd.f32 %v152_v2, %v151_v0  ;;  %v170_v4 = vadd.f32 %v169_v1, %v168_v63 }
  0xa9   :  { %v154_v6 = vrot.slane %v153_v3, 4  ;;  %v172_v7 = vadd.f32 %v171_v5, %v170_v4 }
  0xab   :  { %v155_v8 = vadd.f32 %v154_v6, %v153_v3  ;;  %v173_v9 = vrot.slane %v172_v7, 4 }
  0xad   :  { %v156_v10 = vrot.slane %v155_v8, 2  ;;  %v174_v11 = vadd.f32 %v173_v9, %v172_v7 }
  0xaf   :  { %v157_v12 = vadd.f32 %v156_v10, %v155_v8  ;;  %v175_v13 = vrot.slane %v174_v11, 2 }
  0xb1   :  { %v158_v14 = vrot.slane %v157_v12, 1  ;;  %v176_v15 = vadd.f32 %v175_v13, %v174_v11 }
  0xb3   :  { %v159_v16 = vadd.f32 %v158_v14, %v157_v12  ;;  %v177_v17 = vrot.slane %v176_v15, 1 }
  0xb5   :  { %161 = vst.msk [vmem:[%s320_s5] sm:$0x1] %vm160_vm8, %v159_v16  ;;  %v178_v18 = vadd.f32 %v177_v17, %v176_v15 }
  0xb7   :  { %179 = vst.msk [vmem:[%s321_s6] sm:$0x1] %vm160_vm8, %v178_v18 }

// kernel: wide_resnet_decoder_forward.16
= control target key start
LH: loop header
LB: loop body
LE: loop exit
PB: predicated region body
PF: predicated region fallthrough
CT: control target
= control target key end

     0   :  { %vm30_vm1 = vcmask 125952   ;;  %s70_s0 = inlined_call_operand.vmem [shape: bf16[8,16], index: 0, kind: input, shape index: {}]   ;;  %s71_s1 = inlined_call_operand.vmem [shape: f32[1,16], index: 1, kind: input, shape index: {}]   ;;  %s72_s2 = inlined_call_operand.vmem [shape: f32[1,16], index: 2, kind: input, shape index: {}]   ;;  %s73_s3 = inlined_call_operand.vmem [shape: bf16[8,16], index: 3, kind: output, shape index: {}]  }
   0x1   :  { %v14_v0 = vld [vmem:[%s70_s0] sm:$0xf] }
   0x2   :  { %v36_v1 = vld [vmem:[%s71_s1] ss:$0 sm:$0xff]  ;;  %v15_v2 = vunpack.c.l.bf16 %v14_v0 }
   0x3   :  { %v37_v3 = vld [vmem:[%s72_s2] ss:$0 sm:$0xff] }
   0x4   :  { %v20_v4 = vmul.f32 %v36_v1, %v15_v2 }
   0x6   :  { %v25_v5 = vadd.f32 %v37_v3, %v20_v4 }
   0x8   :  { %vm26_vm0 = vcmp.gt.f32.partialorder %v25_v5, 0.0  ;;  %v27_v6 = vmul.f32 0.01, %v25_v5 }
   0xa   :  { %v28_v7 = vsel %vm26_vm0, %v25_v5, %v27_v6 }
   0xb   :  { %v29_v8 = vpack.c.bf16 %v28_v7, %v28_v7 }
   0xd   :  { %31 = vst.msk [vmem:[%s73_s3] sm:$0xf] %vm30_vm1, %v29_v8 }

// kernel: wide_resnet_decoder_forward.15
= control target key start
LH: loop header
LB: loop body
LE: loop exit
PB: predicated region body
PF: predicated region fallthrough
CT: control target
= control target key end

     0   :  { %vm34_vm0 = vcmask 31744   ;;  %v307_v1 = vmov 0.0   ;;  %vm124_vm1 = vcmask 1043456   ;;  %vm117_vm6 = vcmask 588800   ;;  %s435_s1 = inlined_call_operand.vmem [shape: bf16[72,4], index: 1, kind: input, shape index: {}]   ;;  %s436_s0 = inlined_call_operand.vmem [shape: bf16[32,72], index: 0, kind: input, shape index: {}]   ;;  %s437_s2 = inlined_call_operand.vmem [shape: f32[1,72], index: 2, kind: input, shape index: {}]   ;;  %s438_s3 = inlined_call_operand.vmem [shape: f32[1,72], index: 3, kind: input, shape index: {}]   ;;  %s439_s5 = inlined_call_operand.vmem [shape: f32[1,4], index: 5, kind: input, shape index: {}]   ;;  %s440_s6 = inlined_call_operand.vmem [shape: f32[1,4], index: 6, kind: input, shape index: {}]   ;;  %s441_s4 = inlined_call_operand.vmem [shape: bf16[32,4], index: 4, kind: input, shape index: {}]   ;;  %s442_s7 = inlined_call_operand.vmem [shape: bf16[32,4], index: 7, kind: output, shape index: {0}]   ;;  %s443_s8 = inlined_call_operand.vmem [shape: f32[1,1,4], index: 8, kind: output, shape index: {1}]   ;;  %s444_s9 = inlined_call_operand.vmem [shape: f32[1,1,4], index: 9, kind: output, shape index: {2}]  }
   0x1   :  { %v89_v0 = vld [vmem:[%s435_s1 + $0x20] sm:$0xf]  ;;  %35 = vst.msk [vmem:[#allocation2] sm:$0xff] %vm34_vm0, %v307_v1  ;;  %v295_v8 = vld [vmem:[%s436_s0 + $0x8] sm:$0xff]   ;;  %v278_v14 = vld [vmem:[%s435_s1 + $0x18] sm:$0xff]  ;;  %vm207_vm9 = vcmask 27648  }
   0x2   :  { %v107_v2 = vunpack.c.l.b16 %v89_v0  ;;  %v280_v3 = vld [vmem:[%s436_s0] sm:$0xff]   ;;  %36 = vst.msk [vmem:[#allocation2 + $0x8] sm:$0xff] %vm34_vm0, %v307_v1  ;;  %v285_v9 = vunpack.c.l.bf16 %v295_v8  ;;  %v286_v10 = vunpack.c.h.bf16 %v295_v8  ;;  %v277_v19 = vld [vmem:[%s435_s1 + $0x10] sm:$0xff]  ;;  %v276_v23 = vld [vmem:[%s435_s1 + $0x8] sm:$0xff]  ;;  %vm225_vm12 = vcmask 24576  }
   0x3   :  { %v281_v4 = vunpack.c.l.bf16 %v280_v3  ;;  %v282_v5 = vunpack.c.h.bf16 %v280_v3  ;;  %v303_v6 = vld [vmem:[%s437_s2] ss:$0 sm:$0xff]  ;;  %37 = vst.msk [vmem:[#allocation2 + $0x10] sm:$0xff] %vm34_vm0, %v307_v1  ;;  %v296_v36 = vld [vmem:[%s441_s4 + $0x8] sm:$0xff]  }
   0x4   :  { %v112_v7 = vpack.c.b16 %v107_v2, %v107_v2  ;;  %38 = vst.msk [vmem:[#allocation2 + $0x18] sm:$0xff] %vm34_vm0, %v307_v1  ;;  %v304_v13 = vld [vmem:[%s438_s3] ss:$0 sm:$0xff]  ;;  %v53_v16 = vmul.f32 %v303_v6, %v285_v9  ;;  %v54_v17 = vmul.f32 %v303_v6, %v286_v10  ;;  %v293_v39 = vunpack.c.l.bf16 %v296_v36 }
   0x5   :  { %v51_v12 = vmul.f32 %v303_v6, %v281_v4  ;;  %v52_v15 = vmul.f32 %v303_v6, %v282_v5  ;;  %v275_v29 = vld [vmem:[%s435_s1] sm:$0xff]  ;;  %v294_v52 = vunpack.c.h.bf16 %v296_v36 }
   0x6   :  { %v126_v11 = vsel %vm124_vm1, %v112_v7, 0  ;;  %v61_v21 = vadd.f32 %v304_v13, %v53_v16  ;;  %v62_v22 = vadd.f32 %v304_v13, %v54_v17  ;;  %v288_v35 = vld [vmem:[%s441_s4] sm:$0xff]  }
   0x7   :  { %131 = vmatpush.bf16.msra.mxu0 %v126_v11  ;;  %297 = vmatpush.bf16.msra.mxu1 %v126_v11  ;;  %v59_v18 = vadd.f32 %v304_v13, %v51_v12  ;;  %v60_v20 = vadd.f32 %v304_v13, %v52_v15  ;;  %v289_v37 = vunpack.c.l.bf16 %v288_v35  ;;  %v305_v38 = vld [vmem:[%s439_s5] ss:$0 sm:$0xff]  ;;  %v290_v48 = vunpack.c.h.bf16 %v288_v35 }
   0x8   :  { %v69_v26 = vmul.f32 0.01, %v61_v21  ;;  %v70_v27 = vmul.f32 0.01, %v62_v22  ;;  %vm65_vm4 = vcmp.gt.f32.partialorder %v61_v21, 0.0  ;;  %vm66_vm5 = vcmp.gt.f32.partialorder %v62_v22, 0.0 }
   0x9   :  { %vm63_vm2 = vcmp.gt.f32.partialorder %v59_v18, 0.0  ;;  %v67_v24 = vmul.f32 0.01, %v59_v18  ;;  %v68_v25 = vmul.f32 0.01, %v60_v20  ;;  %vm64_vm3 = vcmp.gt.f32.partialorder %v60_v20, 0.0 }
   0xa   :  { %v73_v31 = vsel %vm65_vm4, %v61_v21, %v69_v26  ;;  %v74_v32 = vsel %vm66_vm5, %v62_v22, %v70_v27  ;;  %v171_v40 = vmul.f32 %v305_v38, %v289_v37  ;;  %v306_v41 = vld [vmem:[%s440_s6] ss:$0 sm:$0xff]  ;;  %v173_v42 = vmul.f32 %v305_v38, %v293_v39  ;;  %v77_v44 = vld [vmem:[#allocation2 + $0x10] sm:$0xff]  ;;  %v76_v57 = vld [vmem:[#allocation2 + $0x8] sm:$0xff] }
   0xb   :  { %132 = vmatpush.bf16.msra.mxu0 %v278_v14  ;;  %298 = vmatpush.bf16.msra.mxu1 %v278_v14  ;;  %v71_v28 = vsel %vm63_vm2, %v59_v18, %v67_v24  ;;  %v72_v30 = vsel %vm64_vm3, %v60_v20, %v68_v25  ;;  %v80_v34 = vpack.c.bf16 %v74_v32, %v73_v31  ;;  %v75_v43 = vld [vmem:[#allocation2] sm:$0xff]  ;;  %v78_v58 = vld [vmem:[#allocation2 + $0x18] sm:$0xff] }
   0xc   :  { %v79_v33 = vpack.c.bf16 %v72_v30, %v71_v28  ;;  %v179_v46 = vadd.f32 %v306_v41, %v171_v40  ;;  %v181_v51 = vadd.f32 %v306_v41, %v173_v42  ;;  %v172_v54 = vmul.f32 %v305_v38, %v290_v48 }
   0xd   :  { %v174_v56 = vmul.f32 %v305_v38, %v294_v52 }
   0xe   :  { %v187_v53 = vmul.f32 0.01, %v179_v46  ;;  %vm183_vm7 = vcmp.gt.f32.partialorder %v179_v46, 0.0  ;;  %v189_v55 = vmul.f32 0.01, %v181_v51  ;;  %vm185_vm8 = vcmp.gt.f32.partialorder %v181_v51, 0.0 }
   0xf   :  { %133 = vmatpush.bf16.msra.mxu0 %v277_v19  ;;  %299 = vmatpush.bf16.msra.mxu1 %v277_v19  ;;  %v180_v61 = vadd.f32 %v306_v41, %v172_v54  ;;  %v182_v2 = vadd.f32 %v306_v41, %v174_v56 }
  0x10   :  { %v191_v59 = vsel %vm183_vm7, %v179_v46, %v187_v53  ;;  %v193_v63 = vsel %vm185_vm8, %v181_v51, %v189_v55 }
  0x11   :  { %v188_v7 = vmul.f32 0.01, %v180_v61  ;;  %vm184_vm10 = vcmp.gt.f32.partialorder %v180_v61, 0.0  ;;  %v190_v9 = vmul.f32 0.01, %v182_v2  ;;  %vm186_vm11 = vcmp.gt.f32.partialorder %v182_v2, 0.0 }
  0x13   :  { %134 = vmatpush.bf16.msra.mxu0 %v276_v23  ;;  %300 = vmatpush.bf16.msra.mxu1 %v276_v23  ;;  %v192_v11 = vsel %vm184_vm10, %v180_v61, %v188_v7  ;;  %v194_v12 = vsel %vm186_vm11, %v182_v2, %v190_v9 }
  0x17   :  { %135 = vmatpush.bf16.msra.mxu0 %v275_v29  ;;  %301 = vmatpush.bf16.msra.mxu1 %v275_v29 }
  0x1a   :  { %273 = vmatmul.msk.bf16.vlgmr.msra.gmra.mxu0 %vm117_vm6, %v79_v33  ;;  %274 = vmatmul.msk.bf16.vlgmr.msra.gmra.mxu1 %vm117_vm6, %v80_v34 }
  0x97   :  { %v137_v45 = vpop.f32.mrf.mxu0  ;;  %v142_v47 = vpop.f32.mrf.mxu1 }
  0x98   :  { %v147_v49 = vadd.f32 %v137_v45, %v75_v43  ;;  %v149_v50 = vadd.f32 %v142_v47, %v77_v44 }
  0x9a   :  { %152 = vst.msk [vmem:[#allocation2] sm:$0xff] %vm34_vm0, %v147_v49 }
  0x9b   :  { %154 = vst.msk [vmem:[#allocation2 + $0x10] sm:$0xff] %vm34_vm0, %v149_v50 }
  0x9f   :  { %v139_v60 = vpop.f32.mrf.mxu0  ;;  %v144_v62 = vpop.f32.mrf.mxu1 }
  0xa0   :  { %v148_v0 = vadd.f32 %v139_v60, %v76_v57  ;;  %v150_v1 = vadd.f32 %v144_v62, %v78_v58 }
  0xa1   :  { %v195_v3 = vld [vmem:[#allocation2] sm:$0xff] }
  0xa2   :  { %v199_v4 = vadd.f32 %v195_v3, %v191_v59  ;;  %v197_v5 = vld [vmem:[#allocation2 + $0x10] sm:$0xff]  ;;  %153 = vst.msk [vmem:[#allocation2 + $0x8] sm:$0xff] %vm34_vm0, %v148_v0 }
  0xa3   :  { %v201_v6 = vadd.f32 %v197_v5, %v193_v63  ;;  %155 = vst.msk [vmem:[#allocation2 + $0x18] sm:$0xff] %vm34_vm0, %v150_v1 }
  0xa4   :  { %v203_v8 = vpack.c.bf16 %v199_v4, %v199_v4  ;;  %v227_v14 = vmul.f32 %v199_v4, %v199_v4  ;;  %v212_v17 = vsel %vm34_vm0, %v199_v4, 0.0 }
  0xa5   :  { %v205_v10 = vpack.c.bf16 %v201_v6, %v201_v6  ;;  %v229_v19 = vmul.f32 %v201_v6, %v201_v6  ;;  %v215_v26 = vsel %vm34_vm0, %v201_v6, 0.0 }
  0xa6   :  { %208 = vst.msk [vmem:[%s442_s7] sm:$0xf] %vm207_vm9, %v203_v8  ;;  %v231_v25 = vsel %vm34_vm0, %v227_v14, 0.0 }
  0xa7   :  { %210 = vst.msk [vmem:[%s442_s7 + $0x8] sm:$0xf] %vm207_vm9, %v205_v10  ;;  %v234_v31 = vsel %vm34_vm0, %v229_v19, 0.0 }
  0xa9   :  { %v196_v13 = vld [vmem:[#allocation2 + $0x8] sm:$0xff] }
  0xaa   :  { %v200_v15 = vadd.f32 %v196_v13, %v192_v11  ;;  %v198_v16 = vld [vmem:[#allocation2 + $0x18] sm:$0xff] }
  0xab   :  { %v202_v18 = vadd.f32 %v198_v16, %v194_v12 }
  0xac   :  { %v204_v20 = vpack.c.bf16 %v200_v15, %v200_v15  ;;  %v213_v21 = vsel %vm34_vm0, %v200_v15, 0.0  ;;  %v228_v22 = vmul.f32 %v200_v15, %v200_v15 }
  0xad   :  { %v214_v23 = vadd.f32 %v213_v21, %v212_v17  ;;  %v206_v24 = vpack.c.bf16 %v202_v18, %v202_v18  ;;  %v230_v28 = vmul.f32 %v202_v18, %v202_v18  ;;  %v217_v32 = vsel %vm34_vm0, %v202_v18, 0.0 }
  0xae   :  { %209 = vst.msk [vmem:[%s442_s7 + $0x4] sm:$0xf] %vm207_vm9, %v204_v20  ;;  %v232_v27 = vsel %vm34_vm0, %v228_v22, 0.0 }
  0xaf   :  { %v233_v29 = vadd.f32 %v232_v27, %v231_v25  ;;  %211 = vst.msk [vmem:[%s442_s7 + $0xc] sm:$0xf] %vm207_vm9, %v206_v24  ;;  %v216_v30 = vadd.f32 %v215_v26, %v214_v23  ;;  %v236_v35 = vsel %vm34_vm0, %v230_v28, 0.0 }
  0xb1   :  { %v218_v33 = vadd.f32 %v217_v32, %v216_v30  ;;  %v235_v34 = vadd.f32 %v234_v31, %v233_v29 }
  0xb3   :  { %v219_v36 = vrot.slane %v218_v33, 4  ;;  %v237_v37 = vadd.f32 %v236_v35, %v235_v34 }
  0xb5   :  { %v220_v38 = vadd.f32 %v219_v36, %v218_v33  ;;  %v238_v39 = vrot.slane %v237_v37, 4 }
  0xb7   :  { %v221_v40 = vrot.slane %v220_v38, 2  ;;  %v239_v41 = vadd.f32 %v238_v39, %v237_v37 }
  0xb9   :  { %v222_v42 = vadd.f32 %v221_v40, %v220_v38  ;;  %v240_v43 = vrot.slane %v239_v41, 2 }
  0xbb   :  { %v223_v44 = vrot.slane %v222_v42, 1  ;;  %v241_v45 = vadd.f32 %v240_v43, %v239_v41 }
  0xbd   :  { %v224_v46 = vadd.f32 %v223_v44, %v222_v42  ;;  %v242_v47 = vrot.slane %v241_v45, 1 }
  0xbf   :  { %226 = vst.msk [vmem:[%s443_s8] sm:$0x1] %vm225_vm12, %v224_v46  ;;  %v243_v48 = vadd.f32 %v242_v47, %v241_v45 }
  0xc1   :  { %244 = vst.msk [vmem:[%s444_s9] sm:$0x1] %vm225_vm12, %v243_v48 }

// kernel: wide_resnet_decoder_forward.17
= control target key start
LH: loop header
LB: loop body
LE: loop exit
PB: predicated region body
PF: predicated region fallthrough
CT: control target
= control target key end

     0   :  { %vm25_vm0 = vcmask 64512   ;;  %v184_v2 = vmov 0.0   ;;  %vm68_vm1 = vcmask 130048   ;;  %vm114_vm2 = vcmask 60416   ;;  %s273_s1 = inlined_call_operand.vmem [shape: bf16[16,8], index: 1, kind: input, shape index: {}]   ;;  %s274_s0 = inlined_call_operand.vmem [shape: bf16[32,16], index: 0, kind: input, shape index: {}]   ;;  %s275_s2 = inlined_call_operand.vmem [shape: f32[1,16], index: 2, kind: input, shape index: {}]   ;;  %s276_s3 = inlined_call_operand.vmem [shape: f32[1,16], index: 3, kind: input, shape index: {}]   ;;  %s277_s4 = inlined_call_operand.vmem [shape: bf16[32,8], index: 4, kind: output, shape index: {0}]   ;;  %s278_s5 = inlined_call_operand.vmem [shape: f32[1,1,8], index: 5, kind: output, shape index: {1}]   ;;  %s279_s6 = inlined_call_operand.vmem [shape: f32[1,1,8], index: 6, kind: output, shape index: {2}]  }
   0x1   :  { %v170_v0 = vld [vmem:[%s273_s1] sm:$0xff]  ;;  %26 = vst.msk [vmem:[#allocation2] sm:$0xff] %vm25_vm0, %v184_v2  ;;  %v179_v7 = vld [vmem:[%s274_s0 + $0x8] sm:$0xff]   ;;  %vm132_vm3 = vcmask 57344  }
   0x2   :  { %v172_v1 = vld [vmem:[%s274_s0] sm:$0xff]   ;;  %82 = vmatpush.bf16.msra.mxu0 %v170_v0  ;;  %180 = vmatpush.bf16.msra.mxu1 %v170_v0  ;;  %27 = vst.msk [vmem:[#allocation2 + $0x8] sm:$0xff] %vm25_vm0, %v184_v2  ;;  %v177_v10 = vunpack.c.l.bf16 %v179_v7  ;;  %v178_v11 = vunpack.c.h.bf16 %v179_v7 }
   0x3   :  { %v173_v3 = vunpack.c.l.bf16 %v172_v1  ;;  %v174_v4 = vunpack.c.h.bf16 %v172_v1  ;;  %v182_v5 = vld [vmem:[%s275_s2] ss:$0 sm:$0xff]  ;;  %28 = vst.msk [vmem:[#allocation2 + $0x10] sm:$0xff] %vm25_vm0, %v184_v2 }
   0x4   :  { %v183_v6 = vld [vmem:[%s276_s3] ss:$0 sm:$0xff]  ;;  %29 = vst.msk [vmem:[#allocation2 + $0x18] sm:$0xff] %vm25_vm0, %v184_v2  ;;  %v44_v14 = vmul.f32 %v182_v5, %v177_v10  ;;  %v45_v15 = vmul.f32 %v182_v5, %v178_v11 }
   0x5   :  { %v42_v8 = vmul.f32 %v182_v5, %v173_v3  ;;  %v43_v9 = vmul.f32 %v182_v5, %v174_v4 }
   0x6   :  { %v52_v17 = vadd.f32 %v183_v6, %v44_v14  ;;  %v53_v18 = vadd.f32 %v183_v6, %v45_v15 }
   0x7   :  { %v50_v12 = vadd.f32 %v183_v6, %v42_v8  ;;  %v51_v13 = vadd.f32 %v183_v6, %v43_v9 }
   0x8   :  { %v59_v19 = vpack.c.bf16 %v53_v18, %v52_v17  ;;  %v54_v20 = vld [vmem:[#allocation2] sm:$0xff] }
   0x9   :  { %v58_v16 = vpack.c.bf16 %v51_v13, %v50_v12  ;;  %v55_v26 = vld [vmem:[#allocation2 + $0x8] sm:$0xff] }
   0xa   :  { %169 = vmatmul.msk.bf16.vlgmr.msra.gmra.mxu1 %vm68_vm1, %v59_v19  ;;  %v56_v22 = vld [vmem:[#allocation2 + $0x10] sm:$0xff] }
   0xb   :  { %168 = vmatmul.msk.bf16.vlgmr.msra.gmra.mxu0 %vm68_vm1, %v58_v16  ;;  %v57_v28 = vld [vmem:[#allocation2 + $0x18] sm:$0xff] }
  0x87   :  { %v89_v24 = vpop.f32.mrf.mxu1 }
  0x88   :  { %v84_v21 = vpop.f32.mrf.mxu0  ;;  %v96_v25 = vadd.f32 %v89_v24, %v56_v22 }
  0x89   :  { %v94_v23 = vadd.f32 %v84_v21, %v54_v20 }
  0x8a   :  { %101 = vst.msk [vmem:[#allocation2 + $0x10] sm:$0xff] %vm25_vm0, %v96_v25 }
  0x8b   :  { %99 = vst.msk [vmem:[#allocation2] sm:$0xff] %vm25_vm0, %v94_v23 }
  0x8f   :  { %v91_v31 = vpop.f32.mrf.mxu1 }
  0x90   :  { %v86_v27 = vpop.f32.mrf.mxu0  ;;  %v97_v33 = vadd.f32 %v91_v31, %v57_v28 }
  0x91   :  { %v95_v29 = vadd.f32 %v86_v27, %v55_v26  ;;  %v108_v34 = vld [vmem:[#allocation2 + $0x10] sm:$0xff] }
  0x92   :  { %v106_v30 = vld [vmem:[#allocation2] sm:$0xff]  ;;  %v112_v35 = vpack.c.bf16 %v108_v34, %v108_v34  ;;  %102 = vst.msk [vmem:[#allocation2 + $0x18] sm:$0xff] %vm25_vm0, %v97_v33  ;;  %v136_v39 = vmul.f32 %v108_v34, %v108_v34  ;;  %v122_v45 = vsel %vm25_vm0, %v108_v34, 0.0 }
  0x93   :  { %v110_v32 = vpack.c.bf16 %v106_v30, %v106_v30  ;;  %100 = vst.msk [vmem:[#allocation2 + $0x8] sm:$0xff] %vm25_vm0, %v95_v29  ;;  %v134_v36 = vmul.f32 %v106_v30, %v106_v30  ;;  %v119_v37 = vsel %vm25_vm0, %v106_v30, 0.0 }
  0x94   :  { %117 = vst.msk [vmem:[%s277_s4 + $0x8] sm:$0xf] %vm114_vm2, %v112_v35  ;;  %v141_v51 = vsel %vm25_vm0, %v136_v39, 0.0 }
  0x95   :  { %115 = vst.msk [vmem:[%s277_s4] sm:$0xf] %vm114_vm2, %v110_v32  ;;  %v138_v44 = vsel %vm25_vm0, %v134_v36, 0.0 }
  0x99   :  { %v109_v47 = vld [vmem:[#allocation2 + $0x18] sm:$0xff] }
  0x9a   :  { %v107_v38 = vld [vmem:[#allocation2 + $0x8] sm:$0xff]  ;;  %v113_v49 = vpack.c.bf16 %v109_v47, %v109_v47  ;;  %v124_v52 = vsel %vm25_vm0, %v109_v47, 0.0  ;;  %v137_v53 = vmul.f32 %v109_v47, %v109_v47 }
  0x9b   :  { %v111_v40 = vpack.c.bf16 %v107_v38, %v107_v38  ;;  %v120_v41 = vsel %vm25_vm0, %v107_v38, 0.0  ;;  %v135_v42 = vmul.f32 %v107_v38, %v107_v38 }
  0x9c   :  { %v121_v43 = vadd.f32 %v120_v41, %v119_v37  ;;  %118 = vst.msk [vmem:[%s277_s4 + $0xc] sm:$0xf] %vm114_vm2, %v113_v49  ;;  %v143_v56 = vsel %vm25_vm0, %v137_v53, 0.0 }
  0x9d   :  { %116 = vst.msk [vmem:[%s277_s4 + $0x4] sm:$0xf] %vm114_vm2, %v111_v40  ;;  %v139_v46 = vsel %vm25_vm0, %v135_v42, 0.0 }
  0x9e   :  { %v140_v48 = vadd.f32 %v139_v46, %v138_v44  ;;  %v123_v50 = vadd.f32 %v122_v45, %v121_v43 }
  0xa0   :  { %v125_v54 = vadd.f32 %v124_v52, %v123_v50  ;;  %v142_v55 = vadd.f32 %v141_v51, %v140_v48 }
  0xa2   :  { %v126_v57 = vrot.slane %v125_v54, 4  ;;  %v144_v58 = vadd.f32 %v143_v56, %v142_v55 }
  0xa4   :  { %v127_v59 = vadd.f32 %v126_v57, %v125_v54  ;;  %v145_v60 = vrot.slane %v144_v58, 4 }
  0xa6   :  { %v128_v61 = vrot.slane %v127_v59, 2  ;;  %v146_v62 = vadd.f32 %v145_v60, %v144_v58 }
  0xa8   :  { %v129_v63 = vadd.f32 %v128_v61, %v127_v59  ;;  %v147_v0 = vrot.slane %v146_v62, 2 }
  0xaa   :  { %v130_v1 = vrot.slane %v129_v63, 1  ;;  %v148_v2 = vadd.f32 %v147_v0, %v146_v62 }
  0xac   :  { %v131_v3 = vadd.f32 %v130_v1, %v129_v63  ;;  %v149_v4 = vrot.slane %v148_v2, 1 }
  0xae   :  { %133 = vst.msk [vmem:[%s278_s5] sm:$0x1] %vm132_vm3, %v131_v3  ;;  %v150_v5 = vadd.f32 %v149_v4, %v148_v2 }
  0xb0   :  { %151 = vst.msk [vmem:[%s279_s6] sm:$0x1] %vm132_vm3, %v150_v5 }

// kernel: tile.117
= control target key start
LH: loop header
LB: loop body
LE: loop exit
PB: predicated region body
PF: predicated region fallthrough
CT: control target
= control target key end

     0   :  { %s22_s0 = inlined_call_operand.vmem [shape: f32[3], index: 0, kind: input, shape index: {}]   ;;  %s23_s1 = inlined_call_operand.vmem [shape: f32[8,3], index: 1, kind: output, shape index: {}]  }
   0x1   :  { %v4_v0 = vld [vmem:[%s22_s0] ss:$0 sm:$0xff] }
   0x2   :  { %5 = vst [vmem:[%s23_s1] sm:$0xff] %v4_v0 }

// kernel: tile.122
= control target key start
LH: loop header
LB: loop body
LE: loop exit
PB: predicated region body
PF: predicated region fallthrough
CT: control target
= control target key end

     0   :  { %s67_s10 = smov 21   ;;  %s68_s11 = smov 15   ;;  %vm3_vm0 = vcmask 23552   ;;  %vm9_vm1 = vcmask 195752   ;;  %vm15_vm2 = vcmask 171152   ;;  %vm21_vm3 = vcmask 146552   ;;  %s111_s0 = inlined_call_operand.vmem [shape: f32[8,3], index: 0, kind: input, shape index: {}]   ;;  %s112_s1 = inlined_call_operand.vmem [shape: f32[1,24], index: 1, kind: output, shape index: {}]  }
   0x1   :  { %v53_v0 = vld [vmem:[%s111_s0 + $0x7] sm:$0x1]   ;;  %v55_v1 = vld [vmem:[%s111_s0 + $0x5] sm:$0x1]   ;;  %v57_v2 = vld [vmem:[%s111_s0 + $0x3] sm:$0x1]  }
   0x2   :  { %7 = vrot.lane.b32.xlu0 %v53_v0, %s67_s10  ;;  %19 = vrot.lane.b32.xlu1 %v55_v1, %s68_s11  ;;  %s69_s14 = smov 9   ;;  %v54_v3 = vld [vmem:[%s111_s0 + $0x6] sm:$0x1]   ;;  %v56_v4 = vld [vmem:[%s111_s0 + $0x4] sm:$0x1]   ;;  %s70_s21 = smov 18  }
   0x3   :  { %31 = vrot.lane.b32.xlu2 %v57_v2, %s69_s14  ;;  %v58_v5 = vld [vmem:[%s111_s0 + $0x2] sm:$0x1]   ;;  %s71_s22 = smov 12   ;;  %s72_s23 = smov 6   ;;  %v59_v6 = vld [vmem:[%s111_s0 + $0x1] sm:$0x1]  }
   0x4   :  { %s73_s26 = smov 3   ;;  %v2_v7 = vld [vmem:[%s111_s0] sm:$0x1]   ;;  %vm27_vm4 = vcmask 121952   ;;  %vm33_vm5 = vcmask 97352   ;;  %vm39_vm6 = vcmask 72752  }
   0x5   :  { %4 = vst.msk [vmem:[#allocation0] sm:$0x1] %vm3_vm0, %v2_v7   ;;  %vm45_vm7 = vcmask 48152  }
   0xa   :  { %13 = vrot.lane.b32.xlu0 %v54_v3, %s70_s21  ;;  %25 = vrot.lane.b32.xlu1 %v56_v4, %s71_s22 }
   0xb   :  { %37 = vrot.lane.b32.xlu2 %v58_v5, %s72_s23 }
  0x12   :  { %43 = vrot.lane.b32.xlu0 %v59_v6, %s73_s26 }
  0x5d   :  { %v32_v8 = vpop.permute.xlu2 %31  }
  0x65   :  { %v38_v9 = vpop.permute.xlu2 %37  }
  0x74   :  { %v8_v10 = vpop.permute.xlu0 %7   ;;  %v20_v11 = vpop.permute.xlu1 %19  }
  0x75   :  { %10 = vst.msk [vmem:[#allocation0] sm:$0x1] %vm9_vm1, %v8_v10  }
  0x7c   :  { %v14_v12 = vpop.permute.xlu0 %13   ;;  %v26_v13 = vpop.permute.xlu1 %25  }
  0x7d   :  { %16 = vst.msk [vmem:[#allocation0] sm:$0x1] %vm15_vm2, %v14_v12  }
  0x7e   :  { %22 = vst.msk [vmem:[#allocation0] sm:$0x1] %vm21_vm3, %v20_v11  }
  0x7f   :  { %28 = vst.msk [vmem:[#allocation0] sm:$0x1] %vm27_vm4, %v26_v13  }
  0x80   :  { %34 = vst.msk [vmem:[#allocation0] sm:$0x1] %vm33_vm5, %v32_v8  }
  0x81   :  { %40 = vst.msk [vmem:[#allocation0] sm:$0x1] %vm39_vm6, %v38_v9  }
  0x84   :  { %v44_v14 = vpop.permute.xlu0 %43  }
  0x85   :  { %46 = vst.msk [vmem:[#allocation0] sm:$0x1] %vm45_vm7, %v44_v14  }
  0x8c   :  { %v49_v15 = vld [vmem:[#allocation0] sm:$0x1] }
  0x8d   :  { %52 = vst [vmem:[%s112_s1] sm:$0x1] %v49_v15 }

// kernel: wide_resnet_decoder_forward.19
= control target key start
LH: loop header
LB: loop body
LE: loop exit
PB: predicated region body
PF: predicated region fallthrough
CT: control target
= control target key end

     0   :  { %vm32_vm0 = vcmask 195584   ;;  %s84_s0 = inlined_call_operand.vmem [shape: bf16[16,24], index: 0, kind: input, shape index: {}]   ;;  %s85_s1 = inlined_call_operand.vmem [shape: f32[1,24], index: 1, kind: input, shape index: {}]   ;;  %s86_s2 = inlined_call_operand.vmem [shape: f32[1,24], index: 2, kind: input, shape index: {}]   ;;  %s87_s3 = inlined_call_operand.vmem [shape: f32[16,24], index: 3, kind: output, shape index: {}]  }
   0x1   :  { %v40_v0 = vld [vmem:[%s84_s0] sm:$0xff]  }
   0x2   :  { %v43_v1 = vld [vmem:[%s85_s1] ss:$0 sm:$0xff]  ;;  %v41_v2 = vunpack.c.l.bf16 %v40_v0  ;;  %v42_v4 = vunpack.c.h.bf16 %v40_v0 }
   0x3   :  { %v44_v3 = vld [vmem:[%s86_s2] ss:$0 sm:$0xff] }
   0x4   :  { %v22_v5 = vmul.f32 %v43_v1, %v41_v2  ;;  %v23_v6 = vmul.f32 %v43_v1, %v42_v4 }
   0x6   :  { %v28_v7 = vadd.f32 %v44_v3, %v22_v5  ;;  %v29_v8 = vadd.f32 %v44_v3, %v23_v6 }
   0x8   :  { %45 = vtanh.f32 %v28_v7 }
   0x9   :  { %47 = vtanh.f32 %v29_v8 }
   0xe   :  { %v46_v9 = vpop.eup %45 }
   0xf   :  { %v48_v10 = vpop.eup %47  ;;  %33 = vst.msk [vmem:[%s87_s3] sm:$0xff] %vm32_vm0, %v46_v9 }
  0x10   :  { %34 = vst.msk [vmem:[%s87_s3 + $0x8] sm:$0xff] %vm32_vm0, %v48_v10 }

// kernel: wide_resnet_decoder_forward.18
= control target key start
LH: loop header
LB: loop body
LE: loop exit
PB: predicated region body
PF: predicated region fallthrough
CT: control target
= control target key end

     0   :  { %vm212_vm0 = vcmask 1040384   ;;  %vm187_vm1 = vcmask 15360   ;;  %s811_s1 = inlined_call_operand.vmem [shape: bf16[2,3], index: 1, kind: input, shape index: {}]   ;;  %s812_s0 = inlined_call_operand.vmem [shape: bf16[128,2], index: 0, kind: input, shape index: {}]   ;;  %s813_s2 = inlined_call_operand.vmem [shape: f32[1,2], index: 2, kind: input, shape index: {}]   ;;  %s814_s3 = inlined_call_operand.vmem [shape: f32[1,2], index: 3, kind: input, shape index: {}]   ;;  %s815_s4 = inlined_call_operand.vmem [shape: bf16[128,3], index: 4, kind: output, shape index: {0}]   ;;  %s816_s5 = inlined_call_operand.vmem [shape: f32[1,1,3], index: 5, kind: output, shape index: {1}]   ;;  %s817_s6 = inlined_call_operand.vmem [shape: f32[1,1,3], index: 6, kind: output, shape index: {2}]  }
   0x1   :  { %v186_v0 = vld [vmem:[%s811_s1] sm:$0x1]  ;;  %v496_v6 = vld [vmem:[%s812_s0 + $0x10] sm:$0xff]   ;;  %v495_v40 = vld [vmem:[%s812_s0 + $0x8] sm:$0xff]  }
   0x2   :  { %v464_v1 = vld [vmem:[%s812_s0] sm:$0xff]   ;;  %v214_v2 = vsel %vm212_vm0, %v186_v0, 0  ;;  %v473_v8 = vunpack.c.l.bf16 %v496_v6  ;;  %v474_v9 = vunpack.c.h.bf16 %v496_v6  ;;  %v500_v11 = vld [vmem:[%s812_s0 + $0x30] sm:$0xff]   ;;  %v497_v41 = vld [vmem:[%s812_s0 + $0x18] sm:$0xff]   ;;  %v469_v48 = vunpack.c.l.bf16 %v495_v40 }
   0x3   :  { %v465_v3 = vunpack.c.l.bf16 %v464_v1  ;;  %v466_v4 = vunpack.c.h.bf16 %v464_v1  ;;  %v553_v5 = vld [vmem:[%s813_s2] ss:$0 sm:$0xff]  ;;  %223 = vmatpush.bf16.msra.mxu0 %v214_v2  ;;  %502 = vmatpush.bf16.msra.mxu1 %v214_v2  ;;  %v489_v18 = vunpack.c.l.bf16 %v500_v11  ;;  %v490_v19 = vunpack.c.h.bf16 %v500_v11  ;;  %v499_v51 = vld [vmem:[%s812_s0 + $0x28] sm:$0xff]   ;;  %v501_v59 = vld [vmem:[%s812_s0 + $0x38] sm:$0xff]  }
   0x4   :  { %v561_v7 = vld [vmem:[%s814_s3] ss:$0 sm:$0xff]  ;;  %503 = vmatpush.bf16.msra.mxu2 %v214_v2  ;;  %504 = vmatpush.bf16.msra.mxu3 %v214_v2  ;;  %v82_v16 = vmul.f32 %v553_v5, %v473_v8  ;;  %v83_v17 = vmul.f32 %v553_v5, %v474_v9  ;;  %v470_v49 = vunpack.c.h.bf16 %v495_v40  ;;  %v477_v50 = vunpack.c.l.bf16 %v497_v41 }
   0x5   :  { %v498_v10 = vld [vmem:[%s812_s0 + $0x20] sm:$0xff]   ;;  %v78_v12 = vmul.f32 %v553_v5, %v465_v3  ;;  %v79_v13 = vmul.f32 %v553_v5, %v466_v4  ;;  %v90_v26 = vmul.f32 %v553_v5, %v489_v18  ;;  %v91_v27 = vmul.f32 %v553_v5, %v490_v19 }
   0x6   :  { %v481_v14 = vunpack.c.l.bf16 %v498_v10  ;;  %v482_v15 = vunpack.c.h.bf16 %v498_v10  ;;  %v102_v24 = vadd.f32 %v561_v7, %v82_v16  ;;  %v103_v25 = vadd.f32 %v561_v7, %v83_v17 }
   0x7   :  { %v98_v20 = vadd.f32 %v561_v7, %v78_v12  ;;  %v99_v21 = vadd.f32 %v561_v7, %v79_v13  ;;  %v110_v39 = vadd.f32 %v561_v7, %v90_v26  ;;  %v111_v45 = vadd.f32 %v561_v7, %v91_v27 }
   0x8   :  { %v86_v22 = vmul.f32 %v553_v5, %v481_v14  ;;  %v87_v23 = vmul.f32 %v553_v5, %v482_v15  ;;  %vm118_vm4 = vcmp.gt.f32.partialorder %v102_v24, 0.0  ;;  %vm119_vm5 = vcmp.gt.f32.partialorder %v103_v25, 0.0 }
   0x9   :  { %vm114_vm2 = vcmp.gt.f32.partialorder %v98_v20, 0.0  ;;  %vm115_vm3 = vcmp.gt.f32.partialorder %v99_v21, 0.0  ;;  %v130_v28 = vmul.f32 0.01, %v98_v20  ;;  %v131_v29 = vmul.f32 0.01, %v99_v21 }
   0xa   :  { %v134_v30 = vmul.f32 0.01, %v102_v24  ;;  %v135_v31 = vmul.f32 0.01, %v103_v25  ;;  %v106_v34 = vadd.f32 %v561_v7, %v86_v22  ;;  %v107_v35 = vadd.f32 %v561_v7, %v87_v23 }
   0xb   :  { %v146_v32 = vsel %vm114_vm2, %v98_v20, %v130_v28  ;;  %v147_v33 = vsel %vm115_vm3, %v99_v21, %v131_v29  ;;  %vm126_vm8 = vcmp.gt.f32.partialorder %v110_v39, 0.0  ;;  %v142_v46 = vmul.f32 0.01, %v110_v39 }
   0xc   :  { %v178_v36 = vpack.c.bf16 %v147_v33, %v146_v32  ;;  %v150_v37 = vsel %vm118_vm4, %v102_v24, %v134_v30  ;;  %v151_v38 = vsel %vm119_vm5, %v103_v25, %v135_v31  ;;  %vm122_vm6 = vcmp.gt.f32.partialorder %v106_v34, 0.0 }
   0xd   :  { %v180_v42 = vpack.c.bf16 %v151_v38, %v150_v37  ;;  %vm123_vm7 = vcmp.gt.f32.partialorder %v107_v35, 0.0  ;;  %v138_v43 = vmul.f32 0.01, %v106_v34  ;;  %v139_v44 = vmul.f32 0.01, %v107_v35 }
   0xe   :  { %455 = vmatmul.msk.bf16.vlgmr.msra.gmra.mxu0 %vm187_vm1, %v178_v36  ;;  %vm127_vm9 = vcmp.gt.f32.partialorder %v111_v45, 0.0  ;;  %v143_v53 = vmul.f32 0.01, %v111_v45  ;;  %v158_v54 = vsel %vm126_vm8, %v110_v39, %v142_v46  ;;  %v80_v56 = vmul.f32 %v553_v5, %v469_v48 }
   0xf   :  { %457 = vmatmul.msk.bf16.vlgmr.msra.gmra.mxu1 %vm187_vm1, %v180_v42  ;;  %v154_v47 = vsel %vm122_vm6, %v106_v34, %v138_v43  ;;  %v155_v52 = vsel %vm123_vm7, %v107_v35, %v139_v44  ;;  %v81_v57 = vmul.f32 %v553_v5, %v470_v49  ;;  %v478_v58 = vunpack.c.h.bf16 %v497_v41 }
  0x10   :  { %v182_v55 = vpack.c.bf16 %v155_v52, %v154_v47  ;;  %v159_v60 = vsel %vm127_vm9, %v111_v45, %v143_v53  ;;  %v84_v61 = vmul.f32 %v553_v5, %v477_v50  ;;  %v485_v62 = vunpack.c.l.bf16 %v499_v51 }
  0x11   :  { %v486_v63 = vunpack.c.h.bf16 %v499_v51  ;;  %v184_v0 = vpack.c.bf16 %v159_v60, %v158_v54  ;;  %v100_v1 = vadd.f32 %v561_v7, %v80_v56  ;;  %v101_v2 = vadd.f32 %v561_v7, %v81_v57 }
  0x12   :  { %459 = vmatmul.msk.bf16.vlgmr.msra.gmra.mxu2 %vm187_vm1, %v182_v55  ;;  %v85_v3 = vmul.f32 %v553_v5, %v478_v58  ;;  %v104_v4 = vadd.f32 %v561_v7, %v84_v61  ;;  %v88_v6 = vmul.f32 %v553_v5, %v485_v62  ;;  %v493_v9 = vunpack.c.l.bf16 %v501_v59 }
  0x13   :  { %v89_v8 = vmul.f32 %v553_v5, %v486_v63  ;;  %461 = vmatmul.msk.bf16.vlgmr.msra.gmra.mxu3 %vm187_vm1, %v184_v0  ;;  %vm116_vm10 = vcmp.gt.f32.partialorder %v100_v1, 0.0  ;;  %vm117_vm11 = vcmp.gt.f32.partialorder %v101_v2, 0.0  ;;  %v132_v10 = vmul.f32 0.01, %v100_v1 }
  0x14   :  { %v133_v11 = vmul.f32 0.01, %v101_v2  ;;  %v105_v12 = vadd.f32 %v561_v7, %v85_v3  ;;  %vm120_vm12 = vcmp.gt.f32.partialorder %v104_v4, 0.0  ;;  %v136_v13 = vmul.f32 0.01, %v104_v4 }
  0x15   :  { %v108_v14 = vadd.f32 %v561_v7, %v88_v6  ;;  %v148_v15 = vsel %vm116_vm10, %v100_v1, %v132_v10  ;;  %v109_v17 = vadd.f32 %v561_v7, %v89_v8  ;;  %v494_v18 = vunpack.c.h.bf16 %v501_v59 }
  0x16   :  { %v149_v16 = vsel %vm117_vm11, %v101_v2, %v133_v11  ;;  %vm121_vm13 = vcmp.gt.f32.partialorder %v105_v12, 0.0  ;;  %v137_v20 = vmul.f32 0.01, %v105_v12  ;;  %v152_v21 = vsel %vm120_vm12, %v104_v4, %v136_v13 }
  0x17   :  { %v179_v19 = vpack.c.bf16 %v149_v16, %v148_v15  ;;  %vm124_vm14 = vcmp.gt.f32.partialorder %v108_v14, 0.0  ;;  %vm125_vm15 = vcmp.gt.f32.partialorder %v109_v17, 0.0  ;;  %v140_v22 = vmul.f32 0.01, %v108_v14 }
  0x18   :  { %v141_v23 = vmul.f32 0.01, %v109_v17  ;;  %v153_v24 = vsel %vm121_vm13, %v105_v12, %v137_v20  ;;  %v92_v25 = vmul.f32 %v553_v5, %v493_v9  ;;  %v93_v26 = vmul.f32 %v553_v5, %v494_v18 }
  0x19   :  { %vm25_vm0 = vcmask 23552   ;;  %v181_v27 = vpack.c.bf16 %v153_v24, %v152_v21  ;;  %v156_v28 = vsel %vm124_vm14, %v108_v14, %v140_v22  ;;  %v508_v32 = vmov 0.0  }
  0x1a   :  { %v157_v29 = vsel %vm125_vm15, %v109_v17, %v141_v23  ;;  %v112_v30 = vadd.f32 %v561_v7, %v92_v25  ;;  %v113_v31 = vadd.f32 %v561_v7, %v93_v26  ;;  %26 = vst.msk [vmem:[#allocation2] sm:$0xff] %vm25_vm0, %v508_v32  ;;  %vm387_vm4 = vcmask 16384  }
  0x1b   :  { %27 = vst.msk [vmem:[#allocation2 + $0x8] sm:$0xff] %vm25_vm0, %v508_v32  ;;  %v183_v5 = vpack.c.bf16 %v157_v29, %v156_v28 }
  0x1c   :  { %vm128_vm2 = vcmp.gt.f32.partialorder %v112_v30, 0.0  ;;  %vm129_vm3 = vcmp.gt.f32.partialorder %v113_v31, 0.0  ;;  %v144_v33 = vmul.f32 0.01, %v112_v30  ;;  %v145_v34 = vmul.f32 0.01, %v113_v31 }
  0x1d   :  { %28 = vst.msk [vmem:[#allocation2 + $0x10] sm:$0xff] %vm25_vm0, %v508_v32 }
  0x1e   :  { %456 = vmatmul.msk.bf16.gmra.mxu0 %vm187_vm1, %v179_v19  ;;  %v160_v35 = vsel %vm128_vm2, %v112_v30, %v144_v33  ;;  %v161_v36 = vsel %vm129_vm3, %v113_v31, %v145_v34  ;;  %29 = vst.msk [vmem:[#allocation2 + $0x18] sm:$0xff] %vm25_vm0, %v508_v32 }
  0x1f   :  { %458 = vmatmul.msk.bf16.gmra.mxu1 %vm187_vm1, %v181_v27  ;;  %v185_v7 = vpack.c.bf16 %v161_v36, %v160_v35  ;;  %30 = vst.msk [vmem:[#allocation2 + $0x20] sm:$0xff] %vm25_vm0, %v508_v32 }
  0x20   :  { %31 = vst.msk [vmem:[#allocation2 + $0x28] sm:$0xff] %vm25_vm0, %v508_v32 }
  0x21   :  { %32 = vst.msk [vmem:[#allocation2 + $0x30] sm:$0xff] %vm25_vm0, %v508_v32  ;;  %v162_v37 = vld [vmem:[#allocation2] sm:$0xff] }
  0x22   :  { %460 = vmatmul.msk.bf16.gmra.mxu2 %vm187_vm1, %v183_v5  ;;  %33 = vst.msk [vmem:[#allocation2 + $0x38] sm:$0xff] %vm25_vm0, %v508_v32  ;;  %v163_v43 = vld [vmem:[#allocation2 + $0x8] sm:$0xff] }
  0x23   :  { %462 = vmatmul.msk.bf16.gmra.mxu3 %vm187_vm1, %v185_v7  ;;  %34 = vst.msk [vmem:[#allocation2 + $0x40] sm:$0xff] %vm25_vm0, %v508_v32  ;;  %vm333_vm1 = vcmask 19456  }
  0x24   :  { %35 = vst.msk [vmem:[#allocation2 + $0x48] sm:$0xff] %vm25_vm0, %v508_v32  ;;  %v164_v58 = vld [vmem:[#allocation2 + $0x10] sm:$0xff] }
  0x25   :  { %36 = vst.msk [vmem:[#allocation2 + $0x50] sm:$0xff] %vm25_vm0, %v508_v32  ;;  %v165_v13 = vld [vmem:[#allocation2 + $0x18] sm:$0xff] }
  0x26   :  { %37 = vst.msk [vmem:[#allocation2 + $0x58] sm:$0xff] %vm25_vm0, %v508_v32  ;;  %v166_v38 = vld [vmem:[#allocation2 + $0x20] sm:$0xff] }
  0x27   :  { %38 = vst.msk [vmem:[#allocation2 + $0x60] sm:$0xff] %vm25_vm0, %v508_v32  ;;  %v167_v44 = vld [vmem:[#allocation2 + $0x28] sm:$0xff] }
  0x28   :  { %39 = vst.msk [vmem:[#allocation2 + $0x68] sm:$0xff] %vm25_vm0, %v508_v32  ;;  %v168_v60 = vld [vmem:[#allocation2 + $0x30] sm:$0xff] }
  0x29   :  { %40 = vst.msk [vmem:[#allocation2 + $0x70] sm:$0xff] %vm25_vm0, %v508_v32  ;;  %v169_v17 = vld [vmem:[#allocation2 + $0x38] sm:$0xff] }
  0x2a   :  { %41 = vst.msk [vmem:[#allocation2 + $0x78] sm:$0xff] %vm25_vm0, %v508_v32  ;;  %v170_v48 = vld [vmem:[#allocation2 + $0x40] sm:$0xff] }
  0x2b   :  { %v171_v2 = vld [vmem:[#allocation2 + $0x48] sm:$0xff] }
  0x2c   :  { %v172_v24 = vld [vmem:[#allocation2 + $0x50] sm:$0xff] }
  0x2e   :  { %v174_v54 = vld [vmem:[#allocation2 + $0x60] sm:$0xff] }
  0x2f   :  { %v175_v8 = vld [vmem:[#allocation2 + $0x68] sm:$0xff] }
  0x30   :  { %v176_v29 = vld [vmem:[#allocation2 + $0x70] sm:$0xff] }
  0x8b   :  { %v225_v39 = vpop.f32.mrf.mxu0 }
  0x8c   :  { %v265_v40 = vadd.f32 %v225_v39, %v162_v37  ;;  %v235_v41 = vpop.f32.mrf.mxu1 }
  0x8d   :  { %v269_v42 = vadd.f32 %v235_v41, %v166_v38 }
  0x8e   :  { %282 = vst.msk [vmem:[#allocation2] sm:$0xff] %vm25_vm0, %v265_v40 }
  0x8f   :  { %286 = vst.msk [vmem:[#allocation2 + $0x20] sm:$0xff] %vm25_vm0, %v269_v42 }
  0x93   :  { %v227_v45 = vpop.f32.mrf.mxu0 }
  0x94   :  { %v266_v46 = vadd.f32 %v227_v45, %v163_v43  ;;  %v237_v47 = vpop.f32.mrf.mxu1 }
  0x95   :  { %v639_v49 = vld [vmem:[#allocation2] sm:$0xff]  ;;  %v270_v50 = vadd.f32 %v237_v47, %v167_v44  ;;  %v245_v53 = vpop.f32.mrf.mxu2 }
  0x96   :  { %v317_v51 = vpack.c.bf16 %v639_v49, %v639_v49  ;;  %v643_v52 = vld [vmem:[#allocation2 + $0x20] sm:$0xff]  ;;  %283 = vst.msk [vmem:[#allocation2 + $0x8] sm:$0xff] %vm25_vm0, %v266_v46  ;;  %v273_v56 = vadd.f32 %v245_v53, %v170_v48  ;;  %v255_v57 = vpop.f32.mrf.mxu3  ;;  %v389_v31 = vmul.f32 %v639_v49, %v639_v49  ;;  %v350_v7 = vsel %vm25_vm0, %v639_v49, 0.0  ;;  %v173_v48 = vld [vmem:[#allocation2 + $0x58] sm:$0xff] }
  0x97   :  { %v321_v55 = vpack.c.bf16 %v643_v52, %v643_v52  ;;  %287 = vst.msk [vmem:[#allocation2 + $0x28] sm:$0xff] %vm25_vm0, %v270_v50  ;;  %v277_v59 = vadd.f32 %v255_v57, %v174_v54  ;;  %v393_v49 = vmul.f32 %v643_v52, %v643_v52 }
  0x98   :  { %334 = vst.msk [vmem:[%s815_s4] sm:$0xf] %vm333_vm1, %v317_v51  ;;  %v405_v43 = vsel %vm25_vm0, %v389_v31, 0.0 }
  0x99   :  { %338 = vst.msk [vmem:[%s815_s4 + $0x10] sm:$0xf] %vm333_vm1, %v321_v55 }
  0x9a   :  { %290 = vst.msk [vmem:[#allocation2 + $0x40] sm:$0xff] %vm25_vm0, %v273_v56  ;;  %v177_v56 = vld [vmem:[#allocation2 + $0x78] sm:$0xff] }
  0x9b   :  { %v230_v61 = vpop.f32.mrf.mxu0  ;;  %294 = vst.msk [vmem:[#allocation2 + $0x60] sm:$0xff] %vm25_vm0, %v277_v59 }
  0x9c   :  { %v267_v62 = vadd.f32 %v230_v61, %v164_v58  ;;  %v240_v63 = vpop.f32.mrf.mxu1 }
  0x9d   :  { %v302_v0 = vld [vmem:[#allocation2 + $0x8] sm:$0xff]  ;;  %v271_v1 = vadd.f32 %v240_v63, %v168_v60  ;;  %v247_v6 = vpop.f32.mrf.mxu2  ;;  %v357_v60 = vsel %vm25_vm0, %v643_v52, 0.0 }
  0x9e   :  { %v318_v3 = vpack.c.bf16 %v302_v0, %v302_v0  ;;  %v659_v4 = vld [vmem:[#allocation2 + $0x28] sm:$0xff]  ;;  %284 = vst.msk [vmem:[#allocation2 + $0x10] sm:$0xff] %vm25_vm0, %v267_v62  ;;  %v274_v10 = vadd.f32 %v247_v6, %v171_v2  ;;  %v257_v11 = vpop.f32.mrf.mxu3  ;;  %v390_v25 = vmul.f32 %v302_v0, %v302_v0  ;;  %v351_v32 = vsel %vm25_vm0, %v302_v0, 0.0 }
  0x9f   :  { %v322_v9 = vpack.c.bf16 %v659_v4, %v659_v4  ;;  %288 = vst.msk [vmem:[#allocation2 + $0x30] sm:$0xff] %vm25_vm0, %v271_v1  ;;  %v278_v14 = vadd.f32 %v257_v11, %v175_v8  ;;  %v352_v41 = vadd.f32 %v351_v32, %v350_v7  ;;  %v394_v61 = vmul.f32 %v659_v4, %v659_v4 }
  0xa0   :  { %335 = vst.msk [vmem:[%s815_s4 + $0x4] sm:$0xf] %vm333_vm1, %v318_v3  ;;  %v406_v37 = vsel %vm25_vm0, %v390_v25, 0.0  ;;  %v412_v6 = vsel %vm25_vm0, %v393_v49, 0.0  ;;  %v359_v8 = vsel %vm25_vm0, %v659_v4, 0.0 }
  0xa1   :  { %339 = vst.msk [vmem:[%s815_s4 + $0x14] sm:$0xf] %vm333_vm1, %v322_v9  ;;  %v673_v12 = vld [vmem:[#allocation2 + $0x40] sm:$0xff]  ;;  %v407_v45 = vadd.f32 %v406_v37, %v405_v43 }
  0xa2   :  { %v325_v15 = vpack.c.bf16 %v673_v12, %v673_v12  ;;  %291 = vst.msk [vmem:[#allocation2 + $0x48] sm:$0xff] %vm25_vm0, %v274_v10  ;;  %v678_v16 = vld [vmem:[#allocation2 + $0x60] sm:$0xff] }
  0xa3   :  { %v329_v18 = vpack.c.bf16 %v678_v16, %v678_v16  ;;  %v232_v19 = vpop.f32.mrf.mxu0  ;;  %295 = vst.msk [vmem:[#allocation2 + $0x68] sm:$0xff] %vm25_vm0, %v278_v14 }
  0xa4   :  { %342 = vst.msk [vmem:[%s815_s4 + $0x20] sm:$0xf] %vm333_vm1, %v325_v15  ;;  %v268_v20 = vadd.f32 %v232_v19, %v165_v13  ;;  %v242_v21 = vpop.f32.mrf.mxu1 }
  0xa5   :  { %v303_v22 = vld [vmem:[#allocation2 + $0x10] sm:$0xff]  ;;  %346 = vst.msk [vmem:[%s815_s4 + $0x30] sm:$0xf] %vm333_vm1, %v329_v18  ;;  %v272_v23 = vadd.f32 %v242_v21, %v169_v17  ;;  %v250_v28 = vpop.f32.mrf.mxu2  ;;  %v414_v17 = vsel %vm25_vm0, %v394_v61, 0.0  ;;  %v397_v21 = vmul.f32 %v673_v12, %v673_v12 }
  0xa6   :  { %v319_v26 = vpack.c.bf16 %v303_v22, %v303_v22  ;;  %v691_v27 = vld [vmem:[#allocation2 + $0x30] sm:$0xff]  ;;  %285 = vst.msk [vmem:[#allocation2 + $0x18] sm:$0xff] %vm25_vm0, %v268_v20  ;;  %v391_v33 = vmul.f32 %v303_v22, %v303_v22  ;;  %v275_v34 = vadd.f32 %v250_v28, %v172_v24  ;;  %v260_v5 = vpop.f32.mrf.mxu3  ;;  %v353_v38 = vsel %vm25_vm0, %v303_v22, 0.0 }
  0xa7   :  { %v323_v30 = vpack.c.bf16 %v691_v27, %v691_v27  ;;  %289 = vst.msk [vmem:[#allocation2 + $0x38] sm:$0xff] %vm25_vm0, %v272_v23  ;;  %v279_v36 = vadd.f32 %v260_v5, %v176_v29  ;;  %v354_v46 = vadd.f32 %v353_v38, %v352_v41  ;;  %v395_v9 = vmul.f32 %v691_v27, %v691_v27 }
  0xa8   :  { %336 = vst.msk [vmem:[%s815_s4 + $0x8] sm:$0xf] %vm333_vm1, %v319_v26  ;;  %v408_v44 = vsel %vm25_vm0, %v391_v33, 0.0  ;;  %v361_v18 = vsel %vm25_vm0, %v691_v27, 0.0  ;;  %v365_v26 = vsel %vm25_vm0, %v673_v12, 0.0  ;;  %v420_v32 = vsel %vm25_vm0, %v397_v21, 0.0 }
  0xa9   :  { %340 = vst.msk [vmem:[%s815_s4 + $0x18] sm:$0xf] %vm333_vm1, %v323_v30  ;;  %v708_v35 = vld [vmem:[#allocation2 + $0x48] sm:$0xff]  ;;  %v409_v57 = vadd.f32 %v408_v44, %v407_v45  ;;  %v416_v22 = vsel %vm25_vm0, %v395_v9, 0.0 }
  0xaa   :  { %v326_v39 = vpack.c.bf16 %v708_v35, %v708_v35  ;;  %292 = vst.msk [vmem:[#allocation2 + $0x50] sm:$0xff] %vm25_vm0, %v275_v34  ;;  %v717_v40 = vld [vmem:[#allocation2 + $0x68] sm:$0xff]  ;;  %v398_v27 = vmul.f32 %v708_v35, %v708_v35  ;;  %v367_v33 = vsel %vm25_vm0, %v708_v35, 0.0  ;;  %v401_v35 = vmul.f32 %v678_v16, %v678_v16 }
  0xab   :  { %v330_v42 = vpack.c.bf16 %v717_v40, %v717_v40  ;;  %296 = vst.msk [vmem:[#allocation2 + $0x70] sm:$0xff] %vm25_vm0, %v279_v36  ;;  %v402_v49 = vmul.f32 %v717_v40, %v717_v40 }
  0xac   :  { %343 = vst.msk [vmem:[%s815_s4 + $0x24] sm:$0xf] %vm333_vm1, %v326_v39  ;;  %v422_v12 = vsel %vm25_vm0, %v398_v27, 0.0 }
  0xad   :  { %v304_v47 = vld [vmem:[#allocation2 + $0x18] sm:$0xff]  ;;  %347 = vst.msk [vmem:[%s815_s4 + $0x34] sm:$0xf] %vm333_vm1, %v330_v42  ;;  %v252_v55 = vpop.f32.mrf.mxu2 }
  0xae   :  { %v320_v50 = vpack.c.bf16 %v304_v47, %v304_v47  ;;  %v355_v51 = vsel %vm25_vm0, %v304_v47, 0.0  ;;  %v392_v53 = vmul.f32 %v304_v47, %v304_v47  ;;  %v308_v54 = vld [vmem:[#allocation2 + $0x38] sm:$0xff]  ;;  %v276_v63 = vadd.f32 %v252_v55, %v173_v48  ;;  %v262_v0 = vpop.f32.mrf.mxu3 }
  0xaf   :  { %v356_v58 = vadd.f32 %v355_v51, %v354_v46  ;;  %v324_v59 = vpack.c.bf16 %v308_v54, %v308_v54  ;;  %v280_v3 = vadd.f32 %v262_v0, %v177_v56  ;;  %v396_v19 = vmul.f32 %v308_v54, %v308_v54 }
  0xb0   :  { %337 = vst.msk [vmem:[%s815_s4 + $0xc] sm:$0xf] %vm333_vm1, %v320_v50  ;;  %v410_v62 = vsel %vm25_vm0, %v392_v53, 0.0  ;;  %v363_v23 = vsel %vm25_vm0, %v308_v54, 0.0  ;;  %v373_v48 = vsel %vm25_vm0, %v678_v16, 0.0  ;;  %v428_v54 = vsel %vm25_vm0, %v401_v35, 0.0 }
  0xb1   :  { %v358_v1 = vadd.f32 %v357_v60, %v356_v58  ;;  %v411_v2 = vadd.f32 %v410_v62, %v409_v57  ;;  %341 = vst.msk [vmem:[%s815_s4 + $0x1c] sm:$0xf] %vm333_vm1, %v324_v59  ;;  %v311_v52 = vld [vmem:[#allocation2 + $0x50] sm:$0xff]  ;;  %v418_v28 = vsel %vm25_vm0, %v396_v19, 0.0  ;;  %v375_v55 = vsel %vm25_vm0, %v717_v40, 0.0 }
  0xb2   :  { %v327_v10 = vpack.c.bf16 %v311_v52, %v311_v52  ;;  %293 = vst.msk [vmem:[#allocation2 + $0x58] sm:$0xff] %vm25_vm0, %v276_v63  ;;  %v315_v11 = vld [vmem:[#allocation2 + $0x70] sm:$0xff]  ;;  %v399_v34 = vmul.f32 %v311_v52, %v311_v52  ;;  %v369_v39 = vsel %vm25_vm0, %v311_v52, 0.0  ;;  %v430_v59 = vsel %vm25_vm0, %v402_v49, 0.0 }
  0xb3   :  { %v413_v13 = vadd.f32 %v412_v6, %v411_v2  ;;  %v360_v14 = vadd.f32 %v359_v8, %v358_v1  ;;  %v331_v15 = vpack.c.bf16 %v315_v11, %v315_v11  ;;  %297 = vst.msk [vmem:[#allocation2 + $0x78] sm:$0xff] %vm25_vm0, %v280_v3  ;;  %v403_v56 = vmul.f32 %v315_v11, %v315_v11 }
  0xb4   :  { %344 = vst.msk [vmem:[%s815_s4 + $0x28] sm:$0xf] %vm333_vm1, %v327_v10  ;;  %v424_v44 = vsel %vm25_vm0, %v399_v34, 0.0  ;;  %v377_v60 = vsel %vm25_vm0, %v315_v11, 0.0 }
  0xb5   :  { %v362_v4 = vadd.f32 %v361_v18, %v360_v14  ;;  %v415_v20 = vadd.f32 %v414_v17, %v413_v13  ;;  %348 = vst.msk [vmem:[%s815_s4 + $0x38] sm:$0xf] %vm333_vm1, %v331_v15  ;;  %v432_v63 = vsel %vm25_vm0, %v403_v56, 0.0 }
  0xb7   :  { %v364_v24 = vadd.f32 %v363_v23, %v362_v4  ;;  %v417_v25 = vadd.f32 %v416_v22, %v415_v20 }
  0xb9   :  { %v366_v29 = vadd.f32 %v365_v26, %v364_v24  ;;  %v419_v30 = vadd.f32 %v418_v28, %v417_v25  ;;  %v312_v31 = vld [vmem:[#allocation2 + $0x58] sm:$0xff] }
  0xba   :  { %v328_v5 = vpack.c.bf16 %v312_v31, %v312_v31  ;;  %v316_v36 = vld [vmem:[#allocation2 + $0x78] sm:$0xff]  ;;  %v400_v41 = vmul.f32 %v312_v31, %v312_v31  ;;  %v371_v45 = vsel %vm25_vm0, %v312_v31, 0.0 }
  0xbb   :  { %v421_v7 = vadd.f32 %v420_v32, %v419_v30  ;;  %v368_v37 = vadd.f32 %v367_v33, %v366_v29  ;;  %v332_v38 = vpack.c.bf16 %v316_v36, %v316_v36  ;;  %v404_v16 = vmul.f32 %v316_v36, %v316_v36 }
  0xbc   :  { %345 = vst.msk [vmem:[%s815_s4 + $0x2c] sm:$0xf] %vm333_vm1, %v328_v5  ;;  %v426_v50 = vsel %vm25_vm0, %v400_v41, 0.0  ;;  %v379_v0 = vsel %vm25_vm0, %v316_v36, 0.0 }
  0xbd   :  { %v370_v42 = vadd.f32 %v369_v39, %v368_v37  ;;  %v423_v43 = vadd.f32 %v422_v12, %v421_v7  ;;  %349 = vst.msk [vmem:[%s815_s4 + $0x3c] sm:$0xf] %vm333_vm1, %v332_v38  ;;  %v434_v52 = vsel %vm25_vm0, %v404_v16, 0.0 }
  0xbf   :  { %v425_v46 = vadd.f32 %v424_v44, %v423_v43  ;;  %v372_v47 = vadd.f32 %v371_v45, %v370_v42 }
  0xc1   :  { %v374_v51 = vadd.f32 %v373_v48, %v372_v47  ;;  %v427_v53 = vadd.f32 %v426_v50, %v425_v46 }
  0xc3   :  { %v429_v57 = vadd.f32 %v428_v54, %v427_v53  ;;  %v376_v58 = vadd.f32 %v375_v55, %v374_v51 }
  0xc5   :  { %v378_v61 = vadd.f32 %v377_v60, %v376_v58  ;;  %v431_v62 = vadd.f32 %v430_v59, %v429_v57 }
  0xc7   :  { %v433_v1 = vadd.f32 %v432_v63, %v431_v62  ;;  %v380_v2 = vadd.f32 %v379_v0, %v378_v61 }
  0xc9   :  { %v381_v3 = vrot.slane %v380_v2, 4  ;;  %v435_v40 = vadd.f32 %v434_v52, %v433_v1 }
  0xcb   :  { %v382_v6 = vadd.f32 %v381_v3, %v380_v2  ;;  %v436_v8 = vrot.slane %v435_v40, 4 }
  0xcd   :  { %v383_v9 = vrot.slane %v382_v6, 2  ;;  %v437_v10 = vadd.f32 %v436_v8, %v435_v40 }
  0xcf   :  { %v384_v13 = vadd.f32 %v383_v9, %v382_v6  ;;  %v438_v14 = vrot.slane %v437_v10, 2 }
  0xd1   :  { %v385_v11 = vrot.slane %v384_v13, 1  ;;  %v439_v15 = vadd.f32 %v438_v14, %v437_v10 }
  0xd3   :  { %v386_v17 = vadd.f32 %v385_v11, %v384_v13  ;;  %v440_v18 = vrot.slane %v439_v15, 1 }
  0xd5   :  { %388 = vst.msk [vmem:[%s816_s5] sm:$0x1] %vm387_vm4, %v386_v17  ;;  %v441_v19 = vadd.f32 %v440_v18, %v439_v15 }
  0xd7   :  { %442 = vst.msk [vmem:[%s817_s6] sm:$0x1] %vm387_vm4, %v441_v19 }

</bundles_post_ra>
